<compile_context>
chip_gen: v7x
topology: tpu7x:2x2x1
jax: 0.10.0
libtpu: 0.0.40
codegen_flags: <defaults>
</compile_context>

<pallas_src>
import functools

import jax
import jax.numpy as jnp
from jax.experimental import pallas as pl
from jax.experimental.pallas import tpu as pltpu

_VMEM_LIMIT = 48 * 1024 * 1024          # < v7x 64 MiB physical, << v5e/v6e 128 MiB
_POOL_TILE_BUDGET = 12 * 1024 * 1024    # bytes per x-tile (double-buffered by pipeline)
_LINEAR_SINGLE_BLOCK_BYTES = 8 * 1024 * 1024


def _round_up(x, m):
    return ((x + m - 1) // m) * m


# ---------------------------------------------------------------------------
# Global average pool (+ optional fused per-channel affine, e.g. eval bnneck)
#   x [B, C, H*W]  ->  out [B, C]:   out = (sum_hw(x) * inv_hw) * scale + shift
#   grid = (b_tiles, c_tiles, hw_tiles)  semantics (parallel, parallel, arbitrary)
# ---------------------------------------------------------------------------
def _pool_kernel(x_ref, ss_ref, out_ref, acc_ref, *, hw_total, thw, aw, ragged, inv_hw):
    h = pl.program_id(2)
    last = pl.num_programs(2) - 1

    @pl.when(h == 0)
    def _():
        acc_ref[...] = jnp.zeros_like(acc_ref)

    def _accumulate(x):
        # Steady-state work: plain VPU adds into a lane-wide accumulator.
        # The single cross-lane reduce happens only once, in the finalize step.
        for g in range(thw // aw):
            acc_ref[...] += x[:, :, g * aw:(g + 1) * aw]

    if ragged:
        # Mask only on the (single) ragged last spatial tile; all other steps
        # are pure vld + vadd.
        @pl.when(h < last)
        def _():
            _accumulate(x_ref[...].astype(jnp.float32))

        @pl.when(h == last)
        def _():
            x = x_ref[...].astype(jnp.float32)
            lane = jax.lax.broadcasted_iota(jnp.int32, x.shape, 2)
            valid = hw_total - h * thw
            _accumulate(jnp.where(lane < valid, x, 0.0))
    else:
        _accumulate(x_ref[...].astype(jnp.float32))

    @pl.when(h == last)
    def _():
        s = jnp.sum(acc_ref[...], axis=-1)            # one XLU lane-reduce per out tile
        scale = ss_ref[0:1, :]
        shift = ss_ref[1:2, :]
        out_ref[...] = ((s * inv_hw) * scale + shift).astype(out_ref.dtype)


def _choose_pool_tiles(B, C, HW, itemsize):
    # Spatial (lane) tile: full extent if small, else 2048 lanes (mult of 128).
    THW = HW if HW <= 2048 else 2048
    # Channel tile: multiple of 128 dividing C (lane axis of the output), else C.
    TC = C
    for cand in (512, 256, 128):
        if C > cand and C % cand == 0:
            TC = cand
            break
    TB = B

    def xbytes(tb, tc):
        return tb * tc * THW * itemsize

    # Shrink to the per-tile budget; TB must stay a multiple of 8 (or == B).
    while xbytes(TB, TC) > _POOL_TILE_BUDGET and TB % 16 == 0:
        TB //= 2
    while xbytes(TB, TC) > _POOL_TILE_BUDGET and TC % 256 == 0:
        TC //= 2
    # v7x megacore: make sure the "parallel" axes expose >= 2 tiles when possible.
    if (B // TB) * (C // TC) < 2:
        if TC % 256 == 0:
            TC //= 2
        elif TB % 16 == 0:
            TB //= 2
    return TB, TC, THW


def global_avg_pool_scaled(x_nchw, scale_shift, out_dtype=jnp.float32):
    """mean_{H,W}(x) per channel, then y = mean * scale + shift.

    scale_shift: (2, C) f32, rows [scale, shift].  Use scale=1, shift=0 for the
    plain global average pool; fold the eval-mode bnneck affine in otherwise.
    """
    B, C, H, W = x_nchw.shape
    HW = H * W
    x = x_nchw.reshape(B, C, HW)                      # free (contiguous) reshape
    TB, TC, THW = _choose_pool_tiles(B, C, HW, x.dtype.itemsize)
    n_b, n_c, n_hw = B // TB, C // TC, pl.cdiv(HW, THW)
    aw = 128 if (THW >= 128 and THW % 128 == 0) else THW

    kern = functools.partial(_pool_kernel, hw_total=HW, thw=THW, aw=aw,
                             ragged=(HW % THW != 0), inv_hw=1.0 / HW)
    return pl.pallas_call(
        kern,
        grid=(n_b, n_c, n_hw),
        in_specs=[pl.BlockSpec((TB, TC, THW), lambda b, c, h: (b, c, h)),
                  pl.BlockSpec((2, TC), lambda b, c, h: (0, c))],
        out_specs=pl.BlockSpec((TB, TC), lambda b, c, h: (b, c)),
        out_shape=jax.ShapeDtypeStruct((B, C), out_dtype),
        scratch_shapes=[pltpu.VMEM((TB, TC, aw), jnp.float32)],
        compiler_params=pltpu.CompilerParams(
            dimension_semantics=("parallel", "parallel", "arbitrary"),
            vmem_limit_bytes=_VMEM_LIMIT),
    )(x, scale_shift)


# ---------------------------------------------------------------------------
# Fused bnneck (BatchNorm1d) + linear classifier (bias=False)
#   gf [B, C] f32, bn [4, C] (gamma, beta, mean, var), w [C, Np] bf16 -> [B, Np] f32
#   grid over (padded) output-class tiles; BN is tiny VPU work re-done per tile
#   (usually the whole weight is a single block, so it runs once).
# ---------------------------------------------------------------------------
def _bn_linear_kernel(gf_ref, bn_ref, w_ref, o_ref, *, use_bn, batch_stats, eps):
    gf = gf_ref[...].astype(jnp.float32)              # full (B, C) block
    if use_bn:
        gamma = bn_ref[0:1, :]
        beta = bn_ref[1:2, :]                         # frozen at 0
        if batch_stats:                               # training: biased batch var
            mu = jnp.mean(gf, axis=0, keepdims=True)
            d = gf - mu
            var = jnp.mean(d * d, axis=0, keepdims=True)
        else:                                         # eval: running stats
            mu = bn_ref[2:3, :]
            var = bn_ref[3:4, :]
        feat = (gf - mu) * jax.lax.rsqrt(var + eps) * gamma + beta
    else:
        feat = gf
    o_ref[...] = jnp.dot(feat.astype(w_ref.dtype), w_ref[...],
                         preferred_element_type=jnp.float32).astype(o_ref.dtype)


def bn_linear(gf, bn_params, w_t, *, use_bn, batch_stats, eps=1e-5):
    """gf: (B, C) f32;  w_t: (C, Np) with Np % 128 == 0;  returns (B, Np) f32."""
    B, C = gf.shape
    Np = w_t.shape[1]
    if C * Np * w_t.dtype.itemsize <= _LINEAR_SINGLE_BLOCK_BYTES:
        TN = Np                                       # whole weight resident in VMEM
    else:
        TN = 128
        for cand in (1024, 512, 256):
            if Np % cand == 0:
                TN = cand
                break
    kern = functools.partial(_bn_linear_kernel, use_bn=use_bn,
                             batch_stats=batch_stats, eps=eps)
    return pl.pallas_call(
        kern,
        grid=(Np // TN,),
        in_specs=[pl.BlockSpec((B, C), lambda j: (0, 0)),
                  pl.BlockSpec((4, C), lambda j: (0, 0)),
                  pl.BlockSpec((C, TN), lambda j: (0, j))],
        out_specs=pl.BlockSpec((B, TN), lambda j: (0, j)),
        out_shape=jax.ShapeDtypeStruct((B, Np), jnp.float32),
        compiler_params=pltpu.CompilerParams(
            dimension_semantics=("parallel",),
            vmem_limit_bytes=_VMEM_LIMIT),
    )(gf, bn_params, w_t)


# ---------------------------------------------------------------------------
# Backbone head with deterministic, in-script parameter init
# ---------------------------------------------------------------------------
class BackbonePallas:
    def __init__(self, in_planes, num_classes, num_cls_dom_wise=None,
                 neck='bnneck', neck_feat='after', key=None,
                 weight_dtype=jnp.bfloat16, bn_eps=1e-5):
        self.in_planes = in_planes
        self.num_classes = num_classes
        self.neck = neck
        self.neck_feat = neck_feat
        self.bn_eps = bn_eps

        key = jax.random.PRNGKey(0) if key is None else key
        self.dom_sizes = list(num_cls_dom_wise) if num_cls_dom_wise else []
        keys = jax.random.split(key, 1 + len(self.dom_sizes))

        # classifier: nn.Linear(in_planes, num_classes, bias=False), std=0.001 init.
        # All classifiers (main + domain-wise) are concatenated column-wise into one
        # 128-padded (C, Np_total) bf16 matrix -> one weight-streaming GEMM.
        self.num_classes_pad = _round_up(num_classes, 128)
        offs, total = [], self.num_classes_pad
        for nd in self.dom_sizes:
            offs.append(total)
            total += _round_up(nd, 128)
        self.dom_offsets = offs

        w_all = jnp.zeros((in_planes, total), weight_dtype)
        w_cls = 0.001 * jax.random.normal(keys[0], (num_classes, in_planes), jnp.float32)
        w_all = w_all.at[:, :num_classes].set(w_cls.T.astype(weight_dtype))
        for i, nd in enumerate(self.dom_sizes):
            wi = 0.001 * jax.random.normal(keys[1 + i], (nd, in_planes), jnp.float32)
            w_all = w_all.at[:, offs[i]:offs[i] + nd].set(wi.T.astype(weight_dtype))
        self.w_all_t = w_all

        # bottleneck BatchNorm1d: weights_init_kaiming -> gamma=1, beta=0 (frozen);
        # running_mean=0, running_var=1.  Packed rows: [gamma, beta, mean, var].
        gamma = jnp.ones((in_planes,), jnp.float32)
        beta = jnp.zeros((in_planes,), jnp.float32)
        mean = jnp.zeros((in_planes,), jnp.float32)
        var = jnp.ones((in_planes,), jnp.float32)
        self.bn_params = jnp.stack([gamma, beta, mean, var], axis=0)
        # eval-mode bnneck folded into a per-channel affine (fused into pool finalize)
        s = gamma * jax.lax.rsqrt(var + bn_eps)
        self.bn_eval_scale = s
        self.bn_eval_shift = beta - mean * s

    def forward(self, x_feat, label=None, domains=None, training=False):
        # TODO(synk): `self.base(x)` (pretrained ResNet/IBN-Net) is not re-implemented;
        # `x_feat` is its output feature map.
        B, C, H, W = x_feat.shape
        ones = jnp.ones((C,), jnp.float32)
        zeros = jnp.zeros((C,), jnp.float32)

        if not training:
            # Eval: ONE kernel.  bnneck (running stats) is folded into the pool
            # finalize when its output is what gets returned.
            if self.neck == 'bnneck' and self.neck_feat == 'after':
                ss = jnp.stack([self.bn_eval_scale, self.bn_eval_shift], axis=0)
            else:  # neck == 'no' or neck_feat != 'after'  ->  raw global_feat
                ss = jnp.stack([ones, zeros], axis=0)
            return global_avg_pool_scaled(x_feat, ss)

        # ---- training ----
        ss_id = jnp.stack([ones, zeros], axis=0)
        global_feat = global_avg_pool_scaled(x_feat, ss_id)          # (B, C) f32

        # bnneck (batch stats) fused into the single concatenated classifier GEMM.
        scores = bn_linear(global_feat, self.bn_params, self.w_all_t,
                           use_bn=(self.neck == 'bnneck'), batch_stats=True,
                           eps=self.bn_eps)
        cls_score = scores[:, :self.num_classes]

        cls_score_ = []
        if self.dom_sizes and domains is not None:
            dom = jnp.asarray(domains)
            # Single host sync (the torch reference is data-dependent here too).
            counts = jax.device_get(jnp.bincount(dom, length=len(self.dom_sizes)))
            # TODO(synk): under jax.jit, return the full per-domain score blocks and
            # do the data-dependent row selection in the loss instead.
            for i, nd in enumerate(self.dom_sizes):
                cnt = int(counts[i])
                if cnt == 0:
                    cls_score_.append(None)
                    continue
                off = self.dom_offsets[i]
                sc = scores[:, off:off + nd]
                idx = jnp.flatnonzero(dom == i, size=cnt)            # fixed shape
                # torch `.squeeze()` -> 1-D result when exactly one sample matched
                cls_score_.append(sc[idx[0]] if cnt == 1 else sc[idx])
        return cls_score, global_feat, label, cls_score_


if __name__ == "__main__":
    key = jax.random.PRNGKey(0)
    k_x, k_params = jax.random.split(key)

    # Small shapes consistent with a resnet18-style backbone (in_planes=512).
    B, C, H, W = 2, 512, 4, 4
    num_classes = 64
    num_cls_dom_wise = [10, 12]

    # Stand-in for `self.base(x)` output (pretrained ResNet not re-implemented).
    x_feat = jax.random.normal(k_x, (B, C, H, W), jnp.float32)

    model = BackbonePallas(C, num_classes, num_cls_dom_wise,
                           neck='bnneck', neck_feat='after', key=k_params)

    # -------- eval-mode forward: returns bnneck feat (neck_feat='after') --------
    feat = model.forward(x_feat, training=False)
    jax.block_until_ready(feat)
    assert feat.shape == (B, C)

    gf_ref = jnp.mean(x_feat.reshape(B, C, H * W), axis=-1)
    feat_ref = gf_ref * jax.lax.rsqrt(jnp.asarray(1.0 + 1e-5, jnp.float32))
    assert jnp.allclose(feat, feat_ref, atol=2e-3, rtol=2e-3)

    # -------- training-mode forward --------
    label = jnp.arange(B, dtype=jnp.int32)
    domains = jnp.array([0, 1], dtype=jnp.int32)
    cls_score, global_feat, label_out, cls_score_ = model.forward(
        x_feat, label=label, domains=domains, training=True)
    jax.block_until_ready((cls_score, global_feat))
    jax.block_until_ready([c for c in cls_score_ if c is not None])

    assert cls_score.shape == (B, num_classes)
    assert global_feat.shape == (B, C)
    assert cls_score_[0] is not None and cls_score_[0].shape == (num_cls_dom_wise[0],)
    assert cls_score_[1] is not None and cls_score_[1].shape == (num_cls_dom_wise[1],)

    # pure-JAX reference for the training head (mirrors kernel dtypes)
    mu = jnp.mean(gf_ref, axis=0, keepdims=True)
    var = jnp.mean((gf_ref - mu) ** 2, axis=0, keepdims=True)
    feat_tr = (gf_ref - mu) * jax.lax.rsqrt(var + 1e-5)
    scores_ref = jnp.dot(feat_tr.astype(jnp.bfloat16).astype(jnp.float32),
                         model.w_all_t.astype(jnp.float32))
    assert jnp.allclose(global_feat, gf_ref, atol=2e-3, rtol=2e-3)
    assert jnp.allclose(cls_score, scores_ref[:, :num_classes], atol=2e-3, rtol=2e-2)

    print("KERNEL_OK")
</pallas_src>

<mosaic_0001>
module attributes {stable_mosaic.version = 11 : i64} {
  func.func @_pool_kernel(%arg0: i32, %arg1: i32, %arg2: i32, %arg3: memref<2x256x16xf32, #tpu.memory_space<vmem>>, %arg4: memref<2x256xf32, #tpu.memory_space<vmem>>, %arg5: memref<2x256xf32, #tpu.memory_space<vmem>>, %arg6: memref<2x256x16xf32, #tpu.memory_space<vmem>>) attributes {dimension_semantics = [#tpu.dimension_semantics<parallel>, #tpu.dimension_semantics<parallel>, #tpu.dimension_semantics<arbitrary>], iteration_bounds = array<i64: 1, 2, 1>, scalar_prefetch = 0 : i64, scratch_operands = 1 : i64, tpu.core_type = #tpu.core_type<tc>, window_params = [{transform_indices = @transform_0, window_bounds = array<i64: 2, 256, 16>}, {transform_indices = @transform_1, window_bounds = array<i64: 2, 256>}, {transform_indices = @transform_2, window_bounds = array<i64: 2, 256>}]} {
    %c0_i32 = arith.constant 0 : i32
    %0 = arith.cmpi eq, %arg2, %c0_i32 : i32
    %1 = arith.extui %0 : i1 to i32
    %c0_i32_0 = arith.constant 0 : i32
    %2 = arith.cmpi ne, %1, %c0_i32_0 : i32
    scf.if %2 {
      %cst = arith.constant 0.000000e+00 : f32
      %10 = vector.broadcast %cst : f32 to vector<2x256x16xf32>
      %c0_11 = arith.constant 0 : index
      %c0_12 = arith.constant 0 : index
      %c0_13 = arith.constant 0 : index
      %11 = vector.load %arg6[%c0_11, %c0_12, %c0_13] : memref<2x256x16xf32, #tpu.memory_space<vmem>>, vector<2x256x16xf32>
      tpu.vector_store %arg6[%c0_11, %c0_12, %c0_13], %10 {strides = array<i32>} : memref<2x256x16xf32, #tpu.memory_space<vmem>>, vector<2x256x16xf32>,
    } else {
    }
    %c0 = arith.constant 0 : index
    %c0_1 = arith.constant 0 : index
    %c0_2 = arith.constant 0 : index
    %3 = vector.load %arg3[%c0, %c0_1, %c0_2] : memref<2x256x16xf32, #tpu.memory_space<vmem>>, vector<2x256x16xf32>
    %c0_3 = arith.constant 0 : index
    %c0_4 = arith.constant 0 : index
    %c0_5 = arith.constant 0 : index
    %4 = vector.load %arg6[%c0_3, %c0_4, %c0_5] : memref<2x256x16xf32, #tpu.memory_space<vmem>>, vector<2x256x16xf32>
    %5 = arith.addf %4, %3 : vector<2x256x16xf32>
    %c0_6 = arith.constant 0 : index
    %c0_7 = arith.constant 0 : index
    %c0_8 = arith.constant 0 : index
    %6 = vector.load %arg6[%c0_6, %c0_7, %c0_8] : memref<2x256x16xf32, #tpu.memory_space<vmem>>, vector<2x256x16xf32>
    tpu.vector_store %arg6[%c0_6, %c0_7, %c0_8], %5 {strides = array<i32>} : memref<2x256x16xf32, #tpu.memory_space<vmem>>, vector<2x256x16xf32>,
    %c0_i32_9 = arith.constant 0 : i32
    %7 = arith.cmpi eq, %arg2, %c0_i32_9 : i32
    %8 = arith.extui %7 : i1 to i32
    %c0_i32_10 = arith.constant 0 : i32
    %9 = arith.cmpi ne, %8, %c0_i32_10 : i32
    scf.if %9 {
      %c0_11 = arith.constant 0 : index
      %c0_12 = arith.constant 0 : index
      %c0_13 = arith.constant 0 : index
      %10 = vector.load %arg6[%c0_11, %c0_12, %c0_13] : memref<2x256x16xf32, #tpu.memory_space<vmem>>, vector<2x256x16xf32>
      %cst = arith.constant dense<0.000000e+00> : vector<2x256xf32>
      %11 = vector.multi_reduction <add>, %10, %cst [2] : vector<2x256x16xf32> to vector<2x256xf32>
      %c0_14 = arith.constant 0 : index
      %c0_15 = arith.constant 0 : index
      %12 = vector.load %arg4[%c0_14, %c0_15] : memref<2x256xf32, #tpu.memory_space<vmem>>, vector<1x256xf32>
      %c1 = arith.constant 1 : index
      %c0_16 = arith.constant 0 : index
      %13 = vector.load %arg4[%c1, %c0_16] : memref<2x256xf32, #tpu.memory_space<vmem>>, vector<1x256xf32>
      %cst_17 = arith.constant 6.250000e-02 : f32
      %14 = vector.broadcast %cst_17 : f32 to vector<2x256xf32>
      %15 = arith.mulf %11, %14 : vector<2x256xf32>
      %16 = vector.broadcast %12 : vector<1x256xf32> to vector<2x256xf32>
      %17 = arith.mulf %15, %16 : vector<2x256xf32>
      %18 = vector.broadcast %13 : vector<1x256xf32> to vector<2x256xf32>
      %19 = arith.addf %17, %18 : vector<2x256xf32>
      %c0_18 = arith.constant 0 : index
      %c0_19 = arith.constant 0 : index
      %20 = vector.load %arg5[%c0_18, %c0_19] : memref<2x256xf32, #tpu.memory_space<vmem>>, vector<2x256xf32>
      tpu.vector_store %arg5[%c0_18, %c0_19], %19 {strides = array<i32>} : memref<2x256xf32, #tpu.memory_space<vmem>>, vector<2x256xf32>,
    } else {
    }
    return
  }
  func.func @transform_0(%arg0: i32, %arg1: i32, %arg2: i32) -> (i32, i32, i32) {
    %c0_i32 = arith.constant 0 : i32
    return %arg0, %arg1, %arg2 : i32, i32, i32
  }
  func.func @transform_1(%arg0: i32, %arg1: i32, %arg2: i32) -> (i32, i32) {
    %c0_i32 = arith.constant 0 : i32
    %c0_i32_0 = arith.constant 0 : i32
    return %c0_i32, %arg1 : i32, i32
  }
  func.func @transform_2(%arg0: i32, %arg1: i32, %arg2: i32) -> (i32, i32) {
    %c0_i32 = arith.constant 0 : i32
    return %arg0, %arg1 : i32, i32
  }
}

</mosaic_0001>

<bundles_post_ra>
// kernel: tpu_custom_call.1
= control target key start
LH: loop header
LB: loop body
LE: loop exit
PB: predicated region body
PF: predicated region fallthrough
CT: control target
= control target key end

     0   :  { %7 = vsyncpa [#allocation5], 0  ;;  %s6762_s0 = inlined_call_operand.vmem [shape: f32[2,512,16], index: 0, kind: input, shape index: {}]   ;;  %s6763_s1 = inlined_call_operand.vmem [shape: f32[2,512], index: 1, kind: input, shape index: {}]   ;;  %s6764_s2 = inlined_call_operand.hbm [shape: f32[2,512], index: 2, kind: output, shape index: {}]  }
   0x1   :  { %9 = vsyncpa [#allocation5 + $0x1], 0  ;;  %s4682_s9 = smov 0   ;;  %s4684_s10 = smov 0  }
   0x2   :  { %s4686_s11 = smov 0   ;;  %s4688_s12 = smov 0  }
   0x3   :  { %s4690_s13 = smov 0   ;;  %s4692_s14 = smov 0  }
   0x4 LB: > { %s4502_s15 = sadd.s32 4294967295, %s4661_s14   ;;  %s4503_s16 = sadd.s32 4294967294, %s4661_s14   ;;  %s4661_s14 = sphi %s4692_s14, %s15_s14   ;;  %s4657_s13 = sphi %s4690_s13, %s7076_s13   ;;  %s4653_s12 = sphi %s4688_s12, %s7075_s12   ;;  %s4649_s11 = sphi %s4686_s11, %s7074_s11   ;;  %s4645_s10 = sphi %s4684_s10, %s7073_s10   ;;  %s4641_s9 = sphi %s4682_s9, %s7072_s9  }
   0x5   : > { %s30_s17 = sadd.s32 1, %s4657_s13  ;;  %s45_s18 = sadd.s32 1, %s4649_s11 }
   0x6   : > { %p32_p0 = scmp.ge.s32.totalorder %s30_s17, 2  ;;  %p52_p1 = scmp.ne.s32.totalorder %s4649_s11, %s4645_s10 }
   0x7   : > { %p53_p2 = scmp.eq.s32.totalorder %s4661_s14, 0  ;;  %p110_p3 = scmp.eq.s32.totalorder %s4502_s15, 1 }
   0x8   : > { %s7078_s17 = smov (%p32_p0, %s30_s17), 0  ;;  %p115_p6 = scmp.ne.s32.totalorder %s4645_s10, %s4641_s9 }
   0x9   : > { %p54_p4 = por %p53_p2, %p52_p1  ;;  %p4721_p5 = por %p110_p3, %p52_p1 }
   0xa   : > { %s39_s20 = ssub.s32 %s4657_s13, %s7078_s17  ;;  %p116_p8 = scmp.eq.s32.totalorder %s4503_s16, 1 }
   0xb   : > { %p43_p7 = scmp.eq.s32.totalorder %s39_s20, 0  ;;  %p4505_p10 = scmp.ge.s32.totalorder %s4661_s14, 2 }
   0xc   : > { %p4732_p9 = por %p116_p8, %p115_p6 }
   0xd   : > { %s4730_s21 = scalar_select %p43_p7, %s4649_s11, %s45_s18  }
   0xe   : > { %132 = sbr.rel (%p4505_p10) target bundleno = 57 (0x39), region = 16 }
  0x15   : > { %135 = sbr.rel (!%p54_p4) target bundleno = 57 (0x39), region = 20  ;;  %s137_s23 = sand.u32 (%p54_p4), 1, %s4649_s11  }
  0x16   : > { %s4521_s24 = sshll.u32 (%p54_p4), %s4657_s13, 8  ;;  %s4506_s25 = sshll.u32 (%p54_p4), %s137_s23, 9 }
  0x17   : > { %s4744_s28 = scalar_lea.vmem (%p54_p4), %s6762_s0, %s4521_s24  ;;  %s4749_s29 = scalar_lea.vmem (%p54_p4), [#allocation3], %s4506_s25 }
  0x18   : > { %v300_v0 = vld [vmem:[%s4744_s28] sm:$0xff] (%p54_p4)  ;;  %v302_v1 = vld [vmem:[%s4744_s28 + $0x8] sm:$0xff] (%p54_p4)  ;;  %v304_v2 = vld [vmem:[%s4744_s28 + $0x10] sm:$0xff] (%p54_p4) }
  0x19   : > { %301 = vst [vmem:[%s4749_s29] sm:$0xff] (%p54_p4), %v300_v0  ;;  %303 = vst [vmem:[%s4749_s29 + $0x8] sm:$0xff] (%p54_p4), %v302_v1  ;;  %v306_v3 = vld [vmem:[%s4744_s28 + $0x18] sm:$0xff] (%p54_p4)  ;;  %v308_v4 = vld [vmem:[%s4744_s28 + $0x20] sm:$0xff] (%p54_p4) }
  0x1a   : > { %305 = vst [vmem:[%s4749_s29 + $0x10] sm:$0xff] (%p54_p4), %v304_v2  ;;  %v310_v5 = vld [vmem:[%s4744_s28 + $0x28] sm:$0xff] (%p54_p4)  ;;  %307 = vst [vmem:[%s4749_s29 + $0x18] sm:$0xff] (%p54_p4), %v306_v3  ;;  %v312_v6 = vld [vmem:[%s4744_s28 + $0x30] sm:$0xff] (%p54_p4) }
  0x1b   : > { %309 = vst [vmem:[%s4749_s29 + $0x20] sm:$0xff] (%p54_p4), %v308_v4  ;;  %311 = vst [vmem:[%s4749_s29 + $0x28] sm:$0xff] (%p54_p4), %v310_v5  ;;  %v314_v7 = vld [vmem:[%s4744_s28 + $0x38] sm:$0xff] (%p54_p4)  ;;  %v316_v8 = vld [vmem:[%s4744_s28 + $0x40] sm:$0xff] (%p54_p4) }
  0x1c   : > { %313 = vst [vmem:[%s4749_s29 + $0x30] sm:$0xff] %v312_v6  ;;  %315 = vst [vmem:[%s4749_s29 + $0x38] sm:$0xff] %v314_v7  ;;  %v318_v9 = vld [vmem:[%s4744_s28 + $0x48] sm:$0xff]  ;;  %v320_v10 = vld [vmem:[%s4744_s28 + $0x50] sm:$0xff] }
  0x1d   : > { %317 = vst [vmem:[%s4749_s29 + $0x40] sm:$0xff] %v316_v8  ;;  %v322_v11 = vld [vmem:[%s4744_s28 + $0x58] sm:$0xff]  ;;  %319 = vst [vmem:[%s4749_s29 + $0x48] sm:$0xff] %v318_v9  ;;  %v324_v12 = vld [vmem:[%s4744_s28 + $0x60] sm:$0xff] }
  0x1e   : > { %321 = vst [vmem:[%s4749_s29 + $0x50] sm:$0xff] %v320_v10  ;;  %323 = vst [vmem:[%s4749_s29 + $0x58] sm:$0xff] %v322_v11  ;;  %v326_v13 = vld [vmem:[%s4744_s28 + $0x68] sm:$0xff]  ;;  %v328_v14 = vld [vmem:[%s4744_s28 + $0x70] sm:$0xff] }
  0x1f   : > { %325 = vst [vmem:[%s4749_s29 + $0x60] sm:$0xff] %v324_v12  ;;  %327 = vst [vmem:[%s4749_s29 + $0x68] sm:$0xff] %v326_v13  ;;  %v330_v15 = vld [vmem:[%s4744_s28 + $0x78] sm:$0xff]  ;;  %v332_v16 = vld [vmem:[%s4744_s28 + $0x80] sm:$0xff] }
  0x20   : > { %329 = vst [vmem:[%s4749_s29 + $0x70] sm:$0xff] %v328_v14  ;;  %v334_v17 = vld [vmem:[%s4744_s28 + $0x88] sm:$0xff]  ;;  %331 = vst [vmem:[%s4749_s29 + $0x78] sm:$0xff] %v330_v15  ;;  %v336_v18 = vld [vmem:[%s4744_s28 + $0x90] sm:$0xff] }
  0x21   : > { %333 = vst [vmem:[%s4749_s29 + $0x80] sm:$0xff] %v332_v16  ;;  %335 = vst [vmem:[%s4749_s29 + $0x88] sm:$0xff] %v334_v17  ;;  %v338_v19 = vld [vmem:[%s4744_s28 + $0x98] sm:$0xff]  ;;  %v340_v20 = vld [vmem:[%s4744_s28 + $0xa0] sm:$0xff] }
  0x22   : > { %337 = vst [vmem:[%s4749_s29 + $0x90] sm:$0xff] %v336_v18  ;;  %339 = vst [vmem:[%s4749_s29 + $0x98] sm:$0xff] %v338_v19  ;;  %v342_v21 = vld [vmem:[%s4744_s28 + $0xa8] sm:$0xff]  ;;  %v344_v22 = vld [vmem:[%s4744_s28 + $0xb0] sm:$0xff] }
  0x23   : > { %341 = vst [vmem:[%s4749_s29 + $0xa0] sm:$0xff] %v340_v20  ;;  %v346_v23 = vld [vmem:[%s4744_s28 + $0xb8] sm:$0xff]  ;;  %343 = vst [vmem:[%s4749_s29 + $0xa8] sm:$0xff] %v342_v21  ;;  %v348_v24 = vld [vmem:[%s4744_s28 + $0xc0] sm:$0xff] }
  0x24   : > { %345 = vst [vmem:[%s4749_s29 + $0xb0] sm:$0xff] %v344_v22  ;;  %347 = vst [vmem:[%s4749_s29 + $0xb8] sm:$0xff] %v346_v23  ;;  %v350_v25 = vld [vmem:[%s4744_s28 + $0xc8] sm:$0xff]  ;;  %v352_v26 = vld [vmem:[%s4744_s28 + $0xd0] sm:$0xff] }
  0x25   : > { %349 = vst [vmem:[%s4749_s29 + $0xc0] sm:$0xff] %v348_v24  ;;  %351 = vst [vmem:[%s4749_s29 + $0xc8] sm:$0xff] %v350_v25  ;;  %v354_v27 = vld [vmem:[%s4744_s28 + $0xd8] sm:$0xff]  ;;  %v356_v28 = vld [vmem:[%s4744_s28 + $0xe0] sm:$0xff] }
  0x26   : > { %353 = vst [vmem:[%s4749_s29 + $0xd0] sm:$0xff] %v352_v26  ;;  %v358_v29 = vld [vmem:[%s4744_s28 + $0xe8] sm:$0xff]  ;;  %355 = vst [vmem:[%s4749_s29 + $0xd8] sm:$0xff] %v354_v27  ;;  %v360_v30 = vld [vmem:[%s4744_s28 + $0xf0] sm:$0xff] }
  0x27   : > { %357 = vst [vmem:[%s4749_s29 + $0xe0] sm:$0xff] %v356_v28  ;;  %359 = vst [vmem:[%s4749_s29 + $0xe8] sm:$0xff] %v358_v29  ;;  %v362_v31 = vld [vmem:[%s4744_s28 + $0xf8] sm:$0xff]  ;;  %v364_v32 = vld [vmem:[%s4744_s28 + $0x200] sm:$0xff] }
  0x28   : > { %361 = vst [vmem:[%s4749_s29 + $0xf0] sm:$0xff] %v360_v30  ;;  %363 = vst [vmem:[%s4749_s29 + $0xf8] sm:$0xff] %v362_v31  ;;  %v366_v33 = vld [vmem:[%s4744_s28 + $0x208] sm:$0xff]  ;;  %v368_v34 = vld [vmem:[%s4744_s28 + $0x210] sm:$0xff] }
  0x29   : > { %365 = vst [vmem:[%s4749_s29 + $0x100] sm:$0xff] %v364_v32  ;;  %v370_v35 = vld [vmem:[%s4744_s28 + $0x218] sm:$0xff]  ;;  %367 = vst [vmem:[%s4749_s29 + $0x108] sm:$0xff] %v366_v33  ;;  %v372_v36 = vld [vmem:[%s4744_s28 + $0x220] sm:$0xff] }
  0x2a   : > { %369 = vst [vmem:[%s4749_s29 + $0x110] sm:$0xff] %v368_v34  ;;  %371 = vst [vmem:[%s4749_s29 + $0x118] sm:$0xff] %v370_v35  ;;  %v374_v37 = vld [vmem:[%s4744_s28 + $0x228] sm:$0xff]  ;;  %v376_v38 = vld [vmem:[%s4744_s28 + $0x230] sm:$0xff] }
  0x2b   : > { %373 = vst [vmem:[%s4749_s29 + $0x120] sm:$0xff] %v372_v36  ;;  %375 = vst [vmem:[%s4749_s29 + $0x128] sm:$0xff] %v374_v37  ;;  %v378_v39 = vld [vmem:[%s4744_s28 + $0x238] sm:$0xff]  ;;  %v380_v40 = vld [vmem:[%s4744_s28 + $0x240] sm:$0xff] }
  0x2c   : > { %377 = vst [vmem:[%s4749_s29 + $0x130] sm:$0xff] %v376_v38  ;;  %v382_v41 = vld [vmem:[%s4744_s28 + $0x248] sm:$0xff]  ;;  %379 = vst [vmem:[%s4749_s29 + $0x138] sm:$0xff] %v378_v39  ;;  %v384_v42 = vld [vmem:[%s4744_s28 + $0x250] sm:$0xff] }
  0x2d   : > { %381 = vst [vmem:[%s4749_s29 + $0x140] sm:$0xff] %v380_v40  ;;  %383 = vst [vmem:[%s4749_s29 + $0x148] sm:$0xff] %v382_v41  ;;  %v386_v43 = vld [vmem:[%s4744_s28 + $0x258] sm:$0xff]  ;;  %v388_v44 = vld [vmem:[%s4744_s28 + $0x260] sm:$0xff] }
  0x2e   : > { %385 = vst [vmem:[%s4749_s29 + $0x150] sm:$0xff] %v384_v42  ;;  %387 = vst [vmem:[%s4749_s29 + $0x158] sm:$0xff] %v386_v43  ;;  %v390_v45 = vld [vmem:[%s4744_s28 + $0x268] sm:$0xff]  ;;  %v392_v46 = vld [vmem:[%s4744_s28 + $0x270] sm:$0xff] }
  0x2f   : > { %389 = vst [vmem:[%s4749_s29 + $0x160] sm:$0xff] %v388_v44  ;;  %v394_v47 = vld [vmem:[%s4744_s28 + $0x278] sm:$0xff]  ;;  %391 = vst [vmem:[%s4749_s29 + $0x168] sm:$0xff] %v390_v45  ;;  %v396_v48 = vld [vmem:[%s4744_s28 + $0x280] sm:$0xff] }
  0x30   : > { %393 = vst [vmem:[%s4749_s29 + $0x170] sm:$0xff] %v392_v46  ;;  %395 = vst [vmem:[%s4749_s29 + $0x178] sm:$0xff] %v394_v47  ;;  %v398_v49 = vld [vmem:[%s4744_s28 + $0x288] sm:$0xff]  ;;  %v400_v50 = vld [vmem:[%s4744_s28 + $0x290] sm:$0xff] }
  0x31   : > { %397 = vst [vmem:[%s4749_s29 + $0x180] sm:$0xff] %v396_v48  ;;  %399 = vst [vmem:[%s4749_s29 + $0x188] sm:$0xff] %v398_v49  ;;  %v402_v51 = vld [vmem:[%s4744_s28 + $0x298] sm:$0xff]  ;;  %v404_v52 = vld [vmem:[%s4744_s28 + $0x2a0] sm:$0xff] }
  0x32   : > { %401 = vst [vmem:[%s4749_s29 + $0x190] sm:$0xff] %v400_v50  ;;  %v406_v53 = vld [vmem:[%s4744_s28 + $0x2a8] sm:$0xff]  ;;  %403 = vst [vmem:[%s4749_s29 + $0x198] sm:$0xff] %v402_v51  ;;  %v408_v54 = vld [vmem:[%s4744_s28 + $0x2b0] sm:$0xff] }
  0x33   : > { %405 = vst [vmem:[%s4749_s29 + $0x1a0] sm:$0xff] %v404_v52  ;;  %407 = vst [vmem:[%s4749_s29 + $0x1a8] sm:$0xff] %v406_v53  ;;  %v410_v55 = vld [vmem:[%s4744_s28 + $0x2b8] sm:$0xff]  ;;  %v412_v56 = vld [vmem:[%s4744_s28 + $0x2c0] sm:$0xff] }
  0x34   : > { %409 = vst [vmem:[%s4749_s29 + $0x1b0] sm:$0xff] %v408_v54  ;;  %411 = vst [vmem:[%s4749_s29 + $0x1b8] sm:$0xff] %v410_v55  ;;  %v414_v57 = vld [vmem:[%s4744_s28 + $0x2c8] sm:$0xff]  ;;  %v416_v58 = vld [vmem:[%s4744_s28 + $0x2d0] sm:$0xff] }
  0x35   : > { %413 = vst [vmem:[%s4749_s29 + $0x1c0] sm:$0xff] %v412_v56  ;;  %v418_v59 = vld [vmem:[%s4744_s28 + $0x2d8] sm:$0xff]  ;;  %415 = vst [vmem:[%s4749_s29 + $0x1c8] sm:$0xff] %v414_v57  ;;  %v420_v60 = vld [vmem:[%s4744_s28 + $0x2e0] sm:$0xff] }
  0x36   : > { %417 = vst [vmem:[%s4749_s29 + $0x1d0] sm:$0xff] %v416_v58  ;;  %419 = vst [vmem:[%s4749_s29 + $0x1d8] sm:$0xff] %v418_v59  ;;  %v422_v61 = vld [vmem:[%s4744_s28 + $0x2e8] sm:$0xff]  ;;  %v424_v62 = vld [vmem:[%s4744_s28 + $0x2f0] sm:$0xff] }
  0x37   : > { %421 = vst [vmem:[%s4749_s29 + $0x1e0] sm:$0xff] %v420_v60  ;;  %423 = vst [vmem:[%s4749_s29 + $0x1e8] sm:$0xff] %v422_v61  ;;  %v426_v63 = vld [vmem:[%s4744_s28 + $0x2f8] sm:$0xff] }
  0x38   : > { %425 = vst [vmem:[%s4749_s29 + $0x1f0] sm:$0xff] %v424_v62  ;;  %427 = vst [vmem:[%s4749_s29 + $0x1f8] sm:$0xff] %v426_v63 }
  0x39 PF: > { %p4509_p11 = scmp.ge.s32.totalorder %s4661_s14, 1  ;;  %p441_p12 = scmp.lt.s32.totalorder %s4661_s14, 3 }
  0x3b   : > { %p442_p13 = pnand %p4509_p11, %p441_p12 }
  0x3d   : > { %445 = sbr.rel (%p442_p13) target bundleno = 814 (0x32e), region = 62 }
  0x44   : > { %s4879_s30 = sand.u32 1, %s4645_s10   ;;  %vm487_vm0 = vcmask 130048   ;;  %v4663_v0 = vmov 0.0   ;;  %s4512_s5 = sshll.u32 %s4653_s12, 1  ;;  %vm4040_vm1 = vcmask 130112   ;;  %vm4047_vm2 = vcmask 195712  }
  0x45   : > { %s4510_s3 = sshll.u32 %s4879_s30, 9  ;;  %490 = vst.msk [vmem:[#allocation2 + $0x10] sm:$0xff] %vm487_vm0, %v4663_v0  ;;  %488 = vst.msk [vmem:[#allocation2] sm:$0xff] %vm487_vm0, %v4663_v0  ;;  %p477_p0 = scmp.lt.s32.totalorder %s4512_s5, 3  ;;  %vm4054_vm3 = vcmask 261312   ;;  %vm4061_vm4 = vcmask 326912  }
  0x46   : > { %489 = vst.msk [vmem:[#allocation2 + $0x8] sm:$0xff] %vm487_vm0, %v4663_v0  ;;  %491 = vst.msk [vmem:[#allocation2 + $0x18] sm:$0xff] %vm487_vm0, %v4663_v0  ;;  %s5012_s4 = scalar_lea.vmem [#allocation3], %s4510_s3  ;;  %vm4068_vm5 = vcmask 392512   ;;  %vm4075_vm6 = vcmask 458112   ;;  %vm4082_vm7 = vcmask 523712  }
  0x47   : > { %492 = vst.msk [vmem:[#allocation2 + $0x20] sm:$0xff] %vm487_vm0, %v4663_v0  ;;  %493 = vst.msk [vmem:[#allocation2 + $0x28] sm:$0xff] %vm487_vm0, %v4663_v0  ;;  %v554_v1 = vld [vmem:[%s5012_s4 + $0x10] sm:$0xff]  ;;  %v552_v2 = vld [vmem:[%s5012_s4] sm:$0xff]  ;;  %s7080_s5 = smov (!%p477_p0, %s4512_s5), 3  ;;  %vm4089_vm8 = vcmask 589312  }
  0x48   : > { %494 = vst.msk [vmem:[#allocation2 + $0x30] sm:$0xff] %vm487_vm0, %v4663_v0  ;;  %495 = vst.msk [vmem:[#allocation2 + $0x38] sm:$0xff] %vm487_vm0, %v4663_v0  ;;  %v555_v3 = vld [vmem:[%s5012_s4 + $0x18] sm:$0xff]  ;;  %v553_v4 = vld [vmem:[%s5012_s4 + $0x8] sm:$0xff]  ;;  %s4513_s6 = sshll.u32 %s7080_s5, 1  ;;  %vm4096_vm9 = vcmask 654912  }
  0x49   : > { %496 = vst.msk [vmem:[#allocation2 + $0x40] sm:$0xff] %vm487_vm0, %v4663_v0  ;;  %497 = vst.msk [vmem:[#allocation2 + $0x48] sm:$0xff] %vm487_vm0, %v4663_v0  ;;  %v557_v5 = vld [vmem:[%s5012_s4 + $0x28] sm:$0xff]  ;;  %v556_v6 = vld [vmem:[%s5012_s4 + $0x20] sm:$0xff]  ;;  %s5193_s15 = scalar_lea.vmem %s6763_s1, %s4513_s6  ;;  %vm4103_vm10 = vcmask 720512   ;;  %vm4110_vm11 = vcmask 786112  }
  0x4a   : > { %498 = vst.msk [vmem:[#allocation2 + $0x50] sm:$0xff] %vm487_vm0, %v4663_v0  ;;  %499 = vst.msk [vmem:[#allocation2 + $0x58] sm:$0xff] %vm487_vm0, %v4663_v0  ;;  %v559_v7 = vld [vmem:[%s5012_s4 + $0x38] sm:$0xff]  ;;  %v558_v8 = vld [vmem:[%s5012_s4 + $0x30] sm:$0xff]  ;;  %vm4117_vm12 = vcmask 851712   ;;  %vm4124_vm13 = vcmask 917312  }
  0x4b   : > { %500 = vst.msk [vmem:[#allocation2 + $0x60] sm:$0xff] %vm487_vm0, %v4663_v0  ;;  %501 = vst.msk [vmem:[#allocation2 + $0x68] sm:$0xff] %vm487_vm0, %v4663_v0  ;;  %v561_v9 = vld [vmem:[%s5012_s4 + $0x48] sm:$0xff]  ;;  %v560_v10 = vld [vmem:[%s5012_s4 + $0x40] sm:$0xff]  ;;  %vm4131_vm14 = vcmask 982912   ;;  %vm4138_vm15 = vcmask 1048512  }
  0x4c   : > { %502 = vst.msk [vmem:[#allocation2 + $0x70] sm:$0xff] %vm487_vm0, %v4663_v0  ;;  %503 = vst.msk [vmem:[#allocation2 + $0x78] sm:$0xff] %vm487_vm0, %v4663_v0  ;;  %v563_v11 = vld [vmem:[%s5012_s4 + $0x58] sm:$0xff]  ;;  %v562_v12 = vld [vmem:[%s5012_s4 + $0x50] sm:$0xff]  ;;  %s4511_s16 = sshll.u32 %s4879_s30, 2  ;;  %s4522_s18 = sshll.u32 %s4653_s12, 6 }
  0x4d   : > { %504 = vst.msk [vmem:[#allocation2 + $0x80] sm:$0xff] %vm487_vm0, %v4663_v0  ;;  %505 = vst.msk [vmem:[#allocation2 + $0x88] sm:$0xff] %vm487_vm0, %v4663_v0  ;;  %v618_v13 = vld [vmem:[#allocation2 + $0x10] sm:$0xff]  ;;  %v616_v14 = vld [vmem:[#allocation2] sm:$0xff]  ;;  %s473_s20 = scalar_lea.vmem [#allocation4], %s4511_s16  ;;  %s6713_s26 = scalar_lea.hbm %s6764_s2, %s4522_s18 }
  0x4e   : > { %506 = vst.msk [vmem:[#allocation2 + $0x90] sm:$0xff] %vm487_vm0, %v4663_v0  ;;  %507 = vst.msk [vmem:[#allocation2 + $0x98] sm:$0xff] %vm487_vm0, %v4663_v0  ;;  %v619_v15 = vld [vmem:[#allocation2 + $0x18] sm:$0xff]  ;;  %v565_v16 = vld [vmem:[%s5012_s4 + $0x68] sm:$0xff]  ;;  %v682_v19 = vadd.f32 %v618_v13, %v554_v1  ;;  %v680_v20 = vadd.f32 %v616_v14, %v552_v2  ;;  %s4407_s23 = sshll.u32 %s473_s20, 4  ;;  %s4391_s12 = scalar_lea.sflag [#allocation5], %s4879_s30  ;;  %s6715_s23 = int_to_ptr.vmem [resolvable:$true] %s4407_s23 }
  0x4f   : > { %508 = vst.msk [vmem:[#allocation2 + $0xa0] sm:$0xff] %vm487_vm0, %v4663_v0  ;;  %509 = vst.msk [vmem:[#allocation2 + $0xa8] sm:$0xff] %vm487_vm0, %v4663_v0  ;;  %v564_v17 = vld [vmem:[%s5012_s4 + $0x60] sm:$0xff]  ;;  %v567_v18 = vld [vmem:[%s5012_s4 + $0x78] sm:$0xff]  ;;  %v683_v21 = vadd.f32 %v619_v15, %v555_v3  ;;  %s4583_s27 = scalar_lea.vmem %s6715_s23, 64  ;;  %s4666_s28 = smov [#allocation4]  }
  0x50   : > { %510 = vst.msk [vmem:[#allocation2 + $0xb0] sm:$0xff] %vm487_vm0, %v4663_v0  ;;  %511 = vst.msk [vmem:[#allocation2 + $0xb8] sm:$0xff] %vm487_vm0, %v4663_v0  ;;  %v617_v22 = vld [vmem:[#allocation2 + $0x8] sm:$0xff]  ;;  %v620_v24 = vld [vmem:[#allocation2 + $0x20] sm:$0xff]  ;;  %p4584_p1 = scmp.ne.s32.totalorder %s6715_s23, %s4583_s27  ;;  %s4587_s29 = sshll.u32 %s4666_s28, 4  ;;  %s4588_s29 = int_to_ptr.vmem [resolvable:$false] %s4587_s29 }
  0x51   : > { %512 = vst.msk [vmem:[#allocation2 + $0xc0] sm:$0xff] %vm487_vm0, %v4663_v0  ;;  %513 = vst.msk [vmem:[#allocation2 + $0xc8] sm:$0xff] %vm487_vm0, %v4663_v0  ;;  %v621_v23 = vld [vmem:[#allocation2 + $0x28] sm:$0xff]  ;;  %v681_v25 = vadd.f32 %v617_v22, %v553_v4  ;;  %v684_v27 = vadd.f32 %v620_v24, %v556_v6  ;;  %v623_v28 = vld [vmem:[#allocation2 + $0x38] sm:$0xff]  ;;  %s4589_s3 = scalar_lea.vmem %s4588_s29, 128  ;;  %p4590_p4 = scmp.lt.s32.totalorder %s6715_s23, %s4588_s29 }
  0x52   : > { %514 = vst.msk [vmem:[#allocation2 + $0xd0] sm:$0xff] %vm487_vm0, %v4663_v0  ;;  %515 = vst.msk [vmem:[#allocation2 + $0xd8] sm:$0xff] %vm487_vm0, %v4663_v0  ;;  %v685_v26 = vadd.f32 %v621_v23, %v557_v5  ;;  %v622_v29 = vld [vmem:[#allocation2 + $0x30] sm:$0xff]  ;;  %v625_v30 = vld [vmem:[#allocation2 + $0x48] sm:$0xff]  ;;  %v687_v31 = vadd.f32 %v623_v28, %v559_v7  ;;  %p4585_p2 = pnand %p4584_p1, %p4721_p5  ;;  %p4591_p6 = scmp.lt.s32.totalorder %s4589_s3, %s4583_s27 }
  0x53   : > { %516 = vst.msk [vmem:[#allocation2 + $0xe0] sm:$0xff] %vm487_vm0, %v4663_v0  ;;  %517 = vst.msk [vmem:[#allocation2 + $0xe8] sm:$0xff] %vm487_vm0, %v4663_v0  ;;  %v686_v32 = vadd.f32 %v622_v29, %v558_v8  ;;  %v689_v33 = vadd.f32 %v625_v30, %v561_v9  ;;  %v624_v34 = vld [vmem:[#allocation2 + $0x40] sm:$0xff]  ;;  %v627_v35 = vld [vmem:[#allocation2 + $0x58] sm:$0xff] }
  0x54   : > { %518 = vst.msk [vmem:[#allocation2 + $0xf0] sm:$0xff] %vm487_vm0, %v4663_v0  ;;  %519 = vst.msk [vmem:[#allocation2 + $0xf8] sm:$0xff] %vm487_vm0, %v4663_v0  ;;  %v626_v36 = vld [vmem:[#allocation2 + $0x50] sm:$0xff]  ;;  %v688_v37 = vadd.f32 %v624_v34, %v560_v10  ;;  %v691_v38 = vadd.f32 %v627_v35, %v563_v11  ;;  %v629_v40 = vld [vmem:[#allocation2 + $0x68] sm:$0xff]  ;;  %p4586_p3 = pneg %p4585_p2  ;;  %p4592_p7 = por %p4591_p6, %p4590_p4 }
  0x55   : > { %520 = vst.msk [vmem:[#allocation2 + $0x100] sm:$0xff] %vm487_vm0, %v4663_v0  ;;  %521 = vst.msk [vmem:[#allocation2 + $0x108] sm:$0xff] %vm487_vm0, %v4663_v0  ;;  %v690_v39 = vadd.f32 %v626_v36, %v562_v12  ;;  %v628_v41 = vld [vmem:[#allocation2 + $0x60] sm:$0xff]  ;;  %v631_v42 = vld [vmem:[#allocation2 + $0x78] sm:$0xff]  ;;  %v693_v43 = vadd.f32 %v629_v40, %v565_v16 }
  0x56   : > { %522 = vst.msk [vmem:[#allocation2 + $0x110] sm:$0xff] %vm487_vm0, %v4663_v0  ;;  %523 = vst.msk [vmem:[#allocation2 + $0x118] sm:$0xff] %vm487_vm0, %v4663_v0  ;;  %v692_v44 = vadd.f32 %v628_v41, %v564_v17  ;;  %v695_v45 = vadd.f32 %v631_v42, %v567_v18  ;;  %v566_v46 = vld [vmem:[%s5012_s4 + $0x70] sm:$0xff]  ;;  %v569_v48 = vld [vmem:[%s5012_s4 + $0x88] sm:$0xff]  ;;  %p4593_p8 = pnand %p4592_p7, %p4586_p3 }
  0x57   : > { %524 = vst.msk [vmem:[#allocation2 + $0x120] sm:$0xff] %vm487_vm0, %v4663_v0  ;;  %525 = vst.msk [vmem:[#allocation2 + $0x128] sm:$0xff] %vm487_vm0, %v4663_v0  ;;  %v630_v47 = vld [vmem:[#allocation2 + $0x70] sm:$0xff]  ;;  %v633_v50 = vld [vmem:[#allocation2 + $0x88] sm:$0xff] }
  0x58   : > { %526 = vst.msk [vmem:[#allocation2 + $0x130] sm:$0xff] %vm487_vm0, %v4663_v0  ;;  %527 = vst.msk [vmem:[#allocation2 + $0x138] sm:$0xff] %vm487_vm0, %v4663_v0  ;;  %v694_v49 = vadd.f32 %v630_v47, %v566_v46  ;;  %v568_v51 = vld [vmem:[%s5012_s4 + $0x80] sm:$0xff]  ;;  %v697_v53 = vadd.f32 %v633_v50, %v569_v48  ;;  %v571_v55 = vld [vmem:[%s5012_s4 + $0x98] sm:$0xff] }
  0x59   : > { %528 = vst.msk [vmem:[#allocation2 + $0x140] sm:$0xff] %vm487_vm0, %v4663_v0  ;;  %529 = vst.msk [vmem:[#allocation2 + $0x148] sm:$0xff] %vm487_vm0, %v4663_v0  ;;  %v632_v52 = vld [vmem:[#allocation2 + $0x80] sm:$0xff]  ;;  %v635_v56 = vld [vmem:[#allocation2 + $0x98] sm:$0xff] }
  0x5a   : > { %530 = vst.msk [vmem:[#allocation2 + $0x150] sm:$0xff] %vm487_vm0, %v4663_v0  ;;  %531 = vst.msk [vmem:[#allocation2 + $0x158] sm:$0xff] %vm487_vm0, %v4663_v0  ;;  %v696_v54 = vadd.f32 %v632_v52, %v568_v51  ;;  %v570_v57 = vld [vmem:[%s5012_s4 + $0x90] sm:$0xff]  ;;  %v699_v58 = vadd.f32 %v635_v56, %v571_v55  ;;  %v573_v60 = vld [vmem:[%s5012_s4 + $0xa8] sm:$0xff] }
  0x5b   : > { %532 = vst.msk [vmem:[#allocation2 + $0x160] sm:$0xff] %vm487_vm0, %v4663_v0  ;;  %533 = vst.msk [vmem:[#allocation2 + $0x168] sm:$0xff] %vm487_vm0, %v4663_v0  ;;  %v634_v59 = vld [vmem:[#allocation2 + $0x90] sm:$0xff]  ;;  %v637_v61 = vld [vmem:[#allocation2 + $0xa8] sm:$0xff] }
  0x5c   : > { %534 = vst.msk [vmem:[#allocation2 + $0x170] sm:$0xff] %vm487_vm0, %v4663_v0  ;;  %535 = vst.msk [vmem:[#allocation2 + $0x178] sm:$0xff] %vm487_vm0, %v4663_v0  ;;  %v698_v62 = vadd.f32 %v634_v59, %v570_v57  ;;  %v701_v63 = vadd.f32 %v637_v61, %v573_v60  ;;  %v636_v1 = vld [vmem:[#allocation2 + $0xa0] sm:$0xff]  ;;  %v575_v11 = vld [vmem:[%s5012_s4 + $0xb8] sm:$0xff] }
  0x5d   : > { %536 = vst.msk [vmem:[#allocation2 + $0x180] sm:$0xff] %vm487_vm0, %v4663_v0  ;;  %537 = vst.msk [vmem:[#allocation2 + $0x188] sm:$0xff] %vm487_vm0, %v4663_v0  ;;  %v639_v14 = vld [vmem:[#allocation2 + $0xb8] sm:$0xff]  ;;  %v574_v15 = vld [vmem:[%s5012_s4 + $0xb0] sm:$0xff] }
  0x5e   : > { %538 = vst.msk [vmem:[#allocation2 + $0x190] sm:$0xff] %vm487_vm0, %v4663_v0  ;;  %539 = vst.msk [vmem:[#allocation2 + $0x198] sm:$0xff] %vm487_vm0, %v4663_v0  ;;  %v703_v16 = vadd.f32 %v639_v14, %v575_v11  ;;  %v638_v17 = vld [vmem:[#allocation2 + $0xb0] sm:$0xff]  ;;  %v641_v22 = vld [vmem:[#allocation2 + $0xc8] sm:$0xff] }
  0x5f   : > { %540 = vst.msk [vmem:[#allocation2 + $0x1a0] sm:$0xff] %vm487_vm0, %v4663_v0  ;;  %541 = vst.msk [vmem:[#allocation2 + $0x1a8] sm:$0xff] %vm487_vm0, %v4663_v0  ;;  %v579_v28 = vld [vmem:[%s5012_s4 + $0xd8] sm:$0xff]  ;;  %v642_v34 = vld [vmem:[#allocation2 + $0xd0] sm:$0xff] }
  0x60   : > { %542 = vst.msk [vmem:[#allocation2 + $0x1b0] sm:$0xff] %vm487_vm0, %v4663_v0  ;;  %543 = vst.msk [vmem:[#allocation2 + $0x1b8] sm:$0xff] %vm487_vm0, %v4663_v0  ;;  %v645_v40 = vld [vmem:[#allocation2 + $0xe8] sm:$0xff]  ;;  %v580_v41 = vld [vmem:[%s5012_s4 + $0xe0] sm:$0xff] }
  0x61   : > { %544 = vst.msk [vmem:[#allocation2 + $0x1c0] sm:$0xff] %vm487_vm0, %v4663_v0  ;;  %545 = vst.msk [vmem:[#allocation2 + $0x1c8] sm:$0xff] %vm487_vm0, %v4663_v0  ;;  %v582_v48 = vld [vmem:[%s5012_s4 + $0xf0] sm:$0xff]  ;;  %v585_v50 = vld [vmem:[%s5012_s4 + $0x108] sm:$0xff] }
  0x62   : > { %546 = vst.msk [vmem:[#allocation2 + $0x1d0] sm:$0xff] %vm487_vm0, %v4663_v0  ;;  %547 = vst.msk [vmem:[#allocation2 + $0x1d8] sm:$0xff] %vm487_vm0, %v4663_v0  ;;  %v649_v52 = vld [vmem:[#allocation2 + $0x108] sm:$0xff]  ;;  %v587_v60 = vld [vmem:[%s5012_s4 + $0x118] sm:$0xff] }
  0x63   : > { %548 = vst.msk [vmem:[#allocation2 + $0x1e0] sm:$0xff] %vm487_vm0, %v4663_v0  ;;  %549 = vst.msk [vmem:[#allocation2 + $0x1e8] sm:$0xff] %vm487_vm0, %v4663_v0  ;;  %v651_v61 = vld [vmem:[#allocation2 + $0x118] sm:$0xff] }
  0x64   : > { %550 = vst.msk [vmem:[#allocation2 + $0x1f0] sm:$0xff] %vm487_vm0, %v4663_v0  ;;  %551 = vst.msk [vmem:[#allocation2 + $0x1f8] sm:$0xff] %vm487_vm0, %v4663_v0  ;;  %v572_v0 = vld [vmem:[%s5012_s4 + $0xa0] sm:$0xff] }
  0x65   : > { %747 = vst.msk [vmem:[#allocation2 + $0x10] sm:$0xff] %vm487_vm0, %v682_v19  ;;  %745 = vst.msk [vmem:[#allocation2] sm:$0xff] %vm487_vm0, %v680_v20  ;;  %v700_v5 = vadd.f32 %v636_v1, %v572_v0  ;;  %v702_v20 = vadd.f32 %v638_v17, %v574_v15  ;;  %v586_v0 = vld [vmem:[%s5012_s4 + $0x110] sm:$0xff] }
  0x66   : > { %748 = vst.msk [vmem:[#allocation2 + $0x18] sm:$0xff] %vm487_vm0, %v683_v21  ;;  %746 = vst.msk [vmem:[#allocation2 + $0x8] sm:$0xff] %vm487_vm0, %v681_v25  ;;  %v577_v21 = vld [vmem:[%s5012_s4 + $0xc8] sm:$0xff]  ;;  %v650_v1 = vld [vmem:[#allocation2 + $0x110] sm:$0xff] }
  0x67   : > { %750 = vst.msk [vmem:[#allocation2 + $0x28] sm:$0xff] %vm487_vm0, %v685_v26  ;;  %749 = vst.msk [vmem:[#allocation2 + $0x20] sm:$0xff] %vm487_vm0, %v684_v27  ;;  %v705_v25 = vadd.f32 %v641_v22, %v577_v21  ;;  %v576_v26 = vld [vmem:[%s5012_s4 + $0xc0] sm:$0xff]  ;;  %v654_v17 = vld [vmem:[#allocation2 + $0x130] sm:$0xff] }
  0x68   : > { %752 = vst.msk [vmem:[#allocation2 + $0x38] sm:$0xff] %vm487_vm0, %v687_v31  ;;  %751 = vst.msk [vmem:[#allocation2 + $0x30] sm:$0xff] %vm487_vm0, %v686_v32  ;;  %v640_v27 = vld [vmem:[#allocation2 + $0xc0] sm:$0xff]  ;;  %v643_v32 = vld [vmem:[#allocation2 + $0xd8] sm:$0xff] }
  0x69   : > { %754 = vst.msk [vmem:[#allocation2 + $0x48] sm:$0xff] %vm487_vm0, %v689_v33  ;;  %753 = vst.msk [vmem:[#allocation2 + $0x40] sm:$0xff] %vm487_vm0, %v688_v37  ;;  %v704_v31 = vadd.f32 %v640_v27, %v576_v26  ;;  %v578_v33 = vld [vmem:[%s5012_s4 + $0xd0] sm:$0xff]  ;;  %v707_v37 = vadd.f32 %v643_v32, %v579_v28  ;;  %v592_v22 = vld [vmem:[%s5012_s4 + $0x140] sm:$0xff] }
  0x6a   : > { %756 = vst.msk [vmem:[#allocation2 + $0x58] sm:$0xff] %vm487_vm0, %v691_v38  ;;  %755 = vst.msk [vmem:[#allocation2 + $0x50] sm:$0xff] %vm487_vm0, %v690_v39  ;;  %v706_v38 = vadd.f32 %v642_v34, %v578_v33  ;;  %v581_v39 = vld [vmem:[%s5012_s4 + $0xe8] sm:$0xff]  ;;  %v595_v26 = vld [vmem:[%s5012_s4 + $0x158] sm:$0xff] }
  0x6b   : > { %758 = vst.msk [vmem:[#allocation2 + $0x68] sm:$0xff] %vm487_vm0, %v693_v43  ;;  %757 = vst.msk [vmem:[#allocation2 + $0x60] sm:$0xff] %vm487_vm0, %v692_v44  ;;  %v709_v42 = vadd.f32 %v645_v40, %v581_v39  ;;  %v644_v43 = vld [vmem:[#allocation2 + $0xe0] sm:$0xff]  ;;  %v583_v44 = vld [vmem:[%s5012_s4 + $0xf8] sm:$0xff] }
  0x6c   : > { %760 = vst.msk [vmem:[#allocation2 + $0x78] sm:$0xff] %vm487_vm0, %v695_v45  ;;  %759 = vst.msk [vmem:[#allocation2 + $0x70] sm:$0xff] %vm487_vm0, %v694_v49  ;;  %v814_v2 = vld [vmem:[#allocation2 + $0x10] sm:$0xff]  ;;  %v812_v3 = vld [vmem:[#allocation2] sm:$0xff]  ;;  %v708_v46 = vadd.f32 %v644_v43, %v580_v41 }
  0x6d   : > { %762 = vst.msk [vmem:[#allocation2 + $0x88] sm:$0xff] %vm487_vm0, %v697_v53  ;;  %761 = vst.msk [vmem:[#allocation2 + $0x80] sm:$0xff] %vm487_vm0, %v696_v54  ;;  %v815_v4 = vld [vmem:[#allocation2 + $0x18] sm:$0xff]  ;;  %v882_v6 = vsel %vm487_vm0, %v814_v2, 0.0  ;;  %v876_v7 = vsel %vm487_vm0, %v812_v3, 0.0  ;;  %v813_v8 = vld [vmem:[#allocation2 + $0x8] sm:$0xff]  ;;  %v714_v2 = vadd.f32 %v650_v1, %v586_v0 }
  0x6e   : > { %764 = vst.msk [vmem:[#allocation2 + $0x98] sm:$0xff] %vm487_vm0, %v699_v58  ;;  %763 = vst.msk [vmem:[#allocation2 + $0x90] sm:$0xff] %vm487_vm0, %v698_v62  ;;  %883 = vadd.xlane.f32.xlu1 %v882_v6  ;;  %877 = vadd.xlane.f32.xlu0 %v876_v7  ;;  %v885_v9 = vsel %vm487_vm0, %v815_v4, 0.0  ;;  %v879_v10 = vsel %vm487_vm0, %v813_v8, 0.0  ;;  %v817_v12 = vld [vmem:[#allocation2 + $0x28] sm:$0xff]  ;;  %v816_v13 = vld [vmem:[#allocation2 + $0x20] sm:$0xff]  ;;  %v713_v58 = vadd.f32 %v649_v52, %v585_v50 }
  0x6f   : > { %766 = vst.msk [vmem:[#allocation2 + $0xa8] sm:$0xff] %vm487_vm0, %v701_v63  ;;  %765 = vst.msk [vmem:[#allocation2 + $0xa0] sm:$0xff] %vm487_vm0, %v700_v5  ;;  %v891_v18 = vsel %vm487_vm0, %v817_v12, 0.0  ;;  %v888_v19 = vsel %vm487_vm0, %v816_v13, 0.0  ;;  %v819_v23 = vld [vmem:[#allocation2 + $0x38] sm:$0xff]  ;;  %v818_v24 = vld [vmem:[#allocation2 + $0x30] sm:$0xff]  ;;  %v715_v63 = vadd.f32 %v651_v61, %v587_v60 }
  0x70   : > { %768 = vst.msk [vmem:[#allocation2 + $0xb8] sm:$0xff] %vm487_vm0, %v703_v16  ;;  %767 = vst.msk [vmem:[#allocation2 + $0xb0] sm:$0xff] %vm487_vm0, %v702_v20  ;;  %v821_v29 = vld [vmem:[#allocation2 + $0x48] sm:$0xff]  ;;  %v820_v30 = vld [vmem:[#allocation2 + $0x40] sm:$0xff]  ;;  %v897_v35 = vsel %vm487_vm0, %v819_v23, 0.0  ;;  %v894_v36 = vsel %vm487_vm0, %v818_v24, 0.0 }
  0x71   : > { %770 = vst.msk [vmem:[#allocation2 + $0xc8] sm:$0xff] %vm487_vm0, %v705_v25  ;;  %769 = vst.msk [vmem:[#allocation2 + $0xc0] sm:$0xff] %vm487_vm0, %v704_v31  ;;  %v647_v45 = vld [vmem:[#allocation2 + $0xf8] sm:$0xff]  ;;  %v646_v49 = vld [vmem:[#allocation2 + $0xf0] sm:$0xff]  ;;  %v903_v55 = vsel %vm487_vm0, %v821_v29, 0.0  ;;  %v900_v56 = vsel %vm487_vm0, %v820_v30, 0.0 }
  0x72   : > { %886 = vadd.xlane.f32.xlu1 %v885_v9  ;;  %880 = vadd.xlane.f32.xlu0 %v879_v10  ;;  %772 = vst.msk [vmem:[#allocation2 + $0xd8] sm:$0xff] %vm487_vm0, %v707_v37  ;;  %771 = vst.msk [vmem:[#allocation2 + $0xd0] sm:$0xff] %vm487_vm0, %v706_v38  ;;  %v711_v47 = vadd.f32 %v647_v45, %v583_v44  ;;  %v710_v51 = vadd.f32 %v646_v49, %v582_v48  ;;  %v584_v53 = vld [vmem:[%s5012_s4 + $0x100] sm:$0xff]  ;;  %v823_v57 = vld [vmem:[#allocation2 + $0x58] sm:$0xff] }
  0x73   : > { %774 = vst.msk [vmem:[#allocation2 + $0xe8] sm:$0xff] %vm487_vm0, %v709_v42  ;;  %v648_v54 = vld [vmem:[#allocation2 + $0x100] sm:$0xff]  ;;  %773 = vst.msk [vmem:[#allocation2 + $0xe0] sm:$0xff] %vm487_vm0, %v708_v46  ;;  %v822_v62 = vld [vmem:[#allocation2 + $0x50] sm:$0xff]  ;;  %v909_v9 = vsel %vm487_vm0, %v823_v57, 0.0 }
  0x74   : > { %776 = vst.msk [vmem:[#allocation2 + $0xf8] sm:$0xff] %vm487_vm0, %v711_v47  ;;  %v712_v59 = vadd.f32 %v648_v54, %v584_v53  ;;  %775 = vst.msk [vmem:[#allocation2 + $0xf0] sm:$0xff] %vm487_vm0, %v710_v51  ;;  %v589_v3 = vld [vmem:[%s5012_s4 + $0x128] sm:$0xff]  ;;  %v588_v6 = vld [vmem:[%s5012_s4 + $0x120] sm:$0xff]  ;;  %v906_v10 = vsel %vm487_vm0, %v822_v62, 0.0 }
  0x75   : > { %778 = vst.msk [vmem:[#allocation2 + $0x108] sm:$0xff] %vm487_vm0, %v713_v58  ;;  %v653_v4 = vld [vmem:[#allocation2 + $0x128] sm:$0xff]  ;;  %780 = vst.msk [vmem:[#allocation2 + $0x118] sm:$0xff] %vm487_vm0, %v715_v63  ;;  %v652_v7 = vld [vmem:[#allocation2 + $0x120] sm:$0xff] }
  0x76   : > { %892 = vadd.xlane.f32.xlu1 %v891_v18  ;;  %889 = vadd.xlane.f32.xlu0 %v888_v19  ;;  %777 = vst.msk [vmem:[#allocation2 + $0x100] sm:$0xff] %vm487_vm0, %v712_v59  ;;  %v717_v5 = vadd.f32 %v653_v4, %v589_v3  ;;  %v591_v8 = vld [vmem:[%s5012_s4 + $0x138] sm:$0xff]  ;;  %779 = vst.msk [vmem:[#allocation2 + $0x110] sm:$0xff] %vm487_vm0, %v714_v2  ;;  %v716_v11 = vadd.f32 %v652_v7, %v588_v6  ;;  %v590_v13 = vld [vmem:[%s5012_s4 + $0x130] sm:$0xff] }
  0x77   : > { %v655_v12 = vld [vmem:[#allocation2 + $0x138] sm:$0xff]  ;;  %v825_v14 = vld [vmem:[#allocation2 + $0x68] sm:$0xff]  ;;  %v824_v15 = vld [vmem:[#allocation2 + $0x60] sm:$0xff]  ;;  %v718_v18 = vadd.f32 %v654_v17, %v590_v13 }
  0x78   : > { %782 = vst.msk [vmem:[#allocation2 + $0x128] sm:$0xff] %vm487_vm0, %v717_v5  ;;  %v719_v16 = vadd.f32 %v655_v12, %v591_v8  ;;  %781 = vst.msk [vmem:[#allocation2 + $0x120] sm:$0xff] %vm487_vm0, %v716_v11  ;;  %v593_v19 = vld [vmem:[%s5012_s4 + $0x148] sm:$0xff]  ;;  %v915_v23 = vsel %vm487_vm0, %v825_v14, 0.0  ;;  %v912_v24 = vsel %vm487_vm0, %v824_v15, 0.0  ;;  %v656_v25 = vld [vmem:[#allocation2 + $0x140] sm:$0xff] }
  0x79   : > { %v657_v20 = vld [vmem:[#allocation2 + $0x148] sm:$0xff]  ;;  %783 = vst.msk [vmem:[#allocation2 + $0x130] sm:$0xff] %vm487_vm0, %v718_v18  ;;  %v827_v27 = vld [vmem:[#allocation2 + $0x78] sm:$0xff]  ;;  %v826_v28 = vld [vmem:[#allocation2 + $0x70] sm:$0xff]  ;;  %v720_v29 = vadd.f32 %v656_v25, %v592_v22 }
  0x7a   : > { %898 = vadd.xlane.f32.xlu1 %v897_v35  ;;  %895 = vadd.xlane.f32.xlu0 %v894_v36  ;;  %784 = vst.msk [vmem:[#allocation2 + $0x138] sm:$0xff] %vm487_vm0, %v719_v16  ;;  %v721_v21 = vadd.f32 %v657_v20, %v593_v19  ;;  %v659_v30 = vld [vmem:[#allocation2 + $0x158] sm:$0xff]  ;;  %v594_v32 = vld [vmem:[%s5012_s4 + $0x150] sm:$0xff]  ;;  %v597_v35 = vld [vmem:[%s5012_s4 + $0x168] sm:$0xff]  ;;  %v921_v37 = vsel %vm487_vm0, %v827_v27, 0.0  ;;  %v918_v38 = vsel %vm487_vm0, %v826_v28, 0.0 }
  0x7b   : > { %v723_v31 = vadd.f32 %v659_v30, %v595_v26  ;;  %v658_v33 = vld [vmem:[#allocation2 + $0x150] sm:$0xff]  ;;  %785 = vst.msk [vmem:[#allocation2 + $0x140] sm:$0xff] %vm487_vm0, %v720_v29  ;;  %v661_v36 = vld [vmem:[#allocation2 + $0x168] sm:$0xff]  ;;  %v596_v41 = vld [vmem:[%s5012_s4 + $0x160] sm:$0xff] }
  0x7c   : > { %786 = vst.msk [vmem:[#allocation2 + $0x148] sm:$0xff] %vm487_vm0, %v721_v21  ;;  %v722_v34 = vadd.f32 %v658_v33, %v594_v32  ;;  %v829_v39 = vld [vmem:[#allocation2 + $0x88] sm:$0xff]  ;;  %v725_v40 = vadd.f32 %v661_v36, %v597_v35  ;;  %v660_v42 = vld [vmem:[#allocation2 + $0x160] sm:$0xff]  ;;  %v599_v45 = vld [vmem:[%s5012_s4 + $0x178] sm:$0xff] }
  0x7d   : > { %788 = vst.msk [vmem:[#allocation2 + $0x158] sm:$0xff] %vm487_vm0, %v723_v31  ;;  %v828_v43 = vld [vmem:[#allocation2 + $0x80] sm:$0xff]  ;;  %v724_v44 = vadd.f32 %v660_v42, %v596_v41  ;;  %v663_v46 = vld [vmem:[#allocation2 + $0x178] sm:$0xff]  ;;  %v598_v48 = vld [vmem:[%s5012_s4 + $0x170] sm:$0xff]  ;;  %v927_v54 = vsel %vm487_vm0, %v829_v39, 0.0 }
  0x7e   : > { %904 = vadd.xlane.f32.xlu1 %v903_v55  ;;  %901 = vadd.xlane.f32.xlu0 %v900_v56  ;;  %787 = vst.msk [vmem:[#allocation2 + $0x150] sm:$0xff] %vm487_vm0, %v722_v34  ;;  %790 = vst.msk [vmem:[#allocation2 + $0x168] sm:$0xff] %vm487_vm0, %v725_v40  ;;  %v727_v47 = vadd.f32 %v663_v46, %v599_v45  ;;  %v662_v49 = vld [vmem:[#allocation2 + $0x170] sm:$0xff]  ;;  %v831_v50 = vld [vmem:[#allocation2 + $0x98] sm:$0xff]  ;;  %v924_v55 = vsel %vm487_vm0, %v828_v43, 0.0 }
  0x7f   : > { %789 = vst.msk [vmem:[#allocation2 + $0x160] sm:$0xff] %vm487_vm0, %v724_v44  ;;  %v726_v51 = vadd.f32 %v662_v49, %v598_v48  ;;  %v601_v52 = vld [vmem:[%s5012_s4 + $0x188] sm:$0xff]  ;;  %v830_v56 = vld [vmem:[#allocation2 + $0x90] sm:$0xff]  ;;  %v600_v58 = vld [vmem:[%s5012_s4 + $0x180] sm:$0xff]  ;;  %v933_v6 = vsel %vm487_vm0, %v831_v50, 0.0 }
  0x80   : > { %v665_v53 = vld [vmem:[#allocation2 + $0x188] sm:$0xff]  ;;  %792 = vst.msk [vmem:[#allocation2 + $0x178] sm:$0xff] %vm487_vm0, %v727_v47  ;;  %v664_v59 = vld [vmem:[#allocation2 + $0x180] sm:$0xff]  ;;  %v603_v61 = vld [vmem:[%s5012_s4 + $0x198] sm:$0xff]  ;;  %v930_v7 = vsel %vm487_vm0, %v830_v56, 0.0 }
  0x81   : > { %v729_v57 = vadd.f32 %v665_v53, %v601_v52  ;;  %791 = vst.msk [vmem:[#allocation2 + $0x170] sm:$0xff] %vm487_vm0, %v726_v51  ;;  %v728_v60 = vadd.f32 %v664_v59, %v600_v58  ;;  %v667_v62 = vld [vmem:[#allocation2 + $0x198] sm:$0xff]  ;;  %v602_v63 = vld [vmem:[%s5012_s4 + $0x190] sm:$0xff]  ;;  %v605_v2 = vld [vmem:[%s5012_s4 + $0x1a8] sm:$0xff] }
  0x82   : > { %910 = vadd.xlane.f32.xlu1 %v909_v9  ;;  %907 = vadd.xlane.f32.xlu0 %v906_v10  ;;  %v731_v0 = vadd.f32 %v667_v62, %v603_v61  ;;  %v666_v1 = vld [vmem:[#allocation2 + $0x190] sm:$0xff]  ;;  %v669_v4 = vld [vmem:[#allocation2 + $0x1a8] sm:$0xff]  ;;  %v604_v5 = vld [vmem:[%s5012_s4 + $0x1a0] sm:$0xff] }
  0x83   : > { %794 = vst.msk [vmem:[#allocation2 + $0x188] sm:$0xff] %vm487_vm0, %v729_v57  ;;  %793 = vst.msk [vmem:[#allocation2 + $0x180] sm:$0xff] %vm487_vm0, %v728_v60  ;;  %v730_v3 = vadd.f32 %v666_v1, %v602_v63  ;;  %v833_v8 = vld [vmem:[#allocation2 + $0xa8] sm:$0xff]  ;;  %v733_v9 = vadd.f32 %v669_v4, %v605_v2  ;;  %v668_v10 = vld [vmem:[#allocation2 + $0x1a0] sm:$0xff] }
  0x84   : > { %796 = vst.msk [vmem:[#allocation2 + $0x198] sm:$0xff] %vm487_vm0, %v731_v0  ;;  %v607_v11 = vld [vmem:[%s5012_s4 + $0x1b8] sm:$0xff]  ;;  %v832_v12 = vld [vmem:[#allocation2 + $0xa0] sm:$0xff]  ;;  %v732_v13 = vadd.f32 %v668_v10, %v604_v5  ;;  %v606_v15 = vld [vmem:[%s5012_s4 + $0x1b0] sm:$0xff]  ;;  %v939_v22 = vsel %vm487_vm0, %v833_v8, 0.0 }
  0x85   : > { %795 = vst.msk [vmem:[#allocation2 + $0x190] sm:$0xff] %vm487_vm0, %v730_v3  ;;  %v671_v14 = vld [vmem:[#allocation2 + $0x1b8] sm:$0xff]  ;;  %798 = vst.msk [vmem:[#allocation2 + $0x1a8] sm:$0xff] %vm487_vm0, %v733_v9  ;;  %v670_v17 = vld [vmem:[#allocation2 + $0x1b0] sm:$0xff] }
  0x86   : > { %916 = vadd.xlane.f32.xlu1 %v915_v23  ;;  %913 = vadd.xlane.f32.xlu0 %v912_v24  ;;  %v735_v16 = vadd.f32 %v671_v14, %v607_v11  ;;  %v609_v18 = vld [vmem:[%s5012_s4 + $0x1c8] sm:$0xff]  ;;  %797 = vst.msk [vmem:[#allocation2 + $0x1a0] sm:$0xff] %vm487_vm0, %v732_v13  ;;  %v734_v19 = vadd.f32 %v670_v17, %v606_v15  ;;  %v608_v21 = vld [vmem:[%s5012_s4 + $0x1c0] sm:$0xff]  ;;  %v936_v23 = vsel %vm487_vm0, %v832_v12, 0.0  ;;  %v835_v24 = vld [vmem:[#allocation2 + $0xb8] sm:$0xff] }
  0x87   : > { %v673_v20 = vld [vmem:[#allocation2 + $0x1c8] sm:$0xff]  ;;  %v672_v26 = vld [vmem:[#allocation2 + $0x1c0] sm:$0xff]  ;;  %v611_v27 = vld [vmem:[%s5012_s4 + $0x1d8] sm:$0xff] }
  0x88   : > { %800 = vst.msk [vmem:[#allocation2 + $0x1b8] sm:$0xff] %vm487_vm0, %v735_v16  ;;  %v737_v25 = vadd.f32 %v673_v20, %v609_v18  ;;  %v834_v28 = vld [vmem:[#allocation2 + $0xb0] sm:$0xff]  ;;  %799 = vst.msk [vmem:[#allocation2 + $0x1b0] sm:$0xff] %vm487_vm0, %v734_v19  ;;  %v736_v29 = vadd.f32 %v672_v26, %v608_v21  ;;  %v675_v30 = vld [vmem:[#allocation2 + $0x1d8] sm:$0xff]  ;;  %v6765_v19 = vlaneseq }
  0x89   : > { %v610_v31 = vld [vmem:[%s5012_s4 + $0x1d0] sm:$0xff]  ;;  %v739_v32 = vadd.f32 %v675_v30, %v611_v27  ;;  %v613_v34 = vld [vmem:[%s5012_s4 + $0x1e8] sm:$0xff]  ;;  %v942_v39 = vsel %vm487_vm0, %v834_v28, 0.0  ;;  %v676_v42 = vld [vmem:[#allocation2 + $0x1e0] sm:$0xff] }
  0x8a   : > { %922 = vadd.xlane.f32.xlu1 %v921_v37  ;;  %919 = vadd.xlane.f32.xlu0 %v918_v38  ;;  %802 = vst.msk [vmem:[#allocation2 + $0x1c8] sm:$0xff] %vm487_vm0, %v737_v25  ;;  %v674_v33 = vld [vmem:[#allocation2 + $0x1d0] sm:$0xff]  ;;  %801 = vst.msk [vmem:[#allocation2 + $0x1c0] sm:$0xff] %vm487_vm0, %v736_v29  ;;  %v677_v36 = vld [vmem:[#allocation2 + $0x1e8] sm:$0xff]  ;;  %v945_v38 = vsel %vm487_vm0, %v835_v24, 0.0  ;;  %v5186_v24 = vshrl.u32 %v6765_v19, 7 }
  0x8b   : > { %v738_v35 = vadd.f32 %v674_v33, %v610_v31  ;;  %v612_v37 = vld [vmem:[%s5012_s4 + $0x1e0] sm:$0xff]  ;;  %v837_v40 = vld [vmem:[#allocation2 + $0xc8] sm:$0xff]  ;;  %804 = vst.msk [vmem:[#allocation2 + $0x1d8] sm:$0xff] %vm487_vm0, %v739_v32  ;;  %v741_v41 = vadd.f32 %v677_v36, %v613_v34  ;;  %v615_v43 = vld [vmem:[%s5012_s4 + $0x1f8] sm:$0xff] }
  0x8c   : > { %v836_v44 = vld [vmem:[#allocation2 + $0xc0] sm:$0xff]  ;;  %v740_v45 = vadd.f32 %v676_v42, %v612_v37  ;;  %v679_v46 = vld [vmem:[#allocation2 + $0x1f8] sm:$0xff]  ;;  %v614_v47 = vld [vmem:[%s5012_s4 + $0x1f0] sm:$0xff]  ;;  %v951_v51 = vsel %vm487_vm0, %v837_v40, 0.0  ;;  %6817 = vst [vmem:[#allocation7_spill] sm:$0xff] %v5186_v24  ;;  %v1138_v29 = vsub.s32 0, %v5186_v24 }
  0x8d   : > { %803 = vst.msk [vmem:[#allocation2 + $0x1d0] sm:$0xff] %vm487_vm0, %v738_v35  ;;  %806 = vst.msk [vmem:[#allocation2 + $0x1e8] sm:$0xff] %vm487_vm0, %v741_v41  ;;  %v743_v48 = vadd.f32 %v679_v46, %v615_v43  ;;  %v678_v49 = vld [vmem:[#allocation2 + $0x1f0] sm:$0xff]  ;;  %v948_v52 = vsel %vm487_vm0, %v836_v44, 0.0  ;;  %v839_v53 = vld [vmem:[#allocation2 + $0xd8] sm:$0xff] }
  0x8e   : > { %928 = vadd.xlane.f32.xlu1 %v927_v54  ;;  %925 = vadd.xlane.f32.xlu0 %v924_v55  ;;  %805 = vst.msk [vmem:[#allocation2 + $0x1e0] sm:$0xff] %vm487_vm0, %v740_v45  ;;  %v742_v50 = vadd.f32 %v678_v49, %v614_v47  ;;  %v838_v54 = vld [vmem:[#allocation2 + $0xd0] sm:$0xff]  ;;  %v957_v55 = vsel %vm487_vm0, %v839_v53, 0.0  ;;  %v841_v57 = vld [vmem:[#allocation2 + $0xe8] sm:$0xff]  ;;  %v840_v58 = vld [vmem:[#allocation2 + $0xe0] sm:$0xff] }
  0x8f   : > { %808 = vst.msk [vmem:[#allocation2 + $0x1f8] sm:$0xff] %vm487_vm0, %v743_v48  ;;  %v954_v56 = vsel %vm487_vm0, %v838_v54, 0.0  ;;  %v963_v59 = vsel %vm487_vm0, %v841_v57, 0.0  ;;  %v960_v60 = vsel %vm487_vm0, %v840_v58, 0.0  ;;  %v843_v61 = vld [vmem:[#allocation2 + $0xf8] sm:$0xff]  ;;  %v842_v62 = vld [vmem:[#allocation2 + $0xf0] sm:$0xff] }
  0x90   : > { %807 = vst.msk [vmem:[#allocation2 + $0x1f0] sm:$0xff] %vm487_vm0, %v742_v50  ;;  %v969_v63 = vsel %vm487_vm0, %v843_v61, 0.0  ;;  %v966_v0 = vsel %vm487_vm0, %v842_v62, 0.0  ;;  %v845_v1 = vld [vmem:[#allocation2 + $0x108] sm:$0xff]  ;;  %v844_v2 = vld [vmem:[#allocation2 + $0x100] sm:$0xff]  ;;  %v847_v5 = vld [vmem:[#allocation2 + $0x118] sm:$0xff] }
  0x91   : > { %v975_v3 = vsel %vm487_vm0, %v845_v1, 0.0  ;;  %v972_v4 = vsel %vm487_vm0, %v844_v2, 0.0  ;;  %v849_v9 = vld [vmem:[#allocation2 + $0x128] sm:$0xff]  ;;  %v848_v10 = vld [vmem:[#allocation2 + $0x120] sm:$0xff]  ;;  %v851_v13 = vld [vmem:[#allocation2 + $0x138] sm:$0xff] }
  0x92   : > { %934 = vadd.xlane.f32.xlu1 %v933_v6  ;;  %931 = vadd.xlane.f32.xlu0 %v930_v7  ;;  %v846_v6 = vld [vmem:[#allocation2 + $0x110] sm:$0xff]  ;;  %v981_v7 = vsel %vm487_vm0, %v847_v5, 0.0  ;;  %v987_v11 = vsel %vm487_vm0, %v849_v9, 0.0  ;;  %v984_v12 = vsel %vm487_vm0, %v848_v10, 0.0  ;;  %v993_v15 = vsel %vm487_vm0, %v851_v13, 0.0  ;;  %v853_v17 = vld [vmem:[#allocation2 + $0x148] sm:$0xff] }
  0x93   : > { %v978_v8 = vsel %vm487_vm0, %v846_v6, 0.0  ;;  %v850_v14 = vld [vmem:[#allocation2 + $0x130] sm:$0xff]  ;;  %v852_v18 = vld [vmem:[#allocation2 + $0x140] sm:$0xff]  ;;  %v999_v20 = vsel %vm487_vm0, %v853_v17, 0.0  ;;  %v857_v27 = vld [vmem:[#allocation2 + $0x168] sm:$0xff] }
  0x94   : > { %v990_v16 = vsel %vm487_vm0, %v850_v14, 0.0  ;;  %v996_v21 = vsel %vm487_vm0, %v852_v18, 0.0  ;;  %v856_v28 = vld [vmem:[#allocation2 + $0x160] sm:$0xff]  ;;  %v1011_v31 = vsel %vm487_vm0, %v857_v27, 0.0  ;;  %v859_v34 = vld [vmem:[#allocation2 + $0x178] sm:$0xff]  ;;  %v858_v35 = vld [vmem:[#allocation2 + $0x170] sm:$0xff] }
  0x95   : > { %v4514_v30 = vld [vmem:[%s5193_s15 + $0x1] ss:$2 sm:$0x3]  ;;  %v1008_v32 = vsel %vm487_vm0, %v856_v28, 0.0  ;;  %v1017_v36 = vsel %vm487_vm0, %v859_v34, 0.0  ;;  %v1014_v37 = vsel %vm487_vm0, %v858_v35, 0.0 }
  0x96   : > { %940 = vadd.xlane.f32.xlu1 %v939_v22  ;;  %937 = vadd.xlane.f32.xlu0 %v936_v23  ;;  %v855_v22 = vld [vmem:[#allocation2 + $0x158] sm:$0xff]  ;;  %v854_v23 = vld [vmem:[#allocation2 + $0x150] sm:$0xff]  ;;  %v5201_v33 = vrot.slane %v4514_v30, %v1138_v29  ;;  %v865_v46 = vld [vmem:[#allocation2 + $0x1a8] sm:$0xff] }
  0x97   : > { %v1005_v25 = vsel %vm487_vm0, %v855_v22, 0.0  ;;  %v1002_v26 = vsel %vm487_vm0, %v854_v23, 0.0  ;;  %v863_v42 = vld [vmem:[#allocation2 + $0x198] sm:$0xff]  ;;  %v862_v43 = vld [vmem:[#allocation2 + $0x190] sm:$0xff]  ;;  %v864_v47 = vld [vmem:[#allocation2 + $0x1a0] sm:$0xff]  ;;  %v1035_v48 = vsel %vm487_vm0, %v865_v46, 0.0 }
  0x98   : > { %v1029_v44 = vsel %vm487_vm0, %v863_v42, 0.0  ;;  %v1026_v45 = vsel %vm487_vm0, %v862_v43, 0.0  ;;  %v1032_v49 = vsel %vm487_vm0, %v864_v47, 0.0  ;;  %v867_v50 = vld [vmem:[#allocation2 + $0x1b8] sm:$0xff]  ;;  %v869_v54 = vld [vmem:[#allocation2 + $0x1c8] sm:$0xff]  ;;  %v874_v5 = vld [vmem:[#allocation2 + $0x1f0] sm:$0xff] }
  0x99   : > { %v871_v58 = vld [vmem:[#allocation2 + $0x1d8] sm:$0xff]  ;;  %v873_v62 = vld [vmem:[#allocation2 + $0x1e8] sm:$0xff] }
  0x9a   : > { %946 = vadd.xlane.f32.xlu1 %v945_v38  ;;  %943 = vadd.xlane.f32.xlu0 %v942_v39  ;;  %v861_v38 = vld [vmem:[#allocation2 + $0x188] sm:$0xff]  ;;  %v860_v39 = vld [vmem:[#allocation2 + $0x180] sm:$0xff]  ;;  %v1059_v1 = vsel %vm487_vm0, %v873_v62, 0.0 }
  0x9b   : > { %v1023_v40 = vsel %vm487_vm0, %v861_v38, 0.0  ;;  %v1020_v41 = vsel %vm487_vm0, %v860_v39, 0.0 }
  0x9e   : > { %952 = vadd.xlane.f32.xlu1 %v951_v51  ;;  %949 = vadd.xlane.f32.xlu0 %v948_v52  ;;  %v866_v51 = vld [vmem:[#allocation2 + $0x1b0] sm:$0xff]  ;;  %v1041_v52 = vsel %vm487_vm0, %v867_v50, 0.0 }
  0x9f   : > { %v1038_v53 = vsel %vm487_vm0, %v866_v51, 0.0 }
  0xa2   : > { %958 = vadd.xlane.f32.xlu1 %v957_v55  ;;  %955 = vadd.xlane.f32.xlu0 %v954_v56  ;;  %v868_v55 = vld [vmem:[#allocation2 + $0x1c0] sm:$0xff]  ;;  %v1047_v56 = vsel %vm487_vm0, %v869_v54, 0.0 }
  0xa3   : > { %v1044_v57 = vsel %vm487_vm0, %v868_v55, 0.0 }
  0xa6   : > { %964 = vadd.xlane.f32.xlu1 %v963_v59  ;;  %961 = vadd.xlane.f32.xlu0 %v960_v60  ;;  %v870_v59 = vld [vmem:[#allocation2 + $0x1d0] sm:$0xff]  ;;  %v1053_v60 = vsel %vm487_vm0, %v871_v58, 0.0 }
  0xa7   : > { %v1050_v61 = vsel %vm487_vm0, %v870_v59, 0.0 }
  0xaa   : > { %970 = vadd.xlane.f32.xlu1 %v969_v63  ;;  %967 = vadd.xlane.f32.xlu0 %v966_v0  ;;  %v872_v63 = vld [vmem:[#allocation2 + $0x1e0] sm:$0xff]  ;;  %v1142_v0 = vsub.s32 1, %v5186_v24 }
  0xab   : > { %v1056_v2 = vsel %vm487_vm0, %v872_v63, 0.0 }
  0xae   : > { %976 = vadd.xlane.f32.xlu1 %v975_v3  ;;  %973 = vadd.xlane.f32.xlu0 %v972_v4  ;;  %v5220_v3 = vrot.slane %v4514_v30, %v1142_v0  ;;  %v875_v4 = vld [vmem:[#allocation2 + $0x1f8] sm:$0xff] }
  0xaf   : > { %v1065_v6 = vsel %vm487_vm0, %v875_v4, 0.0 }
  0xb2   : > { %982 = vadd.xlane.f32.xlu1 %v981_v7  ;;  %979 = vadd.xlane.f32.xlu0 %v978_v8  ;;  %v1062_v7 = vsel %vm487_vm0, %v874_v5, 0.0  ;;  %v1068_v8 = vld [vmem:[%s5193_s15] ss:$2 sm:$0x3]  ;;  %vm4377_vm0 = vcmask 1041409  }
  0xb3   : > { %v1139_v9 = vrot.slane %v1068_v8, %v1138_v29  ;;  %v1143_v28 = vrot.slane %v1068_v8, %v1142_v0 }
  0xb6   : > { %988 = vadd.xlane.f32.xlu1 %v987_v11  ;;  %985 = vadd.xlane.f32.xlu0 %v984_v12 }
  0xba   : > { %994 = vadd.xlane.f32.xlu1 %v993_v15  ;;  %991 = vadd.xlane.f32.xlu0 %v990_v16 }
  0xbe   : > { %1000 = vadd.xlane.f32.xlu1 %v999_v20  ;;  %997 = vadd.xlane.f32.xlu0 %v996_v21 }
  0xc2   : > { %1006 = vadd.xlane.f32.xlu1 %v1005_v25  ;;  %1003 = vadd.xlane.f32.xlu0 %v1002_v26 }
  0xc6   : > { %1012 = vadd.xlane.f32.xlu1 %v1011_v31  ;;  %1009 = vadd.xlane.f32.xlu0 %v1008_v32 }
  0xca   : > { %1018 = vadd.xlane.f32.xlu1 %v1017_v36  ;;  %1015 = vadd.xlane.f32.xlu0 %v1014_v37 }
  0xce   : > { %1024 = vadd.xlane.f32.xlu1 %v1023_v40  ;;  %1021 = vadd.xlane.f32.xlu0 %v1020_v41 }
  0xd2   : > { %1030 = vadd.xlane.f32.xlu1 %v1029_v44  ;;  %1027 = vadd.xlane.f32.xlu0 %v1026_v45 }
  0xd6   : > { %1036 = vadd.xlane.f32.xlu1 %v1035_v48  ;;  %1033 = vadd.xlane.f32.xlu0 %v1032_v49 }
  0xda   : > { %1042 = vadd.xlane.f32.xlu1 %v1041_v52  ;;  %1039 = vadd.xlane.f32.xlu0 %v1038_v53 }
  0xde   : > { %1048 = vadd.xlane.f32.xlu1 %v1047_v56  ;;  %1045 = vadd.xlane.f32.xlu0 %v1044_v57  ;;  %v4664_v56 = vmov 0  }
  0xdf   : > { %4581 = vset.pattern.permute.xlu0 %v4664_v56  ;;  %4582 = vset.pattern.permute.xlu1 %v4664_v56 }
  0xe2   : > { %1054 = vadd.xlane.f32.xlu1 %v1053_v60  ;;  %1051 = vadd.xlane.f32.xlu0 %v1050_v61 }
  0xe6   : > { %1060 = vadd.xlane.f32.xlu1 %v1059_v1  ;;  %1057 = vadd.xlane.f32.xlu0 %v1056_v2 }
  0xea   : > { %1066 = vadd.xlane.f32.xlu1 %v1065_v6  ;;  %1063 = vadd.xlane.f32.xlu0 %v1062_v7 }
  0xfb   : > { %v5227_v10 = vpop.xlane.xlu1 %883  ;;  %v5229_v11 = vpop.xlane.xlu0 %877  ;;  %1149 = vbcast.lane.b32.xlu1 %v1139_v9, 264 }
  0xff   : > { %v5231_v12 = vpop.xlane.xlu1 %886  ;;  %v5233_v13 = vpop.xlane.xlu0 %880  ;;  %1153 = vbcast.lane.b32.xlu1 %v1139_v9, 272 }
 0x100   : > { %1145 = vbcast.lane.b32.xlu0 %v1139_v9, 256 }
 0x103   : > { %v5235_v14 = vpop.xlane.xlu1 %892  ;;  %v5237_v15 = vpop.xlane.xlu0 %889  ;;  %1157 = vbcast.lane.b32.xlu1 %v1139_v9, 280 }
 0x104   : > { %1161 = vbcast.lane.b32.xlu0 %v1139_v9, 288 }
 0x107   : > { %v5239_v16 = vpop.xlane.xlu1 %898  ;;  %v5241_v17 = vpop.xlane.xlu0 %895  ;;  %1165 = vbcast.lane.b32.xlu1 %v1139_v9, 296 }
 0x108   : > { %1169 = vbcast.lane.b32.xlu0 %v1139_v9, 304 }
 0x10b   : > { %v5243_v18 = vpop.xlane.xlu1 %904  ;;  %v5245_v20 = vpop.xlane.xlu0 %901  ;;  %1173 = vbcast.lane.b32.xlu1 %v1139_v9, 312 }
 0x10c   : > { %1177 = vbcast.lane.b32.xlu0 %v1139_v9, 320 }
 0x10f   : > { %v5247_v21 = vpop.xlane.xlu1 %910  ;;  %v5249_v22 = vpop.xlane.xlu0 %907  ;;  %1181 = vbcast.lane.b32.xlu1 %v1139_v9, 328 }
 0x110   : > { %1185 = vbcast.lane.b32.xlu0 %v1139_v9, 336 }
 0x113   : > { %v5251_v23 = vpop.xlane.xlu1 %916  ;;  %v5253_v25 = vpop.xlane.xlu0 %913  ;;  %1189 = vbcast.lane.b32.xlu1 %v1139_v9, 344 }
 0x114   : > { %1193 = vbcast.lane.b32.xlu0 %v1139_v9, 352 }
 0x117   : > { %v5255_v26 = vpop.xlane.xlu1 %922  ;;  %v5257_v27 = vpop.xlane.xlu0 %919  ;;  %1197 = vbcast.lane.b32.xlu1 %v1139_v9, 360 }
 0x118   : > { %1201 = vbcast.lane.b32.xlu0 %v1139_v9, 368 }
 0x11b   : > { %v5259_v29 = vpop.xlane.xlu1 %928  ;;  %v5261_v30 = vpop.xlane.xlu0 %925  ;;  %1205 = vbcast.lane.b32.xlu1 %v1139_v9, 376 }
 0x11c   : > { %1208 = vbcast.lane.b32.xlu0 %v1143_v28, 256 }
 0x11f   : > { %v5263_v31 = vpop.xlane.xlu1 %934  ;;  %v5265_v32 = vpop.xlane.xlu0 %931  ;;  %1212 = vbcast.lane.b32.xlu1 %v1143_v28, 264 }
 0x120   : > { %1216 = vbcast.lane.b32.xlu0 %v1143_v28, 272 }
 0x123   : > { %v5267_v34 = vpop.xlane.xlu1 %940  ;;  %v5269_v35 = vpop.xlane.xlu0 %937  ;;  %1220 = vbcast.lane.b32.xlu1 %v1143_v28, 280 }
 0x124   : > { %1224 = vbcast.lane.b32.xlu0 %v1143_v28, 288 }
 0x127   : > { %v5271_v36 = vpop.xlane.xlu1 %946  ;;  %v5273_v37 = vpop.xlane.xlu0 %943  ;;  %1228 = vbcast.lane.b32.xlu1 %v1143_v28, 296 }
 0x128   : > { %1232 = vbcast.lane.b32.xlu0 %v1143_v28, 304 }
 0x12b   : > { %v5275_v38 = vpop.xlane.xlu1 %952  ;;  %v5277_v39 = vpop.xlane.xlu0 %949  ;;  %1236 = vbcast.lane.b32.xlu1 %v1143_v28, 312 }
 0x12c   : > { %1240 = vbcast.lane.b32.xlu0 %v1143_v28, 320 }
 0x12f   : > { %v5279_v40 = vpop.xlane.xlu1 %958  ;;  %v5281_v41 = vpop.xlane.xlu0 %955  ;;  %1244 = vbcast.lane.b32.xlu1 %v1143_v28, 328 }
 0x130   : > { %1248 = vbcast.lane.b32.xlu0 %v1143_v28, 336 }
 0x133   : > { %v5283_v42 = vpop.xlane.xlu1 %964  ;;  %v5285_v43 = vpop.xlane.xlu0 %961  ;;  %1252 = vbcast.lane.b32.xlu1 %v1143_v28, 344 }
 0x134   : > { %1256 = vbcast.lane.b32.xlu0 %v1143_v28, 352 }
 0x137   : > { %v5287_v44 = vpop.xlane.xlu1 %970  ;;  %v5289_v45 = vpop.xlane.xlu0 %967  ;;  %1260 = vbcast.lane.b32.xlu1 %v1143_v28, 360 }
 0x138   : > { %1264 = vbcast.lane.b32.xlu0 %v1143_v28, 368 }
 0x13b   : > { %v5291_v46 = vpop.xlane.xlu1 %976  ;;  %v5293_v47 = vpop.xlane.xlu0 %973  ;;  %1268 = vbcast.lane.b32.xlu1 %v1143_v28, 376 }
 0x13c   : > { %1376 = vbcast.lane.b32.xlu0 %v5201_v33, 256 }
 0x13f   : > { %v5296_v48 = vpop.xlane.xlu1 %982  ;;  %v5298_v49 = vpop.xlane.xlu0 %979  ;;  %1380 = vbcast.lane.b32.xlu1 %v5201_v33, 264 }
 0x140   : > { %1384 = vbcast.lane.b32.xlu0 %v5201_v33, 272 }
 0x143   : > { %v5302_v50 = vpop.xlane.xlu1 %988  ;;  %v5304_v51 = vpop.xlane.xlu0 %985  ;;  %1388 = vbcast.lane.b32.xlu1 %v5201_v33, 280 }
 0x144   : > { %1392 = vbcast.lane.b32.xlu0 %v5201_v33, 288 }
 0x147   : > { %v5308_v52 = vpop.xlane.xlu1 %994  ;;  %v5310_v53 = vpop.xlane.xlu0 %991  ;;  %1396 = vbcast.lane.b32.xlu1 %v5201_v33, 296 }
 0x148   : > { %1400 = vbcast.lane.b32.xlu0 %v5201_v33, 304 }
 0x14b   : > { %v5314_v54 = vpop.xlane.xlu1 %1000  ;;  %v5316_v55 = vpop.xlane.xlu0 %997  ;;  %1404 = vbcast.lane.b32.xlu1 %v5201_v33, 312 }
 0x14c   : > { %1408 = vbcast.lane.b32.xlu0 %v5201_v33, 320 }
 0x14f   : > { %v5320_v57 = vpop.xlane.xlu1 %1006  ;;  %v5322_v58 = vpop.xlane.xlu0 %1003  ;;  %1412 = vbcast.lane.b32.xlu1 %v5201_v33, 328 }
 0x150   : > { %1416 = vbcast.lane.b32.xlu0 %v5201_v33, 336 }
 0x153   : > { %v5326_v59 = vpop.xlane.xlu1 %1012  ;;  %v5328_v60 = vpop.xlane.xlu0 %1009  ;;  %1420 = vbcast.lane.b32.xlu1 %v5201_v33, 344 }
 0x154   : > { %1424 = vbcast.lane.b32.xlu0 %v5201_v33, 352 }
 0x157   : > { %v5332_v61 = vpop.xlane.xlu1 %1018  ;;  %v5334_v62 = vpop.xlane.xlu0 %1015  ;;  %1428 = vbcast.lane.b32.xlu1 %v5201_v33, 360 }
 0x158   : > { %1432 = vbcast.lane.b32.xlu0 %v5201_v33, 368 }
 0x15b   : > { %v5338_v63 = vpop.xlane.xlu1 %1024  ;;  %v5340_v0 = vpop.xlane.xlu0 %1021  ;;  %1436 = vbcast.lane.b32.xlu1 %v5201_v33, 376 }
 0x15c   : > { %1439 = vbcast.lane.b32.xlu0 %v5220_v3, 256 }
 0x15f   : > { %v5344_v1 = vpop.xlane.xlu1 %1030  ;;  %v5346_v2 = vpop.xlane.xlu0 %1027  ;;  %1443 = vbcast.lane.b32.xlu1 %v5220_v3, 264 }
 0x160   : > { %6818 = vst [vmem:[#allocation8_spill] sm:$0xff] %v5346_v2  ;;  %1447 = vbcast.lane.b32.xlu0 %v5220_v3, 272 }
 0x163   : > { %v5350_v4 = vpop.xlane.xlu1 %1036  ;;  %v5352_v5 = vpop.xlane.xlu0 %1033  ;;  %1451 = vbcast.lane.b32.xlu1 %v5220_v3, 280 }
 0x164   : > { %6819 = vst [vmem:[#allocation9_spill] sm:$0xff] %v5350_v4  ;;  %6820 = vst [vmem:[#allocation10_spill] sm:$0xff] %v5352_v5  ;;  %1455 = vbcast.lane.b32.xlu0 %v5220_v3, 288 }
 0x167   : > { %v5356_v6 = vpop.xlane.xlu1 %1042  ;;  %v5358_v33 = vpop.xlane.xlu0 %1039  ;;  %1459 = vbcast.lane.b32.xlu1 %v5220_v3, 296 }
 0x168   : > { %6821 = vst [vmem:[#allocation11_spill] sm:$0xff] %v5356_v6  ;;  %6822 = vst [vmem:[#allocation12_spill] sm:$0xff] %v5358_v33  ;;  %1463 = vbcast.lane.b32.xlu0 %v5220_v3, 304 }
 0x16b   : > { %v5362_v7 = vpop.xlane.xlu1 %1048  ;;  %v5364_v8 = vpop.xlane.xlu0 %1045  ;;  %1467 = vbcast.lane.b32.xlu1 %v5220_v3, 312 }
 0x16c   : > { %6823 = vst [vmem:[#allocation13_spill] sm:$0xff] %v5362_v7  ;;  %6824 = vst [vmem:[#allocation14_spill] sm:$0xff] %v5364_v8  ;;  %1471 = vbcast.lane.b32.xlu0 %v5220_v3, 320 }
 0x16f   : > { %v5368_v9 = vpop.xlane.xlu1 %1054  ;;  %v5370_v28 = vpop.xlane.xlu0 %1051  ;;  %1475 = vbcast.lane.b32.xlu1 %v5220_v3, 328 }
 0x170   : > { %6825 = vst [vmem:[#allocation15_spill] sm:$0xff] %v5368_v9  ;;  %6826 = vst [vmem:[#allocation16_spill] sm:$0xff] %v5370_v28  ;;  %1479 = vbcast.lane.b32.xlu0 %v5220_v3, 336 }
 0x173   : > { %v5374_v56 = vpop.xlane.xlu1 %1060  ;;  %v5376_v19 = vpop.xlane.xlu0 %1057  ;;  %1483 = vbcast.lane.b32.xlu1 %v5220_v3, 344 }
 0x174   : > { %6827 = vst [vmem:[#allocation17_spill] sm:$0xff] %v5374_v56  ;;  %6828 = vst [vmem:[#allocation18_spill] sm:$0xff] %v5376_v19  ;;  %1487 = vbcast.lane.b32.xlu0 %v5220_v3, 352 }
 0x177   : > { %v5380_v8 = vpop.xlane.xlu1 %1066  ;;  %v5382_v7 = vpop.xlane.xlu0 %1063  ;;  %1491 = vbcast.lane.b32.xlu1 %v5220_v3, 360 }
 0x178   : > { %6829 = vst [vmem:[#allocation19_spill] sm:$0xff] %v5380_v8  ;;  %6830 = vst [vmem:[#allocation20_spill] sm:$0xff] %v5382_v7  ;;  %1495 = vbcast.lane.b32.xlu0 %v5220_v3, 368 }
 0x17b   : > { %v5386_v28 = vpop.permute.xlu1 %1149  ;;  %v5388_v9 = vpop.permute.xlu0 %1145  ;;  %1499 = vbcast.lane.b32.xlu1 %v5220_v3, 376 }
 0x17c   : > { %6831 = vst [vmem:[#allocation21_spill] sm:$0xff] %v5386_v28 }
 0x17f   : > { %v5391_v56 = vpop.permute.xlu1 %1153  ;;  %v5393_v19 = vpop.permute.xlu0 %1161 }
 0x180   : > { %6832 = vst [vmem:[#allocation22_spill] sm:$0xff] %v5391_v56  ;;  %6833 = vst [vmem:[#allocation23_spill] sm:$0xff] %v5393_v19 }
 0x183   : > { %v5395_v33 = vpop.permute.xlu1 %1157  ;;  %v5397_v6 = vpop.permute.xlu0 %1169 }
 0x184   : > { %6834 = vst [vmem:[#allocation24_spill] sm:$0xff] %v5395_v33  ;;  %6835 = vst [vmem:[#allocation25_spill] sm:$0xff] %v5397_v6 }
 0x187   : > { %v5399_v8 = vpop.permute.xlu1 %1165  ;;  %v5401_v7 = vpop.permute.xlu0 %1177 }
 0x188   : > { %6836 = vst [vmem:[#allocation26_spill] sm:$0xff] %v5399_v8  ;;  %6837 = vst [vmem:[#allocation27_spill] sm:$0xff] %v5401_v7 }
 0x18b   : > { %v5403_v5 = vpop.permute.xlu1 %1173  ;;  %v5405_v4 = vpop.permute.xlu0 %1185 }
 0x18c   : > { %6838 = vst [vmem:[#allocation28_spill] sm:$0xff] %v5403_v5  ;;  %6839 = vst [vmem:[#allocation29_spill] sm:$0xff] %v5405_v4 }
 0x18f   : > { %v5407_v28 = vpop.permute.xlu1 %1181  ;;  %v5409_v2 = vpop.permute.xlu0 %1193 }
 0x190   : > { %6840 = vst [vmem:[#allocation30_spill] sm:$0xff] %v5407_v28  ;;  %6841 = vst [vmem:[#allocation31_spill] sm:$0xff] %v5409_v2 }
 0x193   : > { %v5411_v3 = vpop.permute.xlu1 %1189  ;;  %v5413_v56 = vpop.permute.xlu0 %1201 }
 0x194   : > { %6842 = vst [vmem:[#allocation32_spill] sm:$0xff] %v5411_v3  ;;  %6843 = vst [vmem:[#allocation33_spill] sm:$0xff] %v5413_v56 }
 0x197   : > { %v5415_v19 = vpop.permute.xlu1 %1197  ;;  %v5417_v33 = vpop.permute.xlu0 %1208 }
 0x198   : > { %6844 = vst [vmem:[#allocation34_spill] sm:$0xff] %v5415_v19  ;;  %6845 = vst [vmem:[#allocation35_spill] sm:$0xff] %v5417_v33 }
 0x19b   : > { %v5419_v6 = vpop.permute.xlu1 %1205  ;;  %v5421_v8 = vpop.permute.xlu0 %1216 }
 0x19c   : > { %6846 = vst [vmem:[#allocation36_spill] sm:$0xff] %v5419_v6  ;;  %6847 = vst [vmem:[#allocation37_spill] sm:$0xff] %v5421_v8 }
 0x19f   : > { %v5423_v7 = vpop.permute.xlu1 %1212  ;;  %v5425_v5 = vpop.permute.xlu0 %1224 }
 0x1a0   : > { %6848 = vst [vmem:[#allocation38_spill] sm:$0xff] %v5423_v7 }
 0x1a3   : > { %v5427_v4 = vpop.permute.xlu1 %1220  ;;  %v5429_v28 = vpop.permute.xlu0 %1232 }
 0x1a4   : > { %6849 = vst [vmem:[#allocation39_spill] sm:$0xff] %v5427_v4  ;;  %6850 = vst [vmem:[#allocation40_spill] sm:$0xff] %v5429_v28  ;;  %v5448_v4 = vmul.f32 0.0625, %v5227_v10  ;;  %v1071_v28 = vmul.f32 0.0625, %v5229_v11  ;;  %v5469_v11 = vmul.f32 0.0625, %v5241_v17  ;;  %v5488_v17 = vmul.f32 0.0625, %v5253_v25 }
 0x1a5   : > { %v5506_v25 = vmul.f32 0.0625, %v5263_v31  ;;  %v5527_v31 = vmul.f32 0.0625, %v5277_v39  ;;  %v5548_v39 = vmul.f32 0.0625, %v5289_v45  ;;  %v1112_v45 = vmul.f32 0.0625, %v5314_v54 }
 0x1a6   : > { %v5573_v54 = vmul.f32 0.0625, %v5338_v63 }
 0x1a7   : > { %v5431_v2 = vpop.permute.xlu0 %1240  ;;  %v5433_v3 = vpop.permute.xlu1 %1228  ;;  %6865 = vst [vmem:[#allocation55_spill] sm:$0xff] %v5527_v31  ;;  %6871 = vst [vmem:[#allocation61_spill] sm:$0xff] %v5548_v39 }
 0x1a8   : > { %6851 = vst [vmem:[#allocation41_spill] sm:$0xff] %v5431_v2  ;;  %6852 = vst [vmem:[#allocation42_spill] sm:$0xff] %v5433_v3  ;;  %v5452_v2 = vmul.f32 0.0625, %v5231_v12  ;;  %v4665_v3 = vmov 1983009808   ;;  %v5472_v12 = vmul.f32 0.0625, %v5243_v18 }
 0x1a9   : > { %v5493_v18 = vmul.f32 0.0625, %v5255_v26  ;;  %v5512_v26 = vmul.f32 0.0625, %v5267_v34  ;;  %v5533_v34 = vmul.f32 0.0625, %v5281_v41  ;;  %v1103_v41 = vmul.f32 0.0625, %v5293_v47 }
 0x1aa   : > { %v1114_v47 = vmul.f32 0.0625, %v5320_v57  ;;  %v5577_v57 = vmul.f32 0.0625, %v5344_v1  ;;  %v6883_v1 = vld [vmem:[#allocation21_spill] sm:$0xff] }
 0x1ab   : > { %v5435_v56 = vpop.permute.xlu0 %1248  ;;  %v5437_v19 = vpop.permute.xlu1 %1236  ;;  %6861 = vst [vmem:[#allocation51_spill] sm:$0xff] %v5512_v26  ;;  %6867 = vst [vmem:[#allocation57_spill] sm:$0xff] %v5533_v34 }
 0x1ac   : > { %6853 = vst [vmem:[#allocation43_spill] sm:$0xff] %v5435_v56  ;;  %6854 = vst [vmem:[#allocation44_spill] sm:$0xff] %v5437_v19  ;;  %v1663_v56 = vunpack.c.l.s4 %v4665_v3  ;;  %v5455_v19 = vmul.f32 0.0625, %v5233_v13  ;;  %v5475_v13 = vmul.f32 0.0625, %v5245_v20  ;;  %v5479_v3 = vmul.f32 0.0625, %v5247_v21 }
 0x1ad   : > { %v5496_v20 = vmul.f32 0.0625, %v5257_v27  ;;  %v5515_v27 = vmul.f32 0.0625, %v5269_v35  ;;  %v5536_v35 = vmul.f32 0.0625, %v5283_v42  ;;  %v1106_v42 = vmul.f32 0.0625, %v5296_v48 }
 0x1af   : > { %v5439_v33 = vpop.permute.xlu0 %1256  ;;  %v5441_v6 = vpop.permute.xlu1 %1244  ;;  %6868 = vst [vmem:[#allocation58_spill] sm:$0xff] %v5536_v35 }
 0x1b0   : > { %6855 = vst [vmem:[#allocation45_spill] sm:$0xff] %v5439_v33  ;;  %6856 = vst [vmem:[#allocation46_spill] sm:$0xff] %v5441_v6  ;;  %v5458_v33 = vmul.f32 0.0625, %v5235_v14  ;;  %v1302_v14 = vmul.f32 %v5388_v9, %v1071_v28  ;;  %v1664_v28 = vunpack.c.0.s8 %v1663_v56  ;;  %v5518_v56 = vmul.f32 0.0625, %v5271_v36 }
 0x1b1   : > { %v5539_v36 = vmul.f32 0.0625, %v5285_v43  ;;  %v1105_v43 = vmul.f32 0.0625, %v5298_v49 }
 0x1b2   : > { %6862 = vst [vmem:[#allocation52_spill] sm:$0xff] %v5518_v56  ;;  %v6884_v56 = vld [vmem:[#allocation14_spill] sm:$0xff] }
 0x1b3   : > { %v5443_v8 = vpop.permute.xlu0 %1264  ;;  %v5445_v7 = vpop.permute.xlu1 %1252  ;;  %6869 = vst [vmem:[#allocation59_spill] sm:$0xff] %v5539_v36  ;;  %v5600_v31 = vmul.f32 0.0625, %v6884_v56 }
 0x1b4   : > { %6857 = vst [vmem:[#allocation47_spill] sm:$0xff] %v5443_v8  ;;  %6858 = vst [vmem:[#allocation48_spill] sm:$0xff] %v5445_v7  ;;  %v5461_v8 = vmul.f32 0.0625, %v5237_v15  ;;  %v5464_v7 = vmul.f32 0.0625, %v5239_v16  ;;  %v5482_v15 = vmul.f32 0.0625, %v5249_v22  ;;  %v5485_v16 = vmul.f32 0.0625, %v5251_v23 }
 0x1b5   : > { %v5500_v22 = vmul.f32 0.0625, %v5259_v29  ;;  %v5503_v23 = vmul.f32 0.0625, %v5261_v30  ;;  %v5521_v29 = vmul.f32 0.0625, %v5273_v37  ;;  %v5524_v30 = vmul.f32 0.0625, %v5275_v38 }
 0x1b6   : > { %v5542_v37 = vsub.s32 %v1664_v28, %v5186_v24  ;;  %v1108_v28 = vmul.f32 0.0625, %v5302_v50  ;;  %v1107_v24 = vmul.f32 0.0625, %v5304_v51  ;;  %v1116_v50 = vmul.f32 0.0625, %v5326_v59  ;;  %v6876_v59 = vld [vmem:[#allocation10_spill] sm:$0xff] }
 0x1b7   : > { %v5466_v10 = vpop.permute.xlu0 %1376  ;;  %v5490_v6 = vpop.permute.xlu1 %1260  ;;  %6863 = vst [vmem:[#allocation53_spill] sm:$0xff] %v5521_v29  ;;  %6864 = vst [vmem:[#allocation54_spill] sm:$0xff] %v5524_v30  ;;  %v1115_v51 = vmul.f32 0.0625, %v5328_v60  ;;  %v5584_v60 = vmul.f32 0.0625, %v6876_v59  ;;  %v6885_v59 = vld [vmem:[#allocation15_spill] sm:$0xff] }
 0x1b8   : > { %6859 = vst [vmem:[#allocation49_spill] sm:$0xff] %v5466_v10  ;;  %6860 = vst [vmem:[#allocation50_spill] sm:$0xff] %v5490_v6  ;;  %v1533_v21 = vadd.f32 %v5466_v10, %v1302_v14  ;;  %v5509_v6 = vmul.f32 0.0625, %v5265_v32  ;;  %v5530_v32 = vmul.f32 0.0625, %v5279_v40  ;;  %v5545_v14 = vmul.f32 0.0625, %v5287_v44 }
 0x1b9   : > { %v1104_v40 = vmul.f32 0.0625, %v5291_v46  ;;  %v1110_v44 = vmul.f32 0.0625, %v5308_v52  ;;  %v1111_v46 = vmul.f32 0.0625, %v5316_v55  ;;  %v5569_v52 = vmul.f32 0.0625, %v5332_v61  ;;  %v6877_v61 = vld [vmem:[#allocation11_spill] sm:$0xff] }
 0x1ba   : > { %6866 = vst [vmem:[#allocation56_spill] sm:$0xff] %v5530_v32  ;;  %v1661_v38 = vcombine.high %v1533_v21, %v1533_v21  ;;  %6870 = vst [vmem:[#allocation60_spill] sm:$0xff] %v5545_v14  ;;  %v1109_v14 = vmul.f32 0.0625, %v5310_v53  ;;  %v1668_v48 = vrot.slane %v1533_v21, %v5542_v37  ;;  %v1117_v53 = vmul.f32 0.0625, %v5334_v62  ;;  %v6879_v62 = vld [vmem:[#allocation12_spill] sm:$0xff] }
 0x1bb   : > { %v5552_v32 = vpop.permute.xlu1 %1268  ;;  %v1119_v55 = vmul.f32 0.0625, %v5340_v0  ;;  %v5587_v39 = vmul.f32 0.0625, %v6877_v61  ;;  %v5590_v36 = vmul.f32 0.0625, %v6879_v62  ;;  %v6881_v0 = vld [vmem:[#allocation13_spill] sm:$0xff]  ;;  %v6887_v61 = vld [vmem:[#allocation16_spill] sm:$0xff] }
 0x1bc   : > { %6872 = vst [vmem:[#allocation62_spill] sm:$0xff] %v5552_v32  ;;  %v1113_v32 = vmul.f32 0.0625, %v5322_v58  ;;  %v1675_v49 = vrot.slane %v1661_v38, %v5542_v37  ;;  %v6873_v58 = vld [vmem:[#allocation8_spill] sm:$0xff]  ;;  %v6874_v38 = vld [vmem:[#allocation9_spill] sm:$0xff]  ;;  %v5595_v30 = vmul.f32 0.0625, %v6881_v0  ;;  %v1676_v34 = vcombine.high %v1668_v48, %v1668_v48 }
 0x1bd   : > { %v1121_v21 = vmul.f32 0.0625, %v6873_v58  ;;  %v5581_v35 = vmul.f32 0.0625, %v6874_v38  ;;  %6878 = vst [vmem:[#allocation9_spill] sm:$0xff] %v5587_v39  ;;  %6880 = vst [vmem:[#allocation10_spill] sm:$0xff] %v5590_v36  ;;  %v1303_v58 = vmul.f32 %v6883_v1, %v5455_v19  ;;  %v5606_v39 = vmul.f32 0.0625, %v6887_v61  ;;  %v6888_v62 = vld [vmem:[#allocation17_spill] sm:$0xff] }
 0x1be   : > { %6882 = vst [vmem:[#allocation11_spill] sm:$0xff] %v5595_v30  ;;  %v1677_v38 = vcombine.high %v1675_v49, %v1675_v49  ;;  %v5609_v26 = vmul.f32 0.0625, %v6888_v62  ;;  %v6890_v36 = vld [vmem:[#allocation18_spill] sm:$0xff]  ;;  %v6891_v30 = vld [vmem:[#allocation19_spill] sm:$0xff]  ;;  %v6893_v19 = vld [vmem:[#allocation20_spill] sm:$0xff]  ;;  %v1334_v61 = vmul.f32 %v5388_v9, %v1103_v41 }
 0x1bf   : > { %6875 = vst [vmem:[#allocation8_spill] sm:$0xff] %v5581_v35  ;;  %v5592_v63 = vpop.permute.xlu1 %1380  ;;  %v5603_v35 = vmul.f32 0.0625, %v6885_v59  ;;  %v5612_v0 = vmul.f32 0.0625, %v6890_v36  ;;  %v5615_v10 = vmul.f32 0.0625, %v6891_v30  ;;  %v5618_v29 = vmul.f32 0.0625, %v6893_v19  ;;  %v6895_v36 = vld [vmem:[#allocation23_spill] sm:$0xff] }
 0x1c0   : > { %6889 = vst [vmem:[#allocation13_spill] sm:$0xff] %v5609_v26  ;;  %v1534_v56 = vadd.f32 %v5592_v63, %v1303_v58  ;;  %v5622_v59 = vmul.f32 %v6883_v1, %v1104_v40  ;;  %v5632_v30 = vmul.f32 %v6895_v36, %v5461_v8  ;;  %v5635_v19 = vmul.f32 %v6895_v36, %v1107_v24  ;;  %v6896_v40 = vld [vmem:[#allocation24_spill] sm:$0xff]  ;;  %v6898_v8 = vld [vmem:[#allocation26_spill] sm:$0xff] }
 0x1c1   : > { %6886 = vst [vmem:[#allocation12_spill] sm:$0xff] %v5603_v35  ;;  %6892 = vst [vmem:[#allocation21_spill] sm:$0xff] %v5615_v10  ;;  %v6894_v35 = vld [vmem:[#allocation22_spill] sm:$0xff]  ;;  %v2749_v10 = vcombine.low %v1668_v48, %v1676_v34  ;;  %v2750_v58 = vcombine.low %v1675_v49, %v1677_v38  ;;  %v1305_v1 = vmul.f32 %v6896_v40, %v5452_v2  ;;  %v6899_v34 = vld [vmem:[#allocation27_spill] sm:$0xff] }
 0x1c2   : > { %v1304_v62 = vmul.f32 %v6894_v35, %v5448_v4  ;;  %v5628_v26 = vmul.f32 %v6894_v35, %v1105_v43  ;;  %v5640_v9 = vmul.f32 %v6896_v40, %v1106_v42  ;;  %v6897_v4 = vld [vmem:[#allocation25_spill] sm:$0xff]  ;;  %v5651_v43 = vmul.f32 %v6898_v8, %v5458_v33 }
 0x1c3   : > { %v5644_v41 = vmul.f32 %v6897_v4, %v5469_v11  ;;  %v5647_v35 = vmul.f32 %v6897_v4, %v1109_v14  ;;  %v5654_v24 = vmul.f32 %v6898_v8, %v1108_v28  ;;  %v5658_v2 = vmul.f32 %v6899_v34, %v5475_v13  ;;  %v6900_v11 = vld [vmem:[#allocation28_spill] sm:$0xff]  ;;  %v6901_v33 = vld [vmem:[#allocation29_spill] sm:$0xff]  ;;  %v6902_v13 = vld [vmem:[#allocation30_spill] sm:$0xff] }
 0x1c4   : > { %v1678_v42 = vcombine.high %v1534_v56, %v1534_v56  ;;  %v5661_v48 = vmul.f32 %v6899_v34, %v1111_v46  ;;  %v5665_v49 = vmul.f32 %v6900_v11, %v5464_v7  ;;  %v5668_v14 = vmul.f32 %v6900_v11, %v1110_v44  ;;  %v6903_v44 = vld [vmem:[#allocation31_spill] sm:$0xff] }
 0x1c5   : > { %v5672_v38 = vmul.f32 %v6901_v33, %v5482_v15  ;;  %v5675_v28 = vmul.f32 %v6901_v33, %v1113_v32  ;;  %v5679_v36 = vmul.f32 %v6902_v13, %v5472_v12  ;;  %v2757_v46 = vrot.slane %v2749_v10, %v5542_v37  ;;  %v6904_v32 = vld [vmem:[#allocation32_spill] sm:$0xff]  ;;  %v5697_v12 = vpop.permute.xlu1 %1388 }
 0x1c6   : > { %v2764_v40 = vrot.slane %v2750_v58, %v5542_v37  ;;  %v5684_v7 = vmul.f32 %v6902_v13, %v1112_v45  ;;  %v5688_v4 = vmul.f32 %v6903_v44, %v5488_v17  ;;  %v5691_v15 = vmul.f32 %v6903_v44, %v1115_v51  ;;  %v6905_v58 = vld [vmem:[#allocation33_spill] sm:$0xff]  ;;  %v6906_v51 = vld [vmem:[#allocation34_spill] sm:$0xff] }
 0x1c7   : > { %v5695_v8 = vmul.f32 %v6904_v32, %v5479_v3  ;;  %v5700_v10 = vmul.f32 %v6904_v32, %v1114_v47  ;;  %v5704_v45 = vmul.f32 %v6905_v58, %v5496_v20  ;;  %v1692_v34 = vrot.slane %v1678_v42, %v5542_v37  ;;  %v6907_v47 = vld [vmem:[#allocation35_spill] sm:$0xff]  ;;  %v6908_v42 = vld [vmem:[#allocation36_spill] sm:$0xff]  ;;  %v6913_v44 = vld [vmem:[#allocation38_spill] sm:$0xff]  ;;  %v1385_v32 = vpop.permute.xlu0 %1384 }
 0x1c8   : > { %v2765_v17 = vcombine.low %v2757_v46, %v2764_v40  ;;  %v5708_v11 = vmul.f32 %v6905_v58, %v1117_v53  ;;  %v5712_v33 = vmul.f32 %v6906_v51, %v5485_v16  ;;  %v5715_v3 = vmul.f32 %v6906_v51, %v1116_v50  ;;  %v6910_v50 = vld [vmem:[#allocation37_spill] sm:$0xff] }
 0x1c9   : > { %v5719_v13 = vmul.f32 %v6907_v47, %v5503_v23  ;;  %v5722_v20 = vmul.f32 %v6907_v47, %v1119_v55  ;;  %v5726_v46 = vmul.f32 %v6908_v42, %v5493_v18  ;;  %v1685_v53 = vrot.slane %v1534_v56, %v5542_v37  ;;  %v6922_v47 = vld [vmem:[#allocation49_spill] sm:$0xff] }
 0x1ca   : > { %v1536_v40 = vadd.f32 %v5697_v12, %v1305_v1  ;;  %3838 = vperm.xlu0 %4581, %v2765_v17   ;;  %v5732_v16 = vmul.f32 %v6908_v42, %v5569_v52  ;;  %v5736_v23 = vmul.f32 %v6910_v50, %v5509_v6  ;;  %v5739_v55 = vmul.f32 %v6910_v50, %v1121_v21  ;;  %v6917_v21 = vld [vmem:[#allocation39_spill] sm:$0xff]  ;;  %v6919_v17 = vld [vmem:[#allocation53_spill] sm:$0xff]  ;;  %v6923_v42 = vld [vmem:[#allocation10_spill] sm:$0xff] }
 0x1cb   : > { %v5743_v18 = vmul.f32 %v6913_v44, %v5500_v22  ;;  %v5747_v56 = vmul.f32 %v6913_v44, %v5573_v54  ;;  %v5751_v52 = vmul.f32 %v5425_v5, %v5515_v27  ;;  %v5755_v6 = vmul.f32 %v5425_v5, %v5584_v60  ;;  %v6920_v54 = vld [vmem:[#allocation40_spill] sm:$0xff] }
 0x1cc   : > { %6909 = vst [vmem:[#allocation14_spill] sm:$0xff] %v5732_v16  ;;  %6911 = vst [vmem:[#allocation15_spill] sm:$0xff] %v5736_v23  ;;  %v1694_v1 = vcombine.high %v1692_v34, %v1692_v34  ;;  %v5759_v58 = vmul.f32 %v6917_v21, %v5506_v25  ;;  %v5763_v22 = vmul.f32 %v6917_v21, %v5577_v57  ;;  %v6926_v25 = vld [vmem:[#allocation42_spill] sm:$0xff]  ;;  %v6930_v21 = vld [vmem:[#allocation55_spill] sm:$0xff] }
 0x1cd   : > { %6912 = vst [vmem:[#allocation16_spill] sm:$0xff] %v5739_v55  ;;  %6914 = vst [vmem:[#allocation17_spill] sm:$0xff] %v5747_v56  ;;  %v5767_v51 = vmul.f32 %v6920_v54, %v6919_v17  ;;  %v1565_v27 = vadd.f32 %v6922_v47, %v1334_v61  ;;  %v5772_v50 = vmul.f32 %v6920_v54, %v6923_v42  ;;  %v6931_v17 = vld [vmem:[#allocation41_spill] sm:$0xff]  ;;  %v6934_v54 = vld [vmem:[#allocation52_spill] sm:$0xff] }
 0x1ce   : > { %6915 = vst [vmem:[#allocation18_spill] sm:$0xff] %v5751_v52  ;;  %6916 = vst [vmem:[#allocation19_spill] sm:$0xff] %v5755_v6  ;;  %v1535_v5 = vadd.f32 %v1385_v32, %v1304_v62  ;;  %v1693_v60 = vcombine.high %v1685_v53, %v1685_v53  ;;  %v1712_v44 = vcombine.high %v1536_v40, %v1536_v40  ;;  %v6925_v6 = vld [vmem:[#allocation51_spill] sm:$0xff]  ;;  %v6928_v52 = vld [vmem:[#allocation8_spill] sm:$0xff] }
 0x1cf   : > { %6918 = vst [vmem:[#allocation20_spill] sm:$0xff] %v5763_v22  ;;  %6921 = vst [vmem:[#allocation22_spill] sm:$0xff] %v5767_v51  ;;  %v5776_v56 = vmul.f32 %v6926_v25, %v6925_v6  ;;  %v5780_v57 = vmul.f32 %v6926_v25, %v6928_v52  ;;  %v5784_v22 = vmul.f32 %v6931_v17, %v6930_v21  ;;  %v6935_v62 = vld [vmem:[#allocation44_spill] sm:$0xff]  ;;  %v6937_v42 = vld [vmem:[#allocation9_spill] sm:$0xff] }
 0x1d0   : > { %6924 = vst [vmem:[#allocation23_spill] sm:$0xff] %v5772_v50  ;;  %v5788_v61 = vmul.f32 %v6931_v17, %v5600_v31  ;;  %v5792_v47 = vmul.f32 %v6935_v62, %v6934_v54  ;;  %v5796_v6 = vmul.f32 %v6935_v62, %v6937_v42  ;;  %v6939_v50 = vld [vmem:[#allocation57_spill] sm:$0xff]  ;;  %v6940_v51 = vld [vmem:[#allocation43_spill] sm:$0xff]  ;;  %v2767_v25 = vcombine.low %v1692_v34, %v1694_v1  ;;  %v6944_v31 = vld [vmem:[#allocation46_spill] sm:$0xff]  ;;  %v1393_v62 = vpop.permute.xlu0 %1392  ;;  %v5814_v42 = vpop.permute.xlu1 %1396 }
 0x1d1   : > { %6927 = vst [vmem:[#allocation24_spill] sm:$0xff] %v5776_v56  ;;  %6929 = vst [vmem:[#allocation25_spill] sm:$0xff] %v5780_v57  ;;  %v5800_v52 = vmul.f32 %v6940_v51, %v6939_v50  ;;  %v5804_v21 = vmul.f32 %v6940_v51, %v5606_v39  ;;  %v6943_v57 = vld [vmem:[#allocation54_spill] sm:$0xff]  ;;  %v1567_v50 = vadd.f32 %v1385_v32, %v5628_v26  ;;  %v6948_v39 = vld [vmem:[#allocation59_spill] sm:$0xff] }
 0x1d2   : > { %6932 = vst [vmem:[#allocation26_spill] sm:$0xff] %v5784_v22  ;;  %6933 = vst [vmem:[#allocation27_spill] sm:$0xff] %v5788_v61  ;;  %v5808_v17 = vmul.f32 %v6944_v31, %v6943_v57  ;;  %v6946_v61 = vld [vmem:[#allocation11_spill] sm:$0xff]  ;;  %v2205_v22 = vcombine.high %v1565_v27, %v1565_v27  ;;  %v2766_v34 = vcombine.low %v1685_v53, %v1693_v60  ;;  %v6949_v51 = vld [vmem:[#allocation45_spill] sm:$0xff] }
 0x1d3   : > { %6936 = vst [vmem:[#allocation28_spill] sm:$0xff] %v5792_v47  ;;  %6938 = vst [vmem:[#allocation29_spill] sm:$0xff] %v5796_v6  ;;  %v5812_v54 = vmul.f32 %v6944_v31, %v6946_v61  ;;  %v1695_v6 = vcombine.high %v1535_v5, %v1535_v5  ;;  %v1726_v1 = vrot.slane %v1712_v44, %v5542_v37  ;;  %v6952_v60 = vld [vmem:[#allocation56_spill] sm:$0xff]  ;;  %v6967_v55 = vld [vmem:[#allocation62_spill] sm:$0xff] }
 0x1d4   : > { %6941 = vst [vmem:[#allocation30_spill] sm:$0xff] %v5800_v52  ;;  %6942 = vst [vmem:[#allocation31_spill] sm:$0xff] %v5804_v21  ;;  %v5820_v21 = vmul.f32 %v6949_v51, %v6948_v39  ;;  %v5824_v57 = vmul.f32 %v6949_v51, %v5612_v0  ;;  %v2212_v61 = vrot.slane %v1565_v27, %v5542_v37  ;;  %v6953_v44 = vld [vmem:[#allocation48_spill] sm:$0xff]  ;;  %v6957_v27 = vld [vmem:[#allocation61_spill] sm:$0xff]  ;;  %v1401_v23 = vpop.permute.xlu0 %1400 }
 0x1d5   : > { %6945 = vst [vmem:[#allocation32_spill] sm:$0xff] %v5808_v17  ;;  %6947 = vst [vmem:[#allocation33_spill] sm:$0xff] %v5812_v54  ;;  %v1702_v31 = vrot.slane %v1535_v5, %v5542_v37  ;;  %v1537_v54 = vadd.f32 %v1393_v62, %v5632_v30  ;;  %v1719_v26 = vrot.slane %v1536_v40, %v5542_v37  ;;  %v6958_v51 = vld [vmem:[#allocation47_spill] sm:$0xff]  ;;  %v6966_v16 = vld [vmem:[#allocation60_spill] sm:$0xff] }
 0x1d6   : > { %6950 = vst [vmem:[#allocation34_spill] sm:$0xff] %v5820_v21  ;;  %6951 = vst [vmem:[#allocation35_spill] sm:$0xff] %v5824_v57  ;;  %v1538_v53 = vadd.f32 %v5814_v42, %v5651_v43  ;;  %v2781_v32 = vrot.slane %v2767_v25, %v5542_v37  ;;  %v5835_v39 = vmul.f32 %v6953_v44, %v6952_v60  ;;  %v6955_v21 = vld [vmem:[#allocation12_spill] sm:$0xff] }
 0x1d7   : > { %v5839_v0 = vmul.f32 %v6953_v44, %v6955_v21  ;;  %v5843_v5 = vmul.f32 %v6958_v51, %v6957_v27  ;;  %v2219_v30 = vrot.slane %v2205_v22, %v5542_v37  ;;  %v1709_v40 = vrot.slane %v1695_v6, %v5542_v37  ;;  %v6961_v6 = vld [vmem:[#allocation58_spill] sm:$0xff] }
 0x1d8   : > { %6954 = vst [vmem:[#allocation36_spill] sm:$0xff] %v5835_v39  ;;  %v2239_v57 = vcombine.high %v1567_v50, %v1567_v50  ;;  %v2774_v43 = vrot.slane %v2766_v34, %v5542_v37  ;;  %v1728_v25 = vcombine.high %v1726_v1, %v1726_v1  ;;  %v2220_v52 = vcombine.high %v2212_v61, %v2212_v61  ;;  %v6964_v34 = vld [vmem:[#allocation13_spill] sm:$0xff] }
 0x1d9   : > { %6956 = vst [vmem:[#allocation37_spill] sm:$0xff] %v5839_v0  ;;  %6959 = vst [vmem:[#allocation38_spill] sm:$0xff] %v5843_v5  ;;  %v1710_v17 = vcombine.high %v1702_v31, %v1702_v31  ;;  %v2246_v60 = vrot.slane %v1567_v50, %v5542_v37  ;;  %v1566_v21 = vadd.f32 %v5592_v63, %v5622_v59  ;;  %v6962_v5 = vld [vmem:[#allocation50_spill] sm:$0xff] }
 0x1da   : > { %v1729_v44 = vcombine.high %v1537_v54, %v1537_v54  ;;  %v1727_v0 = vcombine.high %v1719_v26, %v1719_v26  ;;  %v1746_v39 = vcombine.high %v1538_v53, %v1538_v53  ;;  %v2782_v27 = vcombine.low %v2774_v43, %v2781_v32 }
 0x1db   : > { %v5853_v22 = vmul.f32 %v6958_v51, %v5618_v29  ;;  %v5857_v47 = vmul.f32 %v6962_v5, %v6961_v6  ;;  %v5861_v56 = vmul.f32 %v6962_v5, %v6964_v34  ;;  %v2221_v50 = vcombine.high %v2219_v30, %v2219_v30  ;;  %v6969_v51 = vld [vmem:[#allocation21_spill] sm:$0xff] }
 0x1dc   : > { %v5865_v63 = vmul.f32 %v6967_v55, %v6966_v16  ;;  %v1711_v59 = vcombine.high %v1709_v40, %v1709_v40  ;;  %v2253_v32 = vrot.slane %v2239_v57, %v5542_v37  ;;  %v2801_v43 = vcombine.low %v1726_v1, %v1728_v25  ;;  %3841 = vperm.xlu1 %4582, %v2782_v27  }
 0x1dd   : > { %6960 = vst [vmem:[#allocation39_spill] sm:$0xff] %v5853_v22  ;;  %6963 = vst [vmem:[#allocation53_spill] sm:$0xff] %v5857_v47  ;;  %v5868_v29 = vcombine.low %v2212_v61, %v2220_v52  ;;  %v5872_v6 = vmul.f32 %v6967_v55, %v6969_v51  ;;  %v2254_v22 = vcombine.high %v2246_v60, %v2246_v60 }
 0x1de   : > { %6965 = vst [vmem:[#allocation40_spill] sm:$0xff] %v5861_v56  ;;  %6968 = vst [vmem:[#allocation49_spill] sm:$0xff] %v5865_v63  ;;  %v2783_v47 = vcombine.low %v1702_v31, %v1710_v17  ;;  %v2222_v5 = vcombine.high %v1566_v21, %v1566_v21  ;;  %v1743_v34 = vrot.slane %v1729_v44, %v5542_v37  ;;  %v5876_v63 = vpop.permute.xlu1 %1404 }
 0x1df   : > { %v2800_v56 = vcombine.low %v1719_v26, %v1727_v0  ;;  %v1760_v16 = vrot.slane %v1746_v39, %v5542_v37  ;;  %v5878_v57 = vcombine.low %v2219_v30, %v2221_v50  ;;  %v2229_v52 = vrot.slane %v1566_v21, %v5542_v37 }
 0x1e0   : > { %v1569_v1 = vadd.f32 %v1393_v62, %v5635_v19  ;;  %v1736_v55 = vrot.slane %v1537_v54, %v5542_v37  ;;  %v2255_v61 = vcombine.high %v2253_v32, %v2253_v32  ;;  %v2784_v25 = vcombine.low %v1709_v40, %v1711_v59 }
 0x1e1   : > { %6970 = vst [vmem:[#allocation10_spill] sm:$0xff] %v5878_v57  ;;  %v1753_v17 = vrot.slane %v1538_v53, %v5542_v37  ;;  %v2815_v31 = vrot.slane %v2801_v43, %v5542_v37  ;;  %v2791_v26 = vrot.slane %v2783_v47, %v5542_v37  ;;  %v5886_v0 = vcombine.low %v2246_v60, %v2254_v22 }
 0x1e2   : > { %v1539_v39 = vadd.f32 %v1401_v23, %v5644_v41  ;;  %v1540_v30 = vadd.f32 %v5876_v63, %v5665_v49  ;;  %v2236_v21 = vrot.slane %v2222_v5, %v5542_v37  ;;  %v1745_v19 = vcombine.high %v1743_v34, %v1743_v34  ;;  %v5901_v57 = vpop.permute.xlu1 %1412 }
 0x1e3   : > { %v2808_v54 = vrot.slane %v2800_v56, %v5542_v37  ;;  %v1762_v62 = vcombine.high %v1760_v16, %v1760_v16  ;;  %v2237_v40 = vcombine.high %v2229_v52, %v2229_v52  ;;  %v1744_v44 = vcombine.high %v1736_v55, %v1736_v55 }
 0x1e4   : > { %v2273_v53 = vcombine.high %v1569_v1, %v1569_v1  ;;  %v2280_v27 = vrot.slane %v1569_v1, %v5542_v37  ;;  %v1568_v47 = vadd.f32 %v5697_v12, %v5640_v9  ;;  %v1761_v60 = vcombine.high %v1753_v17, %v1753_v17 }
 0x1e5   : > { %v2816_v22 = vcombine.low %v2808_v54, %v2815_v31  ;;  %v2798_v41 = vrot.slane %v2784_v25, %v5542_v37  ;;  %v5899_v50 = vcombine.low %v2253_v32, %v2255_v61  ;;  %v1763_v59 = vcombine.high %v1539_v39, %v1539_v39 }
 0x1e6   : > { %v1780_v56 = vcombine.high %v1540_v30, %v1540_v30  ;;  %v2238_v43 = vcombine.high %v2236_v21, %v2236_v21  ;;  %v2818_v51 = vcombine.low %v1743_v34, %v1745_v19  ;;  %v2835_v5 = vcombine.low %v1760_v16, %v1762_v62 }
 0x1e7   : > { %3847 = vperm.xlu0 %4581, %v2816_v22   ;;  %v2799_v1 = vcombine.low %v2791_v26, %v2798_v41  ;;  %v2287_v12 = vrot.slane %v2273_v53, %v5542_v37  ;;  %v2288_v25 = vcombine.high %v2280_v27, %v2280_v27  ;;  %v1571_v31 = vadd.f32 %v1401_v23, %v5647_v35 }
 0x1e8   : > { %v5907_v54 = vcombine.low %v2229_v52, %v2237_v40  ;;  %v2817_v32 = vcombine.low %v1736_v55, %v1744_v44  ;;  %v2256_v61 = vcombine.high %v1568_v47, %v1568_v47  ;;  %v2834_v49 = vcombine.low %v1753_v17, %v1761_v60  ;;  %v1409_v40 = vpop.permute.xlu0 %1408 }
 0x1e9   : > { %3844 = vperm.xlu1 %4582, %v2799_v1   ;;  %v2263_v34 = vrot.slane %v1568_v47, %v5542_v37  ;;  %v1777_v16 = vrot.slane %v1763_v59, %v5542_v37  ;;  %v1794_v26 = vrot.slane %v1780_v56, %v5542_v37  ;;  %v1542_v19 = vadd.f32 %v5901_v57, %v5679_v36 }
 0x1ea   : > { %v5914_v62 = vcombine.low %v2236_v21, %v2238_v43  ;;  %v1770_v53 = vrot.slane %v1539_v39, %v5542_v37  ;;  %v2849_v35 = vrot.slane %v2835_v5, %v5542_v37  ;;  %v2832_v23 = vrot.slane %v2818_v51, %v5542_v37 }
 0x1eb   : > { %v2289_v52 = vcombine.high %v2287_v12, %v2287_v12  ;;  %v5919_v55 = vcombine.low %v2280_v27, %v2288_v25  ;;  %v2307_v17 = vcombine.high %v1571_v31, %v1571_v31  ;;  %v1787_v44 = vrot.slane %v1540_v30, %v5542_v37 }
 0x1ec   : > { %v2825_v47 = vrot.slane %v2817_v32, %v5542_v37  ;;  %v2270_v60 = vrot.slane %v2256_v61, %v5542_v37  ;;  %v2314_v36 = vrot.slane %v1571_v31, %v5542_v37  ;;  %v2842_v21 = vrot.slane %v2834_v49, %v5542_v37 }
 0x1ed   : > { %v2271_v39 = vcombine.high %v2263_v34, %v2263_v34  ;;  %v1779_v22 = vcombine.high %v1777_v16, %v1777_v16  ;;  %v1796_v41 = vcombine.high %v1794_v26, %v1794_v26  ;;  %v1814_v59 = vcombine.high %v1542_v19, %v1542_v19 }
 0x1ee   : > { %v1778_v56 = vcombine.high %v1770_v53, %v1770_v53  ;;  %v1541_v27 = vadd.f32 %v1409_v40, %v5658_v2  ;;  %v2850_v43 = vcombine.low %v2842_v21, %v2849_v35  ;;  %v2833_v51 = vcombine.low %v2825_v47, %v2832_v23  ;;  %v1417_v23 = vpop.permute.xlu0 %1416 }
 0x1ef   : > { %v2321_v5 = vrot.slane %v2307_v17, %v5542_v37  ;;  %v1570_v1 = vadd.f32 %v5814_v42, %v5654_v24  ;;  %v1795_v25 = vcombine.high %v1787_v44, %v1787_v44  ;;  %v5932_v31 = vcombine.low %v2287_v12, %v2289_v52  ;;  %v5940_v12 = vpop.permute.xlu1 %1420 }
 0x1f0   : > { %v2322_v32 = vcombine.high %v2314_v36, %v2314_v36  ;;  %3853 = vperm.xlu0 %4581, %v2850_v43   ;;  %3850 = vperm.xlu1 %4582, %v2833_v51   ;;  %v2272_v2 = vcombine.high %v2270_v60, %v2270_v60  ;;  %v2852_v61 = vcombine.low %v1777_v16, %v1779_v22 }
 0x1f1   : > { %v2869_v35 = vcombine.low %v1794_v26, %v1796_v41  ;;  %v1828_v47 = vrot.slane %v1814_v59, %v5542_v37  ;;  %v5937_v21 = vcombine.low %v2263_v34, %v2271_v39  ;;  %v2851_v17 = vcombine.low %v1770_v53, %v1778_v56 }
 0x1f2   : > { %v1573_v24 = vadd.f32 %v1409_v40, %v5661_v48  ;;  %v1797_v42 = vcombine.high %v1541_v27, %v1541_v27  ;;  %v2323_v52 = vcombine.high %v2321_v5, %v2321_v5  ;;  %v2290_v9 = vcombine.high %v1570_v1, %v1570_v1 }
 0x1f3   : > { %v2868_v49 = vcombine.low %v1787_v44, %v1795_v25  ;;  %v1821_v43 = vrot.slane %v1542_v19, %v5542_v37  ;;  %v5943_v51 = vcombine.low %v2314_v36, %v2322_v32  ;;  %v2297_v16 = vrot.slane %v1570_v1, %v5542_v37 }
 0x1f4   : > { %v1804_v26 = vrot.slane %v1541_v27, %v5542_v37  ;;  %v1543_v34 = vadd.f32 %v1417_v23, %v5672_v38  ;;  %v1830_v39 = vcombine.high %v1828_v47, %v1828_v47  ;;  %v1544_v48 = vadd.f32 %v5940_v12, %v5695_v8 }
 0x1f5   : > { %6971 = vst [vmem:[#allocation51_spill] sm:$0xff] %v5943_v51  ;;  %v2883_v53 = vrot.slane %v2869_v35, %v5542_v37  ;;  %v2866_v40 = vrot.slane %v2852_v61, %v5542_v37  ;;  %v5952_v22 = vcombine.low %v2270_v60, %v2272_v2  ;;  %v2859_v19 = vrot.slane %v2851_v17, %v5542_v37 }
 0x1f6   : > { %v1811_v44 = vrot.slane %v1797_v42, %v5542_v37  ;;  %v2341_v36 = vcombine.high %v1573_v24, %v1573_v24  ;;  %v2304_v41 = vrot.slane %v2290_v9, %v5542_v37  ;;  %v1572_v38 = vadd.f32 %v5876_v63, %v5668_v14 }
 0x1f7   : > { %v2876_v59 = vrot.slane %v2868_v49, %v5542_v37  ;;  %v1829_v56 = vcombine.high %v1821_v43, %v1821_v43  ;;  %v2305_v8 = vcombine.high %v2297_v16, %v2297_v16  ;;  %v1812_v27 = vcombine.high %v1804_v26, %v1804_v26 }
 0x1f8   : > { %v2348_v1 = vrot.slane %v1573_v24, %v5542_v37  ;;  %v1831_v25 = vcombine.high %v1543_v34, %v1543_v34  ;;  %v2903_v60 = vcombine.low %v1828_v47, %v1830_v39  ;;  %v1848_v32 = vcombine.high %v1544_v48, %v1544_v48 }
 0x1f9   : > { %v2884_v2 = vcombine.low %v2876_v59, %v2883_v53  ;;  %v2867_v61 = vcombine.low %v2859_v19, %v2866_v40  ;;  %v5963_v17 = vcombine.low %v2321_v5, %v2323_v52  ;;  %v1813_v9 = vcombine.high %v1811_v44, %v1811_v44  ;;  %v1425_v40 = vpop.permute.xlu0 %1424  ;;  %v5970_v19 = vpop.permute.xlu1 %1428 }
 0x1fa   : > { %v2355_v14 = vrot.slane %v2341_v36, %v5542_v37  ;;  %v2306_v49 = vcombine.high %v2304_v41, %v2304_v41  ;;  %v2902_v42 = vcombine.low %v1821_v43, %v1829_v56  ;;  %v5968_v24 = vcombine.low %v2297_v16, %v2305_v8 }
 0x1fb   : > { %3859 = vperm.xlu0 %4581, %v2884_v2   ;;  %3856 = vperm.xlu1 %4582, %v2867_v61   ;;  %v2356_v47 = vcombine.high %v2348_v1, %v2348_v1  ;;  %v2885_v39 = vcombine.low %v1804_v26, %v1812_v27  ;;  %v2324_v53 = vcombine.high %v1572_v38, %v1572_v38 }
 0x1fc   : > { %v2331_v5 = vrot.slane %v1572_v38, %v5542_v37  ;;  %v1845_v52 = vrot.slane %v1831_v25, %v5542_v37  ;;  %v1862_v36 = vrot.slane %v1848_v32, %v5542_v37  ;;  %v2917_v59 = vrot.slane %v2903_v60, %v5542_v37 }
 0x1fd   : > { %v2357_v63 = vcombine.high %v2355_v14, %v2355_v14  ;;  %v2886_v43 = vcombine.low %v1811_v44, %v1813_v9  ;;  %v1575_v56 = vadd.f32 %v1417_v23, %v5675_v28  ;;  %v1838_v16 = vrot.slane %v1543_v34, %v5542_v37  ;;  %v1433_v35 = vpop.permute.xlu0 %1432  ;;  %v6003_v51 = vpop.permute.xlu1 %1436 }
 0x1fe   : > { %v2910_v26 = vrot.slane %v2902_v42, %v5542_v37  ;;  %v1545_v8 = vadd.f32 %v1425_v40, %v5688_v4  ;;  %v1855_v27 = vrot.slane %v1544_v48, %v5542_v37  ;;  %v1546_v38 = vadd.f32 %v5970_v19, %v5712_v33 }
 0x1ff   : > { %v5983_v25 = vcombine.low %v2304_v41, %v2306_v49  ;;  %v2893_v32 = vrot.slane %v2885_v39, %v5542_v37  ;;  %v5986_v60 = vcombine.low %v2348_v1, %v2356_v47  ;;  %v2338_v44 = vrot.slane %v2324_v53, %v5542_v37 }
 0x200   : > { %v2339_v28 = vcombine.high %v2331_v5, %v2331_v5  ;;  %v1847_v23 = vcombine.high %v1845_v52, %v1845_v52  ;;  %v1864_v34 = vcombine.high %v1862_v36, %v1862_v36  ;;  %v2918_v2 = vcombine.low %v2910_v26, %v2917_v59 }
 0x201   : > { %6972 = vst [vmem:[#allocation42_spill] sm:$0xff] %v5986_v60  ;;  %v1846_v61 = vcombine.high %v1838_v16, %v1838_v16  ;;  %v2375_v9 = vcombine.high %v1575_v56, %v1575_v56  ;;  %v2382_v4 = vrot.slane %v1575_v56, %v5542_v37  ;;  %v2900_v48 = vrot.slane %v2886_v43, %v5542_v37 }
 0x202   : > { %v1574_v33 = vadd.f32 %v5901_v57, %v5684_v7  ;;  %v1865_v41 = vcombine.high %v1545_v8, %v1545_v8  ;;  %v1863_v49 = vcombine.high %v1855_v27, %v1855_v27  ;;  %v1882_v42 = vcombine.high %v1546_v38, %v1546_v38  ;;  %3865 = vperm.xlu0 %4581, %v2918_v2  }
 0x203   : > { %v5995_v47 = vcombine.low %v2355_v14, %v2357_v63  ;;  %v2340_v39 = vcombine.high %v2338_v44, %v2338_v44  ;;  %v2901_v53 = vcombine.low %v2893_v32, %v2900_v48  ;;  %v5999_v56 = vcombine.low %v2331_v5, %v2339_v28 }
 0x204   : > { %v2920_v43 = vcombine.low %v1845_v52, %v1847_v23  ;;  %v2937_v26 = vcombine.low %v1862_v36, %v1864_v34  ;;  %v2389_v7 = vrot.slane %v2375_v9, %v5542_v37  ;;  %v2390_v57 = vcombine.high %v2382_v4, %v2382_v4 }
 0x205   : > { %6973 = vst [vmem:[#allocation8_spill] sm:$0xff] %v5995_v47  ;;  %6974 = vst [vmem:[#allocation55_spill] sm:$0xff] %v5999_v56  ;;  %v2919_v30 = vcombine.low %v1838_v16, %v1846_v61  ;;  %v1577_v2 = vadd.f32 %v1425_v40, %v5691_v15  ;;  %3862 = vperm.xlu1 %4582, %v2901_v53   ;;  %v2358_v14 = vcombine.high %v1574_v33, %v1574_v33  ;;  %v7007_v47 = vld [vmem:[#allocation34_spill] sm:$0xff] }
 0x206   : > { %v1879_v63 = vrot.slane %v1865_v41, %v5542_v37  ;;  %v2936_v32 = vcombine.low %v1855_v27, %v1863_v49  ;;  %v1896_v48 = vrot.slane %v1882_v42, %v5542_v37  ;;  %v6007_v5 = vcombine.low %v2338_v44, %v2340_v39 }
 0x207   : > { %v2365_v52 = vrot.slane %v1574_v33, %v5542_v37  ;;  %v1872_v36 = vrot.slane %v1545_v8, %v5542_v37  ;;  %v1547_v28 = vadd.f32 %v1433_v35, %v5704_v45  ;;  %v1889_v16 = vrot.slane %v1546_v38, %v5542_v37 }
 0x208   : > { %v1548_v15 = vadd.f32 %v6003_v51, %v5726_v46  ;;  %v2951_v40 = vrot.slane %v2937_v26, %v5542_v37  ;;  %v2934_v23 = vrot.slane %v2920_v43, %v5542_v37  ;;  %v2391_v27 = vcombine.high %v2389_v7, %v2389_v7 }
 0x209   : > { %v2927_v34 = vrot.slane %v2919_v30, %v5542_v37  ;;  %v6018_v44 = vcombine.low %v2382_v4, %v2390_v57  ;;  %v2409_v61 = vcombine.high %v1577_v2, %v1577_v2  ;;  %v2372_v9 = vrot.slane %v2358_v14, %v5542_v37 }
 0x20a   : > { %v1881_v8 = vcombine.high %v1879_v63, %v1879_v63  ;;  %v2944_v45 = vrot.slane %v2936_v32, %v5542_v37  ;;  %v1898_v33 = vcombine.high %v1896_v48, %v1896_v48  ;;  %v2373_v38 = vcombine.high %v2365_v52, %v2365_v52 }
 0x20b   : > { %6975 = vst [vmem:[#allocation41_spill] sm:$0xff] %v6018_v44  ;;  %v1880_v41 = vcombine.high %v1872_v36, %v1872_v36  ;;  %v2416_v46 = vrot.slane %v1577_v2, %v5542_v37  ;;  %v1899_v49 = vcombine.high %v1547_v28, %v1547_v28  ;;  %v1897_v42 = vcombine.high %v1889_v16, %v1889_v16 }
 0x20c   : > { %v1916_v39 = vcombine.high %v1548_v15, %v1548_v15  ;;  %v2952_v53 = vcombine.low %v2944_v45, %v2951_v40  ;;  %v2935_v43 = vcombine.low %v2927_v34, %v2934_v23  ;;  %v6025_v4 = vcombine.low %v2389_v7, %v2391_v27  ;;  %v1440_v45 = vpop.permute.xlu0 %1439 }
 0x20d   : > { %v2423_v26 = vrot.slane %v2409_v61, %v5542_v37  ;;  %v1576_v57 = vadd.f32 %v5940_v12, %v5700_v10  ;;  %v2374_v14 = vcombine.high %v2372_v9, %v2372_v9  ;;  %v2954_v32 = vcombine.low %v1879_v63, %v1881_v8  ;;  %v6037_v12 = vpop.permute.xlu1 %1443 }
 0x20e   : > { %6976 = vst [vmem:[#allocation52_spill] sm:$0xff] %v6025_v4  ;;  %v2971_v59 = vcombine.low %v1896_v48, %v1898_v33  ;;  %3871 = vperm.xlu0 %4581, %v2952_v53   ;;  %3868 = vperm.xlu1 %4582, %v2935_v43   ;;  %v6032_v40 = vcombine.low %v2365_v52, %v2373_v38  ;;  %v7006_v4 = vld [vmem:[#allocation36_spill] sm:$0xff] }
 0x20f   : > { %v2424_v23 = vcombine.high %v2416_v46, %v2416_v46  ;;  %v1579_v34 = vadd.f32 %v1433_v35, %v5708_v11  ;;  %v2953_v7 = vcombine.low %v1872_v36, %v1880_v41  ;;  %v1913_v27 = vrot.slane %v1899_v49, %v5542_v37 }
 0x210   : > { %6977 = vst [vmem:[#allocation44_spill] sm:$0xff] %v6032_v40  ;;  %v2970_v61 = vcombine.low %v1889_v16, %v1897_v42  ;;  %v1930_v10 = vrot.slane %v1916_v39, %v5542_v37  ;;  %v2425_v63 = vcombine.high %v2423_v26, %v2423_v26  ;;  %v2392_v48 = vcombine.high %v1576_v57, %v1576_v57 }
 0x211   : > { %v2399_v8 = vrot.slane %v1576_v57, %v5542_v37  ;;  %v1906_v33 = vrot.slane %v1547_v28, %v5542_v37  ;;  %v6041_v52 = vcombine.low %v2372_v9, %v2374_v14  ;;  %v1923_v38 = vrot.slane %v1548_v15, %v5542_v37  ;;  %v6062_v1 = vpop.permute.xlu1 %1451 }
 0x212   : > { %v2985_v11 = vrot.slane %v2971_v59, %v5542_v37  ;;  %v2968_v35 = vrot.slane %v2954_v32, %v5542_v37  ;;  %v6046_v36 = vcombine.low %v2416_v46, %v2424_v23  ;;  %v2443_v16 = vcombine.high %v1579_v34, %v1579_v34 }
 0x213   : > { %6978 = vst [vmem:[#allocation9_spill] sm:$0xff] %v6041_v52  ;;  %v1549_v41 = vadd.f32 %v1440_v45, %v5719_v13  ;;  %v1550_v49 = vadd.f32 %v6037_v12, %v5743_v18  ;;  %v2961_v42 = vrot.slane %v2953_v7, %v5542_v37  ;;  %v1915_v39 = vcombine.high %v1913_v27, %v1913_v27  ;;  %v1448_v13 = vpop.permute.xlu0 %1447 }
 0x214   : > { %6979 = vst [vmem:[#allocation57_spill] sm:$0xff] %v6046_v36  ;;  %v2978_v28 = vrot.slane %v2970_v61, %v5542_v37  ;;  %v1932_v9 = vcombine.high %v1930_v10, %v1930_v10  ;;  %v2406_v15 = vrot.slane %v2392_v48, %v5542_v37  ;;  %v2407_v53 = vcombine.high %v2399_v8, %v2399_v8 }
 0x215   : > { %v1914_v59 = vcombine.high %v1906_v33, %v1906_v33  ;;  %v2450_v43 = vrot.slane %v1579_v34, %v5542_v37  ;;  %v1578_v46 = vadd.f32 %v5970_v19, %v5715_v3  ;;  %v1931_v57 = vcombine.high %v1923_v38, %v1923_v38 }
 0x216   : > { %v2986_v14 = vcombine.low %v2978_v28, %v2985_v11  ;;  %v2969_v32 = vcombine.low %v2961_v42, %v2968_v35  ;;  %v2457_v23 = vrot.slane %v2443_v16, %v5542_v37  ;;  %v1933_v7 = vcombine.high %v1549_v41, %v1549_v41 }
 0x217   : > { %v1950_v61 = vcombine.high %v1550_v49, %v1550_v49  ;;  %v6060_v2 = vcombine.low %v2423_v26, %v2425_v63  ;;  %v2988_v48 = vcombine.low %v1913_v27, %v1915_v39  ;;  %v3005_v30 = vcombine.low %v1930_v10, %v1932_v9 }
 0x218   : > { %3877 = vperm.xlu0 %4581, %v2986_v14   ;;  %3874 = vperm.xlu1 %4582, %v2969_v32   ;;  %v2408_v19 = vcombine.high %v2406_v15, %v2406_v15  ;;  %v2458_v34 = vcombine.high %v2450_v43, %v2450_v43  ;;  %v1581_v11 = vadd.f32 %v1440_v45, %v5722_v20  ;;  %v6075_v14 = vpop.permute.xlu0 %1455 }
 0x219   : > { %6980 = vst [vmem:[#allocation43_spill] sm:$0xff] %v6060_v2  ;;  %v6067_v35 = vcombine.low %v2399_v8, %v2407_v53  ;;  %v2987_v16 = vcombine.low %v1906_v33, %v1914_v59  ;;  %v2426_v42 = vcombine.high %v1578_v46, %v1578_v46  ;;  %v3004_v28 = vcombine.low %v1923_v38, %v1931_v57 }
 0x21a   : > { %v2459_v26 = vcombine.high %v2457_v23, %v2457_v23  ;;  %v1947_v27 = vrot.slane %v1933_v7, %v5542_v37  ;;  %v1964_v10 = vrot.slane %v1950_v61, %v5542_v37  ;;  %v1552_v63 = vadd.f32 %v6062_v1, %v5759_v58 }
 0x21b   : > { %6981 = vst [vmem:[#allocation54_spill] sm:$0xff] %v6067_v35  ;;  %v2433_v39 = vrot.slane %v1578_v46, %v5542_v37  ;;  %v1940_v9 = vrot.slane %v1549_v41, %v5542_v37  ;;  %v3019_v20 = vrot.slane %v3005_v30, %v5542_v37  ;;  %v3002_v45 = vrot.slane %v2988_v48, %v5542_v37  ;;  %v6983_v41 = vld [vmem:[#allocation15_spill] sm:$0xff] }
 0x21c   : > { %v6079_v8 = vcombine.low %v2450_v43, %v2458_v34  ;;  %v2477_v33 = vcombine.high %v1581_v11, %v1581_v11  ;;  %v2484_v38 = vrot.slane %v1581_v11, %v5542_v37  ;;  %v1957_v53 = vrot.slane %v1550_v49, %v5542_v37  ;;  %v6089_v43 = vpop.permute.xlu1 %1459 }
 0x21d   : > { %v2995_v59 = vrot.slane %v2987_v16, %v5542_v37  ;;  %v2440_v58 = vrot.slane %v2426_v42, %v5542_v37  ;;  %v3012_v46 = vrot.slane %v3004_v28, %v5542_v37  ;;  %v1551_v57 = vadd.f32 %v1448_v13, %v6983_v41  ;;  %v6985_v41 = vld [vmem:[#allocation16_spill] sm:$0xff] }
 0x21e   : > { %6982 = vst [vmem:[#allocation46_spill] sm:$0xff] %v6079_v8  ;;  %v6087_v32 = vcombine.low %v2406_v15, %v2408_v19  ;;  %v1949_v30 = vcombine.high %v1947_v27, %v1947_v27  ;;  %v1966_v7 = vcombine.high %v1964_v10, %v1964_v10  ;;  %v1984_v61 = vcombine.high %v1552_v63, %v1552_v63  ;;  %v6095_v8 = vpop.permute.xlu0 %1463 }
 0x21f   : > { %v2441_v48 = vcombine.high %v2433_v39, %v2433_v39  ;;  %v1948_v34 = vcombine.high %v1940_v9, %v1940_v9  ;;  %v3020_v11 = vcombine.low %v3012_v46, %v3019_v20  ;;  %v3003_v3 = vcombine.low %v2995_v59, %v3002_v45 }
 0x220   : > { %6984 = vst [vmem:[#allocation11_spill] sm:$0xff] %v6087_v32  ;;  %v2491_v16 = vrot.slane %v2477_v33, %v5542_v37  ;;  %v2492_v42 = vcombine.high %v2484_v38, %v2484_v38  ;;  %v1965_v28 = vcombine.high %v1957_v53, %v1957_v53  ;;  %v2442_v18 = vcombine.high %v2440_v58, %v2440_v58  ;;  %v6988_v33 = vld [vmem:[#allocation14_spill] sm:$0xff] }
 0x221   : > { %v1583_v15 = vadd.f32 %v1448_v13, %v6985_v41  ;;  %v1967_v19 = vcombine.high %v1551_v57, %v1551_v57  ;;  %3883 = vperm.xlu0 %4581, %v3020_v11   ;;  %3880 = vperm.xlu1 %4582, %v3003_v3   ;;  %v6097_v36 = vcombine.low %v2457_v23, %v2459_v26  ;;  %v6110_v3 = vpop.permute.xlu1 %1467 }
 0x222   : > { %v3022_v2 = vcombine.low %v1947_v27, %v1949_v30  ;;  %v3039_v20 = vcombine.low %v1964_v10, %v1966_v7  ;;  %v1998_v45 = vrot.slane %v1984_v61, %v5542_v37  ;;  %v6100_v59 = vcombine.low %v2433_v39, %v2441_v48  ;;  %v6992_v39 = vld [vmem:[#allocation18_spill] sm:$0xff]  ;;  %v6993_v30 = vld [vmem:[#allocation24_spill] sm:$0xff]  ;;  %v6127_v61 = vpop.permute.xlu0 %1471 }
 0x223   : > { %6986 = vst [vmem:[#allocation59_spill] sm:$0xff] %v6097_v36  ;;  %v3021_v46 = vcombine.low %v1940_v9, %v1948_v34  ;;  %v6104_v49 = vadd.f32 %v6003_v51, %v6988_v33  ;;  %v1974_v13 = vrot.slane %v1551_v57, %v5542_v37  ;;  %v2493_v41 = vcombine.high %v2491_v16, %v2491_v16 }
 0x224   : > { %6987 = vst [vmem:[#allocation45_spill] sm:$0xff] %v6100_v59  ;;  %v6107_v35 = vcombine.low %v2484_v38, %v2492_v42  ;;  %v3038_v11 = vcombine.low %v1957_v53, %v1965_v28  ;;  %v1991_v23 = vrot.slane %v1552_v63, %v5542_v37  ;;  %v6112_v26 = vcombine.low %v2440_v58, %v2442_v18  ;;  %v6998_v59 = vld [vmem:[#allocation28_spill] sm:$0xff] }
 0x225   : > { %6989 = vst [vmem:[#allocation56_spill] sm:$0xff] %v6104_v49  ;;  %v1981_v27 = vrot.slane %v1967_v19, %v5542_v37  ;;  %v2511_v10 = vcombine.high %v1583_v15, %v1583_v15  ;;  %v1553_v9 = vadd.f32 %v6075_v14, %v6992_v39  ;;  %v2000_v51 = vcombine.high %v1998_v45, %v1998_v45 }
 0x226   : > { %6990 = vst [vmem:[#allocation48_spill] sm:$0xff] %v6107_v35  ;;  %6991 = vst [vmem:[#allocation12_spill] sm:$0xff] %v6112_v26  ;;  %v1554_v57 = vadd.f32 %v6089_v43, %v6993_v30  ;;  %v3053_v38 = vrot.slane %v3039_v20, %v5542_v37  ;;  %v3036_v53 = vrot.slane %v3022_v2, %v5542_v37  ;;  %v6999_v26 = vld [vmem:[#allocation17_spill] sm:$0xff]  ;;  %v7005_v35 = vld [vmem:[#allocation30_spill] sm:$0xff] }
 0x227   : > { %v3029_v63 = vrot.slane %v3021_v46, %v5542_v37  ;;  %v2460_v18 = vcombine.high %v6104_v49, %v6104_v49  ;;  %v1982_v58 = vcombine.high %v1974_v13, %v1974_v13  ;;  %v6125_v7 = vrot.slane %v1583_v15, %v5542_v37  ;;  %v6995_v46 = vld [vmem:[#allocation22_spill] sm:$0xff] }
 0x228   : > { %v6129_v48 = vcombine.low %v2491_v16, %v2493_v41  ;;  %v3046_v42 = vrot.slane %v3038_v11, %v5542_v37  ;;  %v1999_v28 = vcombine.high %v1991_v23, %v1991_v23  ;;  %v1983_v2 = vcombine.high %v1981_v27, %v1981_v27  ;;  %v6139_v16 = vpop.permute.xlu1 %1475 }
 0x229   : > { %v6135_v19 = vrot.slane %v2511_v10, %v5542_v37  ;;  %v2001_v20 = vcombine.high %v1553_v9, %v1553_v9  ;;  %v1555_v33 = vadd.f32 %v6095_v8, %v6995_v46  ;;  %v3073_v15 = vcombine.low %v1998_v45, %v2000_v51  ;;  %6996 = vst [vmem:[#allocation47_spill] sm:$0xff] %v6139_v16 }
 0x22a   : > { %6994 = vst [vmem:[#allocation61_spill] sm:$0xff] %v6129_v48  ;;  %v2018_v39 = vcombine.high %v1554_v57, %v1554_v57  ;;  %v3054_v30 = vcombine.low %v3046_v42, %v3053_v38  ;;  %v3037_v36 = vcombine.low %v3029_v63, %v3036_v53  ;;  %v6142_v41 = vrot.slane %v2460_v18, %v5542_v37 }
 0x22b   : > { %v3055_v34 = vcombine.low %v1974_v13, %v1982_v58  ;;  %v1556_v10 = vadd.f32 %v6110_v3, %v6998_v59  ;;  %v6150_v49 = vadd.f32 %v6037_v12, %v6999_v26  ;;  %v2008_v45 = vrot.slane %v1553_v9, %v5542_v37  ;;  %v6156_v13 = vpop.permute.xlu0 %1479  ;;  %v7000_v12 = vld [vmem:[#allocation26_spill] sm:$0xff]  ;;  %v7001_v9 = vld [vmem:[#allocation19_spill] sm:$0xff] }
 0x22c   : > { %6997 = vst [vmem:[#allocation58_spill] sm:$0xff] %v6142_v41  ;;  %v3072_v51 = vcombine.low %v1991_v23, %v1999_v28  ;;  %3889 = vperm.xlu0 %4581, %v3054_v30   ;;  %3886 = vperm.xlu1 %4582, %v3037_v36   ;;  %v3056_v53 = vcombine.low %v1981_v27, %v1983_v2  ;;  %v7003_v30 = vld [vmem:[#allocation32_spill] sm:$0xff] }
 0x22d   : > { %v2015_v63 = vrot.slane %v2001_v20, %v5542_v37  ;;  %v2035_v18 = vcombine.high %v1555_v33, %v1555_v33  ;;  %v2042_v59 = vrot.slane %v1555_v33, %v5542_v37  ;;  %v2032_v58 = vrot.slane %v2018_v39, %v5542_v37 }
 0x22e   : > { %v1557_v26 = vadd.f32 %v6127_v61, %v7000_v12  ;;  %v3087_v23 = vrot.slane %v3073_v15, %v5542_v37  ;;  %v3063_v36 = vrot.slane %v3055_v34, %v5542_v37  ;;  %v6166_v42 = vadd.f32 %v6075_v14, %v7001_v9  ;;  %v6176_v15 = vpop.permute.xlu1 %1483 }
 0x22f   : > { %v2025_v27 = vrot.slane %v1554_v57, %v5542_v37  ;;  %v2052_v28 = vcombine.high %v1556_v10, %v1556_v10  ;;  %v6173_v20 = vrot.slane %v6150_v49, %v5542_v37  ;;  %v2016_v46 = vcombine.high %v2008_v45, %v2008_v45  ;;  %7002 = vst [vmem:[#allocation50_spill] sm:$0xff] %v6176_v15 }
 0x230   : > { %v3080_v33 = vrot.slane %v3072_v51, %v5542_v37  ;;  %v2017_v34 = vcombine.high %v2015_v63, %v2015_v63  ;;  %v2049_v39 = vrot.slane %v2035_v18, %v5542_v37  ;;  %v2059_v14 = vrot.slane %v1556_v10, %v5542_v37  ;;  %v6184_v51 = vpop.permute.xlu0 %1487  ;;  %v7009_v18 = vld [vmem:[#allocation20_spill] sm:$0xff] }
 0x231   : > { %v1558_v57 = vadd.f32 %v6139_v16, %v7003_v30  ;;  %v2050_v12 = vcombine.high %v2042_v59, %v2042_v59  ;;  %v2034_v9 = vcombine.high %v2032_v58, %v2032_v58  ;;  %v2069_v38 = vcombine.high %v1557_v26, %v1557_v26  ;;  %7004 = vst [vmem:[#allocation13_spill] sm:$0xff] %v6184_v51 }
 0x232   : > { %v3088_v11 = vcombine.low %v3080_v33, %v3087_v23  ;;  %v2033_v2 = vcombine.high %v2025_v27, %v2025_v27  ;;  %v2076_v41 = vrot.slane %v1557_v26, %v5542_v37  ;;  %v2066_v32 = vrot.slane %v2052_v28, %v5542_v37  ;;  %v6195_v56 = vpop.permute.xlu1 %1491 }
 0x233   : > { %v3070_v44 = vrot.slane %v3056_v53, %v5542_v37  ;;  %v3089_v10 = vcombine.low %v2008_v45, %v2016_v46  ;;  %v1559_v30 = vadd.f32 %v6156_v13, %v7005_v35  ;;  %v1560_v23 = vadd.f32 %v6176_v15, %v7006_v4  ;;  %7008 = vst [vmem:[#allocation60_spill] sm:$0xff] %v6195_v56 }
 0x234   : > { %3895 = vperm.xlu0 %4581, %v3088_v11   ;;  %v2051_v33 = vcombine.high %v2049_v39, %v2049_v39  ;;  %v2067_v60 = vcombine.high %v2059_v14, %v2059_v14  ;;  %v2086_v26 = vcombine.high %v1558_v57, %v1558_v57  ;;  %v3090_v28 = vcombine.low %v2015_v63, %v2017_v34 }
 0x235   : > { %v3071_v48 = vcombine.low %v3063_v36, %v3070_v44  ;;  %v3123_v40 = vcombine.low %v2042_v59, %v2050_v12  ;;  %v3107_v16 = vcombine.low %v2032_v58, %v2034_v9  ;;  %v1561_v53 = vadd.f32 %v6184_v51, %v7007_v47 }
 0x236   : > { %v3106_v45 = vcombine.low %v2025_v27, %v2033_v2  ;;  %v2083_v46 = vrot.slane %v2069_v38, %v5542_v37  ;;  %v2084_v35 = vcombine.high %v2076_v41, %v2076_v41  ;;  %v2068_v11 = vcombine.high %v2066_v32, %v2066_v32  ;;  %v6205_v27 = vpop.permute.xlu0 %1495 }
 0x237   : > { %3892 = vperm.xlu1 %4582, %v3071_v48   ;;  %v3097_v4 = vrot.slane %v3089_v10, %v5542_v37  ;;  %v6201_v15 = vadd.f32 %v6062_v1, %v7009_v18  ;;  %v2103_v44 = vcombine.high %v1559_v30, %v1559_v30  ;;  %v2120_v63 = vcombine.high %v1560_v23, %v1560_v23  ;;  %v7011_v18 = vld [vmem:[#allocation38_spill] sm:$0xff]  ;;  %v1500_v10 = vpop.permute.xlu1 %1499 }
 0x238   : > { %v3124_v59 = vcombine.low %v2049_v39, %v2051_v33  ;;  %v3140_v58 = vcombine.low %v2059_v14, %v2067_v60  ;;  %v2093_v47 = vrot.slane %v1558_v57, %v5542_v37  ;;  %v2100_v36 = vrot.slane %v2086_v26, %v5542_v37  ;;  %7010 = vst [vmem:[#allocation62_spill] sm:$0xff] %v6205_v27 }
 0x239   : > { %v3131_v38 = vrot.slane %v3123_v40, %v5542_v37  ;;  %v2137_v2 = vcombine.high %v1561_v53, %v1561_v53  ;;  %v3121_v48 = vrot.slane %v3107_v16, %v5542_v37  ;;  %v3104_v34 = vrot.slane %v3090_v28, %v5542_v37 }
 0x23a   : > { %v3114_v1 = vrot.slane %v3106_v45, %v5542_v37  ;;  %v2085_v12 = vcombine.high %v2083_v46, %v2083_v46  ;;  %v6211_v9 = vcombine.low %v2076_v41, %v2084_v35  ;;  %v3141_v39 = vcombine.low %v2066_v32, %v2068_v11  ;;  %v7012_v35 = vld [vmem:[#allocation53_spill] sm:$0xff] }
 0x23b   : > { %v2110_v60 = vrot.slane %v1559_v30, %v5542_v37  ;;  %v2117_v14 = vrot.slane %v2103_v44, %v5542_v37  ;;  %v2134_v57 = vrot.slane %v2120_v63, %v5542_v37  ;;  %v1563_v40 = vadd.f32 %v6205_v27, %v7011_v18  ;;  %v7013_v63 = vld [vmem:[#allocation49_spill] sm:$0xff] }
 0x23c   : > { %v3148_v16 = vrot.slane %v3140_v58, %v5542_v37  ;;  %v2101_v33 = vcombine.high %v2093_v47, %v2093_v47  ;;  %v2102_v26 = vcombine.high %v2100_v36, %v2100_v36  ;;  %v2127_v28 = vrot.slane %v1560_v23, %v5542_v37 }
 0x23d   : > { %v2151_v41 = vrot.slane %v2137_v2, %v5542_v37  ;;  %v3122_v45 = vcombine.low %v3114_v1, %v3121_v48  ;;  %v3105_v32 = vcombine.low %v3097_v4, %v3104_v34  ;;  %v1562_v30 = vadd.f32 %v6195_v56, %v7012_v35 }
 0x23e   : > { %v3155_v11 = vrot.slane %v3141_v39, %v5542_v37  ;;  %v3138_v44 = vrot.slane %v3124_v59, %v5542_v37  ;;  %v1564_v18 = vadd.f32 %v1500_v10, %v7013_v63  ;;  %v6227_v27 = vadd.f32 %v1500_v10, %v5872_v6 }
 0x23f   : > { %v2136_v58 = vcombine.high %v2134_v57, %v2134_v57  ;;  %v2171_v51 = vcombine.high %v1563_v40, %v1563_v40  ;;  %3901 = vperm.xlu0 %4581, %v3122_v45   ;;  %3898 = vperm.xlu1 %4582, %v3105_v32   ;;  %v2154_v23 = vcombine.high %v1562_v30, %v1562_v30 }
 0x240   : > { %7014 = vst [vmem:[#allocation21_spill] sm:$0xff] %v6227_v27  ;;  %v2135_v2 = vcombine.high %v2127_v28, %v2127_v28  ;;  %v2161_v4 = vrot.slane %v1562_v30, %v5542_v37  ;;  %v3156_v48 = vcombine.low %v3148_v16, %v3155_v11  ;;  %v2188_v34 = vcombine.high %v1564_v18, %v1564_v18 }
 0x241   : > { %v2118_v1 = vcombine.high %v2110_v60, %v2110_v60  ;;  %v2119_v35 = vcombine.high %v2117_v14, %v2117_v14  ;;  %v2168_v39 = vrot.slane %v2154_v23, %v5542_v37  ;;  %v3139_v59 = vcombine.low %v3131_v38, %v3138_v44 }
 0x242   : > { %v3158_v56 = vcombine.low %v2083_v46, %v2085_v12  ;;  %v3174_v63 = vcombine.low %v2093_v47, %v2101_v33  ;;  %v2144_v6 = vrot.slane %v1561_v53, %v5542_v37  ;;  %v2202_v10 = vrot.slane %v2188_v34, %v5542_v37 }
 0x243   : > { %v3175_v27 = vcombine.low %v2100_v36, %v2102_v26  ;;  %v3209_v45 = vcombine.low %v2134_v57, %v2136_v58  ;;  %v2170_v32 = vcombine.high %v2168_v39, %v2168_v39  ;;  %3907 = vperm.xlu0 %4581, %v3156_v48   ;;  %3904 = vperm.xlu1 %4582, %v3139_v59   ;;  %v7016_v59 = vld [vmem:[#allocation23_spill] sm:$0xff] }
 0x244   : > { %v2153_v52 = vcombine.high %v2151_v41, %v2151_v41  ;;  %v3208_v30 = vcombine.low %v2127_v28, %v2135_v2  ;;  %v2185_v16 = vrot.slane %v2171_v51, %v5542_v37  ;;  %v2169_v11 = vcombine.high %v2161_v4, %v2161_v4 }
 0x245   : > { %v3165_v23 = vrot.slane %v6211_v9, %v5542_v37  ;;  %v3191_v38 = vcombine.low %v2110_v60, %v2118_v1  ;;  %v3192_v46 = vcombine.low %v2117_v14, %v2119_v35  ;;  %v2195_v47 = vrot.slane %v1564_v18, %v5542_v37 }
 0x246   : > { %v3182_v53 = vrot.slane %v3174_v63, %v5542_v37  ;;  %v2152_v12 = vcombine.high %v2144_v6, %v2144_v6  ;;  %v2178_v36 = vrot.slane %v1563_v40, %v5542_v37  ;;  %v2204_v57 = vcombine.high %v2202_v10, %v2202_v10 }
 0x247   : > { %v3243_v33 = vcombine.low %v2168_v39, %v2170_v32  ;;  %v3189_v26 = vrot.slane %v3175_v27, %v5542_v37  ;;  %v3172_v28 = vrot.slane %v3158_v56, %v5542_v37  ;;  %v3223_v51 = vrot.slane %v3209_v45, %v5542_v37 }
 0x248   : > { %v3226_v44 = vcombine.low %v2151_v41, %v2153_v52  ;;  %v3216_v9 = vrot.slane %v3208_v30, %v5542_v37  ;;  %v2187_v60 = vcombine.high %v2185_v16, %v2185_v16  ;;  %v3242_v14 = vcombine.low %v2161_v4, %v2169_v11 }
 0x249   : > { %v2203_v58 = vcombine.high %v2195_v47, %v2195_v47  ;;  %v3190_v18 = vcombine.low %v3182_v53, %v3189_v26  ;;  %v3173_v2 = vcombine.low %v3165_v23, %v3172_v28  ;;  %v3206_v48 = vrot.slane %v3192_v46, %v5542_v37 }
 0x24a   : > { %v2552_v40 = vrot.slane %v6166_v42, %v5542_v37  ;;  %v3199_v34 = vrot.slane %v3191_v38, %v5542_v37  ;;  %v3225_v27 = vcombine.low %v2144_v6, %v2152_v12  ;;  %v2186_v1 = vcombine.high %v2178_v36, %v2178_v36 }
 0x24b   : > { %v3277_v56 = vcombine.low %v2202_v10, %v2204_v57  ;;  %3913 = vperm.xlu0 %4581, %v3190_v18   ;;  %3910 = vperm.xlu1 %4582, %v3173_v2   ;;  %v3224_v52 = vcombine.low %v3216_v9, %v3223_v51  ;;  %v3257_v41 = vrot.slane %v3243_v33, %v5542_v37 }
 0x24c   : > { %v7015_v4 = vcombine.high %v6150_v49, %v6150_v49  ;;  %v2528_v39 = vcombine.high %v6201_v15, %v6201_v15  ;;  %v1587_v63 = vadd.f32 %v6095_v8, %v7016_v59  ;;  %v3260_v45 = vcombine.low %v2185_v16, %v2187_v60  ;;  %v7022_v59 = vld [vmem:[#allocation27_spill] sm:$0xff] }
 0x24d   : > { %v3250_v6 = vrot.slane %v3242_v14, %v5542_v37  ;;  %v3276_v10 = vcombine.low %v2195_v47, %v2203_v58  ;;  %v3207_v32 = vcombine.low %v3199_v34, %v3206_v48  ;;  %v3240_v30 = vrot.slane %v3226_v44, %v5542_v37 }
 0x24e   : > { %v2508_v35 = vrot.slane %v7015_v4, %v5542_v37  ;;  %v2509_v11 = vcombine.high %v6173_v20, %v6173_v20  ;;  %v7017_v49 = vcombine.high %v6166_v42, %v6166_v42  ;;  %v2535_v38 = vrot.slane %v6201_v15, %v5542_v37  ;;  %v7021_v4 = vld [vmem:[#allocation25_spill] sm:$0xff] }
 0x24f   : > { %v3233_v8 = vrot.slane %v3225_v27, %v5542_v37  ;;  %v3259_v16 = vcombine.low %v2178_v36, %v2186_v1  ;;  %3919 = vperm.xlu0 %4581, %v3224_v52   ;;  %3916 = vperm.xlu1 %4582, %v3207_v32   ;;  %v3258_v46 = vcombine.low %v3250_v6, %v3257_v41 }
 0x250   : > { %v2559_v23 = vrot.slane %v7017_v49, %v5542_v37  ;;  %v3291_v47 = vrot.slane %v3277_v56, %v5542_v37  ;;  %v7018_v53 = vcombine.high %v6125_v7, %v6125_v7  ;;  %v2560_v57 = vcombine.high %v2552_v40, %v2552_v40  ;;  %v7020_v56 = vld [vmem:[#allocation10_spill] sm:$0xff] }
 0x251   : > { %v2542_v42 = vrot.slane %v2528_v39, %v5542_v37  ;;  %v2579_v33 = vcombine.high %v1587_v63, %v1587_v63  ;;  %v2510_v26 = vcombine.high %v2508_v35, %v2508_v35  ;;  %v3284_v15 = vrot.slane %v3276_v10, %v5542_v37 }
 0x252   : > { %v6272_v12 = vcombine.low %v6125_v7, %v7018_v53  ;;  %v3241_v28 = vcombine.low %v3233_v8, %v3240_v30  ;;  %v3274_v36 = vrot.slane %v3260_v45, %v5542_v37  ;;  %v7019_v51 = vcombine.high %v6135_v19, %v6135_v19 }
 0x253   : > { %v6284_v9 = vcombine.low %v6173_v20, %v2509_v11  ;;  %v2561_v7 = vcombine.high %v2559_v23, %v2559_v23  ;;  %v2586_v60 = vrot.slane %v1587_v63, %v5542_v37  ;;  %v2543_v14 = vcombine.high %v2535_v38, %v2535_v38  ;;  %3925 = vperm.xlu0 %4581, %v3258_v46  }
 0x254   : > { %v6281_v44 = vcombine.low %v6135_v19, %v7019_v51  ;;  %v3267_v58 = vrot.slane %v3259_v16, %v5542_v37  ;;  %3922 = vperm.xlu1 %4582, %v3241_v28   ;;  %v3292_v18 = vcombine.low %v3284_v15, %v3291_v47  ;;  %v3607_v2 = vrot.slane %v6272_v12, %v5542_v37 }
 0x255   : > { %v6290_v48 = vcombine.low %v2552_v40, %v2560_v57  ;;  %v2544_v34 = vcombine.high %v2542_v42, %v2542_v42  ;;  %v2593_v19 = vrot.slane %v2579_v33, %v5542_v37  ;;  %v6293_v27 = vcombine.low %v2508_v35, %v2510_v26  ;;  %v3839_v33 = vpop.permute.xlu0 %3838 }
 0x256   : > { %v3275_v20 = vcombine.low %v3267_v58, %v3274_v36  ;;  %v3325_v1 = vrot.slane %v5914_v62, %v5542_v37  ;;  %v3308_v52 = vrot.slane %v7020_v56, %v5542_v37  ;;  %v2594_v41 = vcombine.high %v2586_v60, %v2586_v60 }
 0x257   : > { %v1586_v39 = vadd.f32 %v6089_v43, %v7021_v4  ;;  %v1589_v40 = vadd.f32 %v6127_v61, %v7022_v59  ;;  %v7023_v63 = vlaneseq  ;;  %v3590_v35 = vrot.slane %v6284_v9, %v5542_v37  ;;  %3931 = vperm.xlu0 %4581, %v3292_v18   ;;  %v7055_v9 = vld [vmem:[#allocation40_spill] sm:$0xff] }
 0x258   : > { %v6308_v6 = vcombine.low %v2559_v23, %v2561_v7  ;;  %v6310_v10 = vcombine.low %v2535_v38, %v2543_v14  ;;  %3928 = vperm.xlu1 %4582, %v3275_v20   ;;  %v3641_v62 = vrot.slane %v6290_v48, %v5542_v37  ;;  %v6314_v32 = vcombine.low %v2542_v42, %v2544_v34 }
 0x259   : > { %v6304_v45 = vand.u32 127, %v7023_v63  ;;  %v2595_v43 = vcombine.high %v2593_v19, %v2593_v19  ;;  %v7024_v30 = vrot.slane %v5907_v54, %v5542_v37  ;;  %v7025_v49 = vrot.slane %v5868_v29, %v5542_v37  ;;  %v7026_v29 = vld [vmem:[#allocation7_spill] sm:$0xff] }
 0x25a   : > { %v3359_v38 = vrot.slane %v5952_v22, %v5542_v37  ;;  %v3342_v8 = vrot.slane %v5899_v50, %v5542_v37  ;;  %v6327_v16 = vcombine.low %v2586_v60, %v2594_v41  ;;  %v2562_v46 = vcombine.high %v1586_v39, %v1586_v39 }
 0x25b   : > { %v4035_v61 = vadd.s32 4294967288, %v6304_v45  ;;  %v3326_v11 = vcombine.low %v7024_v30, %v3325_v1  ;;  %v3309_v23 = vcombine.low %v7025_v49, %v3308_v52  ;;  %v2569_v47 = vrot.slane %v1586_v39, %v5542_v37  ;;  %v3842_v26 = vpop.permute.xlu1 %3841 }
 0x25c   : > { %v2613_v53 = vcombine.high %v1589_v40, %v1589_v40  ;;  %v3624_v54 = vrot.slane %v6310_v10, %v5542_v37  ;;  %v2620_v57 = vrot.slane %v1589_v40, %v5542_v37  ;;  %v6335_v42 = vsub.s32 %v6304_v45, %v7026_v29 }
 0x25d   : > { %3937 = vperm.xlu0 %4581, %v3326_v11   ;;  %3934 = vperm.xlu1 %4582, %v3309_v23   ;;  %v6337_v22 = vcombine.low %v2593_v19, %v2595_v43  ;;  %v3393_v50 = vrot.slane %v5983_v25, %v5542_v37  ;;  %v4042_v15 = vadd.s32 4294967280, %v6304_v45  ;;  %v4049_v28 = vadd.s32 4294967272, %v6304_v45 }
 0x25e   : > { %v7027_v36 = vrot.slane %v5937_v21, %v5542_v37  ;;  %v7028_v7 = vrot.slane %v5886_v0, %v5542_v37  ;;  %v3376_v14 = vrot.slane %v5932_v31, %v5542_v37  ;;  %v6352_v58 = vsub.s32 %v4035_v61, %v7026_v29 }
 0x25f   : > { %v2576_v25 = vrot.slane %v2562_v46, %v5542_v37  ;;  %v2577_v18 = vcombine.high %v2569_v47, %v2569_v47  ;;  %v2627_v34 = vrot.slane %v2613_v53, %v5542_v37  ;;  %v2628_v19 = vcombine.high %v2620_v57, %v2620_v57 }
 0x260   : > { %v3360_v51 = vcombine.low %v7027_v36, %v3359_v38  ;;  %v3343_v60 = vcombine.low %v7028_v7, %v3342_v8  ;;  %v4034_v21 = vrot.slane %v3839_v33, %v6335_v42  ;;  %v4039_v0 = vrot.slane %v3842_v26, %v6352_v58  ;;  %v7034_v38 = vld [vmem:[#allocation55_spill] sm:$0xff] }
 0x261   : > { %v3675_v20 = vrot.slane %v6327_v16, %v5542_v37  ;;  %v7029_v31 = vrot.slane %v5968_v24, %v5542_v37  ;;  %v3427_v56 = vrot.slane %v6007_v5, %v5542_v37  ;;  %v6366_v52 = vsub.s32 %v4049_v28, %v7026_v29  ;;  %v7031_v5 = vld [vmem:[#allocation29_spill] sm:$0xff] }
 0x262   : > { %3943 = vperm.xlu0 %4581, %v3360_v51   ;;  %3940 = vperm.xlu1 %4582, %v3343_v60   ;;  %v7030_v41 = vrot.slane %v5919_v55, %v5542_v37  ;;  %v3410_v39 = vrot.slane %v5963_v17, %v5542_v37  ;;  %v4041_v59 = vsel %vm4040_vm1, %v4039_v0, %v4034_v21  ;;  %v7032_v55 = vld [vmem:[#allocation31_spill] sm:$0xff]  ;;  %v7033_v17 = vld [vmem:[#allocation9_spill] sm:$0xff]  ;;  %v4063_v28 = vadd.s32 4294967256, %v6304_v45 }
 0x263   : > { %v3394_v1 = vcombine.low %v7029_v31, %v3393_v50  ;;  %v6375_v40 = vsub.s32 %v4042_v15, %v7026_v29  ;;  %v2578_v24 = vcombine.high %v2576_v25, %v2576_v25  ;;  %v6377_v63 = vcombine.low %v2569_v47, %v2577_v18  ;;  %v7036_v47 = vld [vmem:[#allocation8_spill] sm:$0xff]  ;;  %v7037_v50 = vld [vmem:[#allocation51_spill] sm:$0xff]  ;;  %v7039_v18 = vld [vmem:[#allocation33_spill] sm:$0xff] }
 0x264   : > { %v3377_v4 = vcombine.low %v7030_v41, %v3376_v14  ;;  %v2629_v43 = vcombine.high %v2627_v34, %v2627_v34  ;;  %v1588_v61 = vadd.f32 %v6110_v3, %v7031_v5  ;;  %v6381_v11 = vcombine.low %v2620_v57, %v2628_v19  ;;  %v7040_v19 = vld [vmem:[#allocation47_spill] sm:$0xff]  ;;  %v7043_v41 = vld [vmem:[#allocation61_spill] sm:$0xff] }
 0x265   : > { %v1591_v49 = vadd.f32 %v6156_v13, %v7032_v55  ;;  %v3461_v23 = vrot.slane %v7033_v17, %v5542_v37  ;;  %v7035_v8 = vrot.slane %v7034_v38, %v5542_v37  ;;  %v3444_v53 = vrot.slane %v7036_v47, %v5542_v37  ;;  %v7047_v47 = vld [vmem:[#allocation37_spill] sm:$0xff] }
 0x266   : > { %v3848_v30 = vpop.permute.xlu0 %3847  ;;  %3949 = vperm.xlu0 %4581, %v3394_v1   ;;  %3946 = vperm.xlu1 %4582, %v3377_v4   ;;  %v7038_v13 = vrot.slane %v7037_v50, %v5542_v37  ;;  %v4056_v15 = vadd.s32 4294967264, %v6304_v45  ;;  %v6399_v36 = vcombine.low %v2576_v25, %v2578_v24  ;;  %v3658_v51 = vrot.slane %v6377_v63, %v5542_v37  ;;  %v7041_v1 = vld [vmem:[#allocation44_spill] sm:$0xff]  ;;  %v7044_v24 = vld [vmem:[#allocation42_spill] sm:$0xff] }
 0x267   : > { %v3428_v46 = vcombine.low %v7035_v8, %v3427_v56  ;;  %v4053_v57 = vrot.slane %v3848_v30, %v6366_v52  ;;  %v2596_v7 = vcombine.high %v1588_v61, %v1588_v61  ;;  %v2603_v60 = vrot.slane %v1588_v61, %v5542_v37  ;;  %v7046_v30 = vld [vmem:[#allocation52_spill] sm:$0xff] }
 0x268   : > { %v3845_v3 = vpop.permute.xlu1 %3844  ;;  %v3411_v33 = vcombine.low %v7038_v13, %v3410_v39  ;;  %v2647_v14 = vcombine.high %v1591_v49, %v1591_v49  ;;  %v1590_v21 = vadd.f32 %v7040_v19, %v7039_v18  ;;  %v6407_v31 = vcombine.low %v2627_v34, %v2629_v43 }
 0x269   : > { %v4046_v26 = vrot.slane %v3845_v3, %v6375_v40  ;;  %v7042_v25 = vrot.slane %v7041_v1, %v5542_v37  ;;  %v3580_v4 = vrot.slane %v7043_v41, %v5542_v37  ;;  %v7045_v5 = vrot.slane %v7044_v24, %v5542_v37 }
 0x26a   : > { %3955 = vperm.xlu0 %4581, %v3428_v46   ;;  %3952 = vperm.xlu1 %4582, %v3411_v33   ;;  %v3478_v55 = vrot.slane %v7046_v30, %v5542_v37  ;;  %v6424_v34 = vsub.s32 %v4063_v28, %v7026_v29  ;;  %v3709_v43 = vrot.slane %v6381_v11, %v5542_v37  ;;  %v7051_v28 = vld [vmem:[#allocation41_spill] sm:$0xff]  ;;  %v4070_v30 = vadd.s32 4294967248, %v6304_v45 }
 0x26b   : > { %v4048_v0 = vsel %vm4047_vm2, %v4046_v26, %v4041_v59  ;;  %v3462_v56 = vcombine.low %v7042_v25, %v3461_v23  ;;  %v3445_v61 = vcombine.low %v7045_v5, %v3444_v53  ;;  %v6421_v59 = vsub.s32 %v4056_v15, %v7026_v29  ;;  %v7048_v53 = vld [vmem:[#allocation50_spill] sm:$0xff] }
 0x26c   : > { %v4055_v39 = vsel %vm4054_vm3, %v4053_v57, %v4048_v0  ;;  %v2610_v17 = vrot.slane %v2596_v7, %v5542_v37  ;;  %v2611_v23 = vcombine.high %v2603_v60, %v2603_v60  ;;  %v2654_v38 = vrot.slane %v1591_v49, %v5542_v37  ;;  %v7049_v57 = vld [vmem:[#allocation48_spill] sm:$0xff] }
 0x26d   : > { %v2661_v8 = vrot.slane %v2647_v14, %v5542_v37  ;;  %v2630_v46 = vcombine.high %v1590_v21, %v1590_v21  ;;  %v1592_v3 = vadd.f32 %v7048_v53, %v7047_v47  ;;  %v7050_v50 = vrot.slane %v7049_v57, %v5542_v37 }
 0x26e   : > { %3961 = vperm.xlu0 %4581, %v3462_v56   ;;  %3958 = vperm.xlu1 %4582, %v3445_v61   ;;  %v3614_v33 = vrot.slane %v6281_v44, %v5542_v37  ;;  %v3597_v26 = vrot.slane %v6293_v27, %v5542_v37  ;;  %v7052_v7 = vrot.slane %v7051_v28, %v5542_v37  ;;  %v7053_v44 = vld [vmem:[#allocation35_spill] sm:$0xff]  ;;  %v7054_v56 = vld [vmem:[#allocation13_spill] sm:$0xff]  ;;  %v4084_v63 = vadd.s32 4294967232, %v6304_v45 }
 0x26f   : > { %v3581_v13 = vcombine.low %v7050_v50, %v3580_v4  ;;  %v3851_v49 = vpop.permute.xlu1 %3850  ;;  %v3854_v15 = vpop.permute.xlu0 %3853  ;;  %v2612_v0 = vcombine.high %v2610_v17, %v2610_v17  ;;  %v2662_v1 = vcombine.high %v2654_v38, %v2654_v38  ;;  %v2637_v25 = vrot.slane %v1590_v21, %v5542_v37 }
 0x270   : > { %v3479_v14 = vcombine.low %v7052_v7, %v3478_v55  ;;  %v4060_v18 = vrot.slane %v3851_v49, %v6421_v59  ;;  %v4067_v19 = vrot.slane %v3854_v15, %v6424_v34  ;;  %v1593_v41 = vadd.f32 %v7054_v56, %v7053_v44  ;;  %v7057_v7 = vld [vmem:[#allocation39_spill] sm:$0xff] }
 0x271   : > { %v2644_v27 = vrot.slane %v2630_v46, %v5542_v37  ;;  %v2664_v4 = vcombine.high %v1592_v3, %v1592_v3  ;;  %v2663_v5 = vcombine.high %v2661_v8, %v2661_v8  ;;  %v4077_v55 = vadd.s32 4294967240, %v6304_v45 }
 0x272   : > { %3982 = vperm.xlu0 %4581, %v3581_v13   ;;  %3964 = vperm.xlu1 %4582, %v3479_v14   ;;  %v4062_v24 = vsel %vm4061_vm4, %v4060_v18, %v4055_v39  ;;  %v3615_v21 = vcombine.low %v3607_v2, %v3614_v33  ;;  %v3598_v46 = vcombine.low %v3590_v35, %v3597_v26  ;;  %v7056_v35 = vld [vmem:[#allocation60_spill] sm:$0xff]  ;;  %v7058_v14 = vld [vmem:[#allocation62_spill] sm:$0xff] }
 0x273   : > { %v4069_v61 = vsel %vm4068_vm5, %v4067_v19, %v4062_v24  ;;  %v3648_v47 = vrot.slane %v6308_v6, %v5542_v37  ;;  %v3631_v39 = vrot.slane %v6314_v32, %v5542_v37  ;;  %v3684_v53 = vcombine.low %v2603_v60, %v2611_v23 }
 0x274   : > { %v3685_v57 = vcombine.low %v2610_v17, %v2612_v0  ;;  %v6463_v50 = vcombine.low %v2654_v38, %v2662_v1  ;;  %v2681_v13 = vcombine.high %v1593_v41, %v1593_v41  ;;  %v2645_v49 = vcombine.high %v2637_v25, %v2637_v25 }
 0x275   : > { %v2646_v15 = vcombine.high %v2644_v27, %v2644_v27  ;;  %v2678_v12 = vrot.slane %v2664_v4, %v5542_v37  ;;  %v3736_v2 = vcombine.low %v2661_v8, %v2663_v5  ;;  %v1594_v33 = vadd.f32 %v7056_v35, %v7055_v9 }
 0x276   : > { %3988 = vperm.xlu0 %4581, %v3615_v21   ;;  %3985 = vperm.xlu1 %4582, %v3598_v46   ;;  %v6469_v6 = vsub.s32 %v4070_v30, %v7026_v29  ;;  %v6472_v32 = vsub.s32 %v4077_v55, %v7026_v29  ;;  %v3649_v60 = vcombine.low %v3641_v62, %v3648_v47  ;;  %v4091_v4 = vadd.s32 4294967224, %v6304_v45 }
 0x277   : > { %v3632_v17 = vcombine.low %v3624_v54, %v3631_v39  ;;  %v3682_v23 = vrot.slane %v6337_v22, %v5542_v37  ;;  %v3665_v38 = vrot.slane %v6399_v36, %v5542_v37  ;;  %v2688_v8 = vrot.slane %v1593_v41, %v5542_v37 }
 0x278   : > { %v2695_v26 = vrot.slane %v2681_v13, %v5542_v37  ;;  %v2671_v28 = vrot.slane %v1592_v3, %v5542_v37  ;;  %v1595_v48 = vadd.f32 %v7058_v14, %v7057_v7  ;;  %v3718_v62 = vcombine.low %v2637_v25, %v2645_v49  ;;  %v7059_v13 = vld [vmem:[#allocation21_spill] sm:$0xff] }
 0x279   : > { %v3719_v18 = vcombine.low %v2644_v27, %v2646_v15  ;;  %v2680_v19 = vcombine.high %v2678_v12, %v2678_v12  ;;  %v2698_v22 = vcombine.high %v1594_v33, %v1594_v33  ;;  %v3683_v3 = vcombine.low %v3675_v20, %v3682_v23 }
 0x27a   : > { %3994 = vperm.xlu0 %4581, %v3649_v60   ;;  %3991 = vperm.xlu1 %4582, %v3632_v17   ;;  %v3857_v10 = vpop.permute.xlu1 %3856  ;;  %v3860_v54 = vpop.permute.xlu0 %3859  ;;  %v3666_v1 = vcombine.low %v3658_v51, %v3665_v38  ;;  %v3716_v25 = vrot.slane %v6407_v31, %v5542_v37  ;;  %v3699_v44 = vrot.slane %v3685_v57, %v5542_v37 }
 0x27b   : > { %v4074_v36 = vrot.slane %v3857_v10, %v6469_v6  ;;  %v4081_v0 = vrot.slane %v3860_v54, %v6472_v32  ;;  %v2679_v56 = vcombine.high %v2671_v28, %v2671_v28  ;;  %v2715_v41 = vcombine.high %v1595_v48, %v1595_v48  ;;  %v7061_v54 = vld [vmem:[#allocation54_spill] sm:$0xff] }
 0x27c   : > { %v3692_v24 = vrot.slane %v3684_v53, %v5542_v37  ;;  %v3743_v16 = vrot.slane %v6463_v50, %v5542_v37  ;;  %v2696_v51 = vcombine.high %v2688_v8, %v2688_v8  ;;  %v2697_v31 = vcombine.high %v2695_v26, %v2695_v26 }
 0x27d   : > { %v4076_v27 = vsel %vm4075_vm6, %v4074_v36, %v4069_v61  ;;  %v3753_v5 = vcombine.low %v2678_v12, %v2680_v19  ;;  %v2712_v30 = vrot.slane %v2698_v22, %v5542_v37  ;;  %v3717_v61 = vcombine.low %v3709_v43, %v3716_v25 }
 0x27e   : > { %4000 = vperm.xlu0 %4581, %v3683_v3   ;;  %3997 = vperm.xlu1 %4582, %v3666_v1   ;;  %v4083_v20 = vsel %vm4082_vm7, %v4081_v0, %v4076_v27  ;;  %v3700_v55 = vcombine.low %v3692_v24, %v3699_v44  ;;  %v3750_v21 = vrot.slane %v3736_v2, %v5542_v37  ;;  %v4098_v19 = vadd.s32 4294967216, %v6304_v45  ;;  %v7063_v3 = vld [vmem:[#allocation43_spill] sm:$0xff]  ;;  %v7064_v44 = vld [vmem:[#allocation56_spill] sm:$0xff] }
 0x27f   : > { %v3733_v46 = vrot.slane %v3719_v18, %v5542_v37  ;;  %v3726_v47 = vrot.slane %v3718_v62, %v5542_v37  ;;  %v3752_v39 = vcombine.low %v2671_v28, %v2679_v56  ;;  %v2729_v53 = vrot.slane %v2715_v41, %v5542_v37  ;;  %v7065_v41 = vld [vmem:[#allocation58_spill] sm:$0xff] }
 0x280   : > { %v6516_v57 = vsub.s32 %v4091_v4, %v7026_v29  ;;  %v2705_v50 = vrot.slane %v1594_v33, %v5542_v37  ;;  %v2732_v49 = vcombine.high %v7059_v13, %v7059_v13  ;;  %v6522_v11 = vsub.s32 %v4084_v63, %v7026_v29  ;;  %v7060_v33 = vld [vmem:[#allocation11_spill] sm:$0xff] }
 0x281   : > { %v3866_v43 = vpop.permute.xlu0 %3865  ;;  %v3769_v15 = vcombine.low %v2688_v8, %v2696_v51  ;;  %v3770_v12 = vcombine.low %v2695_v26, %v2697_v31  ;;  %v2714_v2 = vcombine.high %v2712_v30, %v2712_v30  ;;  %v3767_v9 = vrot.slane %v3753_v5, %v5542_v37 }
 0x282   : > { %4006 = vperm.xlu0 %4581, %v3717_v61   ;;  %4003 = vperm.xlu1 %4582, %v3700_v55   ;;  %v2722_v35 = vrot.slane %v1595_v48, %v5542_v37  ;;  %v3751_v60 = vcombine.low %v3743_v16, %v3750_v21  ;;  %v3734_v17 = vcombine.low %v3726_v47, %v3733_v46  ;;  %v4105_v10 = vadd.s32 4294967208, %v6304_v45  ;;  %v7066_v55 = vld [vmem:[#allocation57_spill] sm:$0xff] }
 0x283   : > { %v3495_v23 = vrot.slane %v7060_v33, %v5542_v37  ;;  %v3760_v38 = vrot.slane %v3752_v39, %v5542_v37  ;;  %v2731_v28 = vcombine.high %v2729_v53, %v2729_v53  ;;  %v4095_v14 = vrot.slane %v3866_v43, %v6516_v57  ;;  %v7068_v39 = vld [vmem:[#allocation12_spill] sm:$0xff] }
 0x284   : > { %v3863_v7 = vpop.permute.xlu1 %3862  ;;  %v2713_v62 = vcombine.high %v2705_v50, %v2705_v50  ;;  %v2746_v8 = vrot.slane %v2732_v49, %v5542_v37  ;;  %v3787_v48 = vcombine.low %v2712_v30, %v2714_v2  ;;  %v7062_v22 = vrot.slane %v7061_v54, %v5542_v37  ;;  %v7070_v49 = vld [vmem:[#allocation45_spill] sm:$0xff] }
 0x285   : > { %v4088_v26 = vrot.slane %v3863_v7, %v6522_v11  ;;  %v3768_v18 = vcombine.low %v3760_v38, %v3767_v9  ;;  %v3784_v0 = vrot.slane %v3770_v12, %v5542_v37  ;;  %v3512_v1 = vrot.slane %v7063_v3, %v5542_v37 }
 0x286   : > { %4012 = vperm.xlu0 %4581, %v3751_v60   ;;  %4009 = vperm.xlu1 %4582, %v3734_v17   ;;  %v3496_v36 = vcombine.low %v7062_v22, %v3495_v23  ;;  %v2467_v56 = vrot.slane %v7064_v44, %v5542_v37  ;;  %v2476_v27 = vcombine.high %v7065_v41, %v7065_v41 }
 0x287   : > { %v4090_v25 = vsel %vm4089_vm8, %v4088_v26, %v4083_v20  ;;  %v3777_v4 = vrot.slane %v3769_v15, %v5542_v37  ;;  %v2730_v16 = vcombine.high %v2722_v35, %v2722_v35  ;;  %v3786_v63 = vcombine.low %v2705_v50, %v2713_v62 }
 0x288   : > { %v4097_v24 = vsel %vm4096_vm9, %v4095_v14, %v4090_v25  ;;  %v2739_v51 = vrot.slane %v7059_v13, %v5542_v37  ;;  %v3804_v31 = vcombine.low %v2729_v53, %v2731_v28  ;;  %v2748_v5 = vcombine.high %v2746_v8, %v2746_v8  ;;  %v7069_v13 = vld [vmem:[#allocation46_spill] sm:$0xff] }
 0x289   : > { %v6550_v20 = vsub.s32 %v4098_v19, %v7026_v29  ;;  %v6553_v30 = vsub.s32 %v4105_v10, %v7026_v29  ;;  %v3785_v61 = vcombine.low %v3777_v4, %v3784_v0  ;;  %v7067_v21 = vrot.slane %v7066_v55, %v5542_v37 }
 0x28a   : > { %4015 = vperm.xlu0 %4581, %v3768_v18   ;;  %3967 = vperm.xlu1 %4582, %v3496_v36   ;;  %v3801_v47 = vrot.slane %v3787_v48, %v5542_v37  ;;  %v3529_v50 = vrot.slane %v7068_v39, %v5542_v37  ;;  %v3539_v53 = vrot.slane %v7069_v13, %v5542_v37  ;;  %v4112_v19 = vadd.s32 4294967200, %v6304_v45 }
 0x28b   : > { %v3513_v46 = vcombine.low %v7067_v21, %v3512_v1  ;;  %v3522_v43 = vrot.slane %v7070_v49, %v5542_v37  ;;  %v2475_v15 = vcombine.high %v2467_v56, %v2467_v56  ;;  %v3549_v12 = vcombine.low %v7065_v41, %v2476_v27 }
 0x28c   : > { %v3803_v2 = vcombine.low %v2722_v35, %v2730_v16  ;;  %v3794_v9 = vrot.slane %v3786_v63, %v5542_v37  ;;  %v2747_v60 = vcombine.high %v2739_v51, %v2739_v51  ;;  %v3821_v23 = vcombine.low %v2746_v8, %v2748_v5  ;;  %v7071_v35 = vld [vmem:[#allocation59_spill] sm:$0xff] }
 0x28d   : > { %v3869_v17 = vpop.permute.xlu1 %3868  ;;  %v3872_v33 = vpop.permute.xlu0 %3871  ;;  %v3530_v14 = vcombine.low %v3522_v43, %v3529_v50  ;;  %v3818_v62 = vrot.slane %v3804_v31, %v5542_v37  ;;  %v3546_v26 = vrot.slane %v7071_v35, %v5542_v37  ;;  %v3548_v48 = vcombine.low %v2467_v56, %v2475_v15 }
 0x28e   : > { %4018 = vperm.xlu0 %4581, %v3785_v61   ;;  %3970 = vperm.xlu1 %4582, %v3513_v46   ;;  %v4102_v38 = vrot.slane %v3869_v17, %v6550_v20  ;;  %v4109_v28 = vrot.slane %v3872_v33, %v6553_v30  ;;  %v3802_v7 = vcombine.low %v3794_v9, %v3801_v47  ;;  %v4119_v10 = vadd.s32 4294967192, %v6304_v45 }
 0x28f   : > { %v3811_v8 = vrot.slane %v3803_v2, %v5542_v37  ;;  %v3820_v54 = vcombine.low %v2739_v51, %v2747_v60  ;;  %v3547_v0 = vcombine.low %v3539_v53, %v3546_v26  ;;  %v3835_v3 = vrot.slane %v3821_v23, %v5542_v37 }
 0x290   : > { %v4104_v18 = vsel %vm4103_vm10, %v4102_v38, %v4097_v24  ;;  %v3563_v1 = vrot.slane %v3549_v12, %v5542_v37  ;;  %v6580_v25 = vsub.s32 %v4112_v19, %v7026_v29  ;;  %v6583_v44 = vsub.s32 %v4119_v10, %v7026_v29 }
 0x291   : > { %v4111_v22 = vsel %vm4110_vm11, %v4109_v28, %v4104_v18  ;;  %v3819_v36 = vcombine.low %v3811_v8, %v3818_v62  ;;  %v3556_v56 = vrot.slane %v3548_v48, %v5542_v37  ;;  %v3828_v41 = vrot.slane %v3820_v54, %v5542_v37 }
 0x292   : > { %4021 = vperm.xlu0 %4581, %v3802_v7   ;;  %3973 = vperm.xlu1 %4582, %v3530_v14   ;;  %v4126_v5 = vadd.s32 4294967184, %v6304_v45  ;;  %v4133_v37 = vadd.s32 4294967176, %v6304_v45 }
 0x293   : > { %v3836_v27 = vcombine.low %v3828_v41, %v3835_v3  ;;  %v3564_v4 = vcombine.low %v3556_v56, %v3563_v1 }
 0x294   : > { %v6594_v55 = vsub.s32 %v4126_v5, %v7026_v29  ;;  %v6597_v21 = vsub.s32 %v4133_v37, %v7026_v29 }
 0x296   : > { %4024 = vperm.xlu0 %4581, %v3819_v36   ;;  %3976 = vperm.xlu1 %4582, %v3547_v0  }
 0x297   : > { %v3875_v24 = vpop.permute.xlu1 %3874  ;;  %v3878_v16 = vpop.permute.xlu0 %3877 }
 0x298   : > { %v4116_v63 = vrot.slane %v3875_v24, %v6580_v25  ;;  %v4123_v51 = vrot.slane %v3878_v16, %v6583_v44 }
 0x29a   : > { %4027 = vperm.xlu0 %4581, %v3836_v27   ;;  %3979 = vperm.xlu1 %4582, %v3564_v4   ;;  %v4118_v31 = vsel %vm4117_vm12, %v4116_v63, %v4111_v22 }
 0x29b   : > { %v4125_v61 = vsel %vm4124_vm13, %v4123_v51, %v4118_v31 }
 0x2a0   : > { %v3881_v46 = vpop.permute.xlu1 %3880  ;;  %v3884_v47 = vpop.permute.xlu0 %3883 }
 0x2a1   : > { %v4130_v39 = vrot.slane %v3881_v46, %v6594_v55  ;;  %v4137_v50 = vrot.slane %v3884_v47, %v6597_v21 }
 0x2a3   : > { %v4132_v13 = vsel %vm4131_vm14, %v4130_v39, %v4125_v61 }
 0x2a4   : > { %v6603_v45 = vsel %vm4138_vm15, %v4137_v50, %v4132_v13 }
 0x2ab   : > { %v3887_v53 = vpop.permute.xlu1 %3886  ;;  %v3890_v49 = vpop.permute.xlu0 %3889 }
 0x2ac   : > { %v4143_v43 = vrot.slane %v3887_v53, %v6335_v42  ;;  %v4147_v29 = vrot.slane %v3890_v49, %v6352_v58 }
 0x2ae   : > { %v4148_v15 = vsel %vm4040_vm1, %v4147_v29, %v4143_v43 }
 0x2b3   : > { %v3896_v12 = vpop.permute.xlu0 %3895 }
 0x2b4   : > { %v4157_v9 = vrot.slane %v3896_v12, %v6366_v52 }
 0x2b6   : > { %v3893_v2 = vpop.permute.xlu1 %3892 }
 0x2b7   : > { %v4152_v60 = vrot.slane %v3893_v2, %v6375_v40 }
 0x2b9   : > { %v4153_v17 = vsel %vm4047_vm2, %v4152_v60, %v4148_v15 }
 0x2ba   : > { %v4158_v33 = vsel %vm4054_vm3, %v4157_v9, %v4153_v17 }
 0x2be   : > { %v3899_v23 = vpop.permute.xlu1 %3898  ;;  %v3902_v38 = vpop.permute.xlu0 %3901 }
 0x2bf   : > { %v4162_v28 = vrot.slane %v3899_v23, %v6421_v59  ;;  %v4167_v7 = vrot.slane %v3902_v38, %v6424_v34 }
 0x2c1   : > { %v4163_v14 = vsel %vm4061_vm4, %v4162_v28, %v4158_v33 }
 0x2c2   : > { %v4168_v62 = vsel %vm4068_vm5, %v4167_v7, %v4163_v14  ;;  %v3905_v35 = vpop.permute.xlu1 %3904  ;;  %v3908_v26 = vpop.permute.xlu0 %3907 }
 0x2c3   : > { %v4172_v48 = vrot.slane %v3905_v35, %v6469_v6  ;;  %v4177_v18 = vrot.slane %v3908_v26, %v6472_v32 }
 0x2c5   : > { %v4173_v19 = vsel %vm4075_vm6, %v4172_v48, %v4168_v62 }
 0x2c6   : > { %v4178_v10 = vsel %vm4082_vm7, %v4177_v18, %v4173_v19 }
 0x2ca   : > { %v3911_v8 = vpop.permute.xlu1 %3910  ;;  %v3914_v54 = vpop.permute.xlu0 %3913 }
 0x2cb   : > { %v4182_v22 = vrot.slane %v3911_v8, %v6522_v11  ;;  %v4187_v36 = vrot.slane %v3914_v54, %v6516_v57 }
 0x2cd   : > { %v4183_v0 = vsel %vm4089_vm8, %v4182_v22, %v4178_v10 }
 0x2ce   : > { %v4188_v3 = vsel %vm4096_vm9, %v4187_v36, %v4183_v0  ;;  %v3917_v1 = vpop.permute.xlu1 %3916  ;;  %v3920_v56 = vpop.permute.xlu0 %3919 }
 0x2cf   : > { %v4192_v41 = vrot.slane %v3917_v1, %v6550_v20  ;;  %v4197_v27 = vrot.slane %v3920_v56, %v6553_v30 }
 0x2d1   : > { %v4193_v4 = vsel %vm4103_vm10, %v4192_v41, %v4188_v3 }
 0x2d2   : > { %v4198_v24 = vsel %vm4110_vm11, %v4197_v27, %v4193_v4  ;;  %v3926_v63 = vpop.permute.xlu0 %3925 }
 0x2d3   : > { %v3923_v16 = vpop.permute.xlu1 %3922  ;;  %v4207_v31 = vrot.slane %v3926_v63, %v6583_v44 }
 0x2d4   : > { %v4202_v51 = vrot.slane %v3923_v16, %v6580_v25 }
 0x2d6   : > { %v4203_v5 = vsel %vm4117_vm12, %v4202_v51, %v4198_v24  ;;  %v3932_v46 = vpop.permute.xlu0 %3931 }
 0x2d7   : > { %v4208_v37 = vsel %vm4124_vm13, %v4207_v31, %v4203_v5  ;;  %v3929_v61 = vpop.permute.xlu1 %3928  ;;  %v4217_v39 = vrot.slane %v3932_v46, %v6597_v21 }
 0x2d8   : > { %v4212_v47 = vrot.slane %v3929_v61, %v6594_v55 }
 0x2da   : > { %v4213_v50 = vsel %vm4131_vm14, %v4212_v47, %v4208_v37 }
 0x2db   : > { %v6636_v13 = vsel %vm4138_vm15, %v4217_v39, %v4213_v50 }
 0x2dc   : > { %v3935_v53 = vpop.permute.xlu1 %3934  ;;  %v3938_v49 = vpop.permute.xlu0 %3937 }
 0x2dd   : > { %v4222_v19 = vrot.slane %v3935_v53, %v6335_v42  ;;  %v4226_v10 = vrot.slane %v3938_v49, %v6352_v58 }
 0x2df   : > { %v4227_v56 = vsel %vm4040_vm1, %v4226_v10, %v4222_v19 }
 0x2e1   : > { %v3941_v43 = vpop.permute.xlu1 %3940  ;;  %v3944_v29 = vpop.permute.xlu0 %3943 }
 0x2e2   : > { %v4231_v54 = vrot.slane %v3941_v43, %v6375_v40  ;;  %v4236_v41 = vrot.slane %v3944_v29, %v6366_v52 }
 0x2e4   : > { %v4232_v27 = vsel %vm4047_vm2, %v4231_v54, %v4227_v56 }
 0x2e5   : > { %v3947_v15 = vpop.permute.xlu1 %3946  ;;  %v3950_v12 = vpop.permute.xlu0 %3949  ;;  %v4237_v51 = vsel %vm4054_vm3, %v4236_v41, %v4232_v27 }
 0x2e6   : > { %v4246_v31 = vrot.slane %v3950_v12, %v6424_v34 }
 0x2e9   : > { %v3953_v2 = vpop.permute.xlu1 %3952  ;;  %v3956_v9 = vpop.permute.xlu0 %3955 }
 0x2ea   : > { %v4251_v5 = vrot.slane %v3953_v2, %v6469_v6  ;;  %v4256_v53 = vrot.slane %v3956_v9, %v6472_v32 }
 0x2ed   : > { %v3959_v60 = vpop.permute.xlu1 %3958  ;;  %v6638_v17 = vpop.permute.xlu0 %3961 }
 0x2ee   : > { %v4261_v49 = vrot.slane %v3959_v60, %v6522_v11 }
 0x2f1   : > { %v6640_v33 = vpop.permute.xlu1 %3964  ;;  %v3983_v23 = vpop.permute.xlu0 %3982 }
 0x2f2   : > { %v4301_v8 = vrot.slane %v3983_v23, %v6335_v42  ;;  %v4271_v60 = vrot.slane %v6640_v33, %v6550_v20 }
 0x2f5   : > { %v3986_v38 = vpop.permute.xlu1 %3985  ;;  %v3989_v28 = vpop.permute.xlu0 %3988 }
 0x2f6   : > { %v4305_v26 = vrot.slane %v3986_v38, %v6352_v58  ;;  %v4310_v22 = vrot.slane %v3989_v28, %v6375_v40  ;;  %v4241_v58 = vrot.slane %v3947_v15, %v6421_v59 }
 0x2f8   : > { %v4306_v36 = vsel %vm4040_vm1, %v4305_v26, %v4301_v8 }
 0x2f9   : > { %v3992_v7 = vpop.permute.xlu1 %3991  ;;  %v3995_v14 = vpop.permute.xlu0 %3994  ;;  %v4311_v42 = vsel %vm4047_vm2, %v4310_v22, %v4306_v36 }
 0x2fa   : > { %v4315_v0 = vrot.slane %v3992_v7, %v6366_v52  ;;  %v4320_v4 = vrot.slane %v3995_v14, %v6421_v59  ;;  %v4242_v52 = vsel %vm4061_vm4, %v4241_v58, %v4237_v51 }
 0x2fb   : > { %v4247_v50 = vsel %vm4068_vm5, %v4246_v31, %v4242_v52 }
 0x2fc   : > { %v4316_v40 = vsel %vm4054_vm3, %v4315_v0, %v4311_v42 }
 0x2fd   : > { %v3998_v62 = vpop.permute.xlu1 %3997  ;;  %v4001_v35 = vpop.permute.xlu0 %4000  ;;  %v4321_v37 = vsel %vm4061_vm4, %v4320_v4, %v4316_v40 }
 0x2fe   : > { %v4325_v24 = vrot.slane %v3998_v62, %v6424_v34  ;;  %v4330_v61 = vrot.slane %v4001_v35, %v6469_v6  ;;  %v4252_v34 = vsel %vm4075_vm6, %v4251_v5, %v4247_v50 }
 0x2ff   : > { %v4257_v23 = vsel %vm4082_vm7, %v4256_v53, %v4252_v34 }
 0x300   : > { %v4326_v59 = vsel %vm4068_vm5, %v4325_v24, %v4321_v37  ;;  %v4262_v9 = vsel %vm4089_vm8, %v4261_v49, %v4257_v23 }
 0x301   : > { %v4004_v48 = vpop.permute.xlu1 %4003  ;;  %v4007_v18 = vpop.permute.xlu0 %4006  ;;  %v4331_v43 = vsel %vm4075_vm6, %v4330_v61, %v4326_v59 }
 0x302   : > { %v4335_v46 = vrot.slane %v4004_v48, %v6472_v32  ;;  %v4340_v29 = vrot.slane %v4007_v18, %v6522_v11  ;;  %v4266_v32 = vrot.slane %v6638_v17, %v6516_v57 }
 0x304   : > { %v4336_v6 = vsel %vm4082_vm7, %v4335_v46, %v4331_v43  ;;  %v4267_v26 = vsel %vm4096_vm9, %v4266_v32, %v4262_v9 }
 0x305   : > { %v4010_v3 = vpop.permute.xlu1 %4009  ;;  %v4013_v1 = vpop.permute.xlu0 %4012  ;;  %v4341_v38 = vsel %vm4089_vm8, %v4340_v29, %v4336_v6 }
 0x306   : > { %v4345_v15 = vrot.slane %v4010_v3, %v6516_v57  ;;  %v4350_v11 = vrot.slane %v4013_v1, %v6550_v20  ;;  %v4272_v20 = vsel %vm4103_vm10, %v4271_v60, %v4267_v26 }
 0x308   : > { %v4346_v28 = vsel %vm4096_vm9, %v4345_v15, %v4341_v38 }
 0x309   : > { %v3968_v16 = vpop.permute.xlu1 %3967  ;;  %v4016_v63 = vpop.permute.xlu0 %4015  ;;  %v4351_v18 = vsel %vm4103_vm10, %v4350_v11, %v4346_v28 }
 0x30a   : > { %v4276_v7 = vrot.slane %v3968_v16, %v6553_v30  ;;  %v4355_v14 = vrot.slane %v4016_v63, %v6553_v30 }
 0x30c   : > { %v4356_v10 = vsel %vm4110_vm11, %v4355_v14, %v4351_v18 }
 0x30d   : > { %v3971_v47 = vpop.permute.xlu1 %3970  ;;  %v4019_v39 = vpop.permute.xlu0 %4018 }
 0x30e   : > { %v4281_v62 = vrot.slane %v3971_v47, %v6580_v25  ;;  %v4360_v35 = vrot.slane %v4019_v39, %v6580_v25  ;;  %v4277_v25 = vsel %vm4110_vm11, %v4276_v7, %v4272_v20 }
 0x310   : > { %v4282_v8 = vsel %vm4117_vm12, %v4281_v62, %v4277_v25  ;;  %v4361_v54 = vsel %vm4117_vm12, %v4360_v35, %v4356_v10 }
 0x311   : > { %v3974_v12 = vpop.permute.xlu1 %3973  ;;  %v4022_v2 = vpop.permute.xlu0 %4021 }
 0x312   : > { %v4286_v33 = vrot.slane %v3974_v12, %v6583_v44  ;;  %v4365_v48 = vrot.slane %v4022_v2, %v6583_v44 }
 0x314   : > { %v4287_v44 = vsel %vm4124_vm13, %v4286_v33, %v4282_v8  ;;  %v4366_v0 = vsel %vm4124_vm13, %v4365_v48, %v4361_v54 }
 0x315   : > { %v3977_v57 = vpop.permute.xlu1 %3976  ;;  %v4025_v17 = vpop.permute.xlu0 %4024 }
 0x316   : > { %v4291_v30 = vrot.slane %v3977_v57, %v6594_v55  ;;  %v4370_v19 = vrot.slane %v4025_v17, %v6594_v55 }
 0x318   : > { %v4292_v1 = vsel %vm4131_vm14, %v4291_v30, %v4287_v44  ;;  %v4371_v56 = vsel %vm4131_vm14, %v4370_v19, %v4366_v0 }
 0x319   : > { %v3980_v22 = vpop.permute.xlu1 %3979  ;;  %v4028_v36 = vpop.permute.xlu0 %4027 }
 0x31a   : > { %v4296_v3 = vrot.slane %v3980_v22, %v6597_v21  ;;  %v4375_v55 = vrot.slane %v4028_v36, %v6597_v21 }
 0x31c   : > { %v4297_v41 = vsel %vm4138_vm15, %v4296_v3, %v4292_v1  ;;  %v4376_v27 = vsel %vm4138_vm15, %v4375_v55, %v4371_v56 }
 0x31d   : > { %v4378_v58 = vsel %vm4377_vm0, %v4297_v41, %v6603_v45  ;;  %v4379_v42 = vsel %vm4377_vm0, %v4376_v27, %v6636_v13 }
 0x31e   : > { %v4380_v4 = vcombine.low %v4378_v58, %v4379_v42 }
 0x320   : > { %4515 = vst.sshfl [vmem:[%s473_s20] sm:$0x33 pattern:$0x76325410] %v4380_v4 }
 0x321   : > { %4596 = shalt.err (!%p4593_p8)
}
 0x322   : > { %s4597_s30 = scalar_lea.hbm %s6713_s26, 64  ;;  %s4601_s6 = scalar_lea.hbm %s6764_s2, 128 }
 0x323   : > { %p4598_p11 = scmp.ne.s32.totalorder %s6713_s26, %s4597_s30  ;;  %p4602_p0 = scmp.lt.u32.totalorder %s6713_s26, %s6764_s2 }
 0x324   : > { %p4603_p1 = scmp.lt.u32.totalorder %s4601_s6, %s4597_s30  ;;  %p4605_p3 = scmp.lt.u32.totalorder %s4597_s30, %s6713_s26 }
 0x325   : > { %p4599_p12 = pnand %p4598_p11, %p4721_p5 }
 0x326   : > { %p4604_p2 = por %p4603_p1, %p4602_p0 }
 0x327   : > { %p4600_p13 = pneg %p4599_p12 }
 0x328   : > { %p4606_p4 = por %p4605_p3, %p4604_p2 }
 0x32a   : > { %p4607_p6 = pnand %p4606_p4, %p4600_p13 }
 0x32c   : > { %4610 = shalt.err (!%p4607_p6)
}
 0x32d   : > { %4523 = dma.vmem_to_hbm [thread:$0]  (%p4721_p5), %s6715_s23, 64, %s6713_s26, %s4391_s12  }
 0x32e PF: > { %s4419_s15 = sand.u32 1, %s4641_s9   ;;  %p4526_p7 = pnand %p4505_p10, %p4732_p9 }
 0x32f   : > { %s4420_s16 = scalar_lea.sflag [#allocation5], %s4419_s15 }
 0x330   : > { %4636 = dma.done.wait (!%p4526_p7), %s4420_s16, 64  }
 0x331   : > { %4638 = vsyncadd (!%p4526_p7), %s4420_s16, 4294967232  ;;  %s15_s14 = sadd.s32 1, %s4661_s14   ;;  %s7072_s9 = smov %s4645_s10 }
 0x332   : > { %p12_p8 = scmp.ge.s32.totalorder %s15_s14, 4   ;;  %s7073_s10 = smov %s4649_s11 }
 0x333   : > { %s7074_s11 = smov %s4730_s21  ;;  %s7075_s12 = smov %s4657_s13 }
 0x334   : > { %s7076_s13 = smov %s7078_s17  ;;  %14 = sbr.rel (!%p12_p8) target bundleno = 4 (0x4), region = 118 }
 0x33b   :  { %4425 = vsyncpa [#allocation5], 1 }
 0x33c   :  { %4427 = vsyncpa [#allocation5 + $0x1], 1 }

</bundles_post_ra>
